<compile_context>
chip_gen: v6e
topology: v6e:2x2x1
jax: 0.10.0
libtpu: 0.0.40
codegen_flags: <defaults>
</compile_context>

<pallas_src>
import functools
import math

import jax
import jax.numpy as jnp
from jax.experimental import pallas as pl
from jax.experimental.pallas import tpu as pltpu


# ----------------------------------------------------------------------------
# In-kernel helpers (traced inside Pallas kernels)
# ----------------------------------------------------------------------------
def _layernorm(x, g, b, eps=1e-5):
    mean = jnp.mean(x, axis=-1, keepdims=True)
    var = jnp.mean(jnp.square(x - mean), axis=-1, keepdims=True)
    return (x - mean) * jax.lax.rsqrt(var + eps) * g + b


def _mha_heads(ctx_ref, q_ref, kv_ref, q_col0, k_col0, v_col0, mask,
               *, bt, lq, lk, n_heads, dh, has_mask):
    """All heads of softmax attention, batched over the `bt` packed batch elements.

    q_ref / kv_ref are VMEM scratch holding bf16 Q / K,V projections (softmax scale
    already folded into the Q weights).  Per-head operands are narrow column windows
    of those refs, scores use a batched einsum contracting the last dim (no K
    transpose), and per-head context lands in column slices of ctx_ref (no concat).
    """
    for h in range(n_heads):
        qh = q_ref[:, pl.ds(q_col0 + h * dh, dh)].reshape(bt, lq, dh)
        kh = kv_ref[:, pl.ds(k_col0 + h * dh, dh)].reshape(bt, lk, dh)
        vh = kv_ref[:, pl.ds(v_col0 + h * dh, dh)].reshape(bt, lk, dh)
        s = jnp.einsum("bqd,bkd->bqk", qh, kh, preferred_element_type=jnp.float32)
        if has_mask:
            s = s + mask                          # additive mask, broadcast over batch
        s = s - jnp.max(s, axis=-1, keepdims=True)
        p = jnp.exp(s)
        p = p * pl.reciprocal(jnp.sum(p, axis=-1, keepdims=True), approx=True)
        oh = jnp.einsum("bqk,bkd->bqd", p.astype(jnp.bfloat16), vh,
                        preferred_element_type=jnp.float32)
        ctx_ref[:, pl.ds(h * dh, dh)] = oh.reshape(bt * lq, dh)
    return ctx_ref[...]


# ----------------------------------------------------------------------------
# Fused encoder stack kernel: embedding (layer step 0) + all encoder layers
# ----------------------------------------------------------------------------
def _encoder_stack_kernel(x_ref, xm_ref, pe_ref, wv_ref, bv_ref, wt_ref, btm_ref,
                          mask_ref,
                          wqkv_ref, bqkv_ref, wo_ref, bo_ref,
                          f1w_ref, f1b_ref, f2w_ref, f2b_ref,
                          g1_ref, b1_ref, g2_ref, b2_ref,
                          o_ref,
                          act_ref, ctx_ref, qkv_ref,
                          *, bt, seq, n_heads, dh, has_mask):
    l_id = pl.program_id(1)
    n_l = pl.num_programs(1)
    d_model = act_ref.shape[-1]
    rows = bt * seq

    # TODO(synk): embm.OriginDataEmbedding internals unavailable; value-linear +
    # temporal-linear + sinusoidal positional embedding, dropout = identity (eval).
    @pl.when(l_id == 0)
    def _embed():
        xv = x_ref[...].reshape(rows, x_ref.shape[-1]).astype(jnp.bfloat16)
        xt = xm_ref[...].reshape(rows, xm_ref.shape[-1]).astype(jnp.bfloat16)
        emb = (jnp.dot(xv, wv_ref[...], preferred_element_type=jnp.float32) + bv_ref[...]
               + jnp.dot(xt, wt_ref[...], preferred_element_type=jnp.float32) + btm_ref[...]
               + pe_ref[...])
        act_ref[...] = emb

    mask = mask_ref[...] if has_mask else None

    # TODO(synk): encm.Encoder internals unavailable; standard post-norm layer + ReLU FFN.
    x2 = act_ref[...]
    xb = x2.astype(jnp.bfloat16)
    qkv = jnp.dot(xb, wqkv_ref[0], preferred_element_type=jnp.float32) + bqkv_ref[0]
    qkv_ref[...] = qkv.astype(jnp.bfloat16)
    ctx = _mha_heads(ctx_ref, qkv_ref, qkv_ref, 0, d_model, 2 * d_model, mask,
                     bt=bt, lq=seq, lk=seq, n_heads=n_heads, dh=dh, has_mask=has_mask)
    attn = jnp.dot(ctx.astype(jnp.bfloat16), wo_ref[0],
                   preferred_element_type=jnp.float32) + bo_ref[0]
    x1 = _layernorm(x2 + attn, g1_ref[0], b1_ref[0])
    # TODO(synk): for very large d_ff on v7x, tile this FFN over the hidden axis
    # (pltpu.emit_pipeline) instead of keeping f1w/f2w fully resident.
    h = jnp.maximum(jnp.dot(x1.astype(jnp.bfloat16), f1w_ref[0],
                            preferred_element_type=jnp.float32) + f1b_ref[0], 0.0)
    h = jnp.dot(h.astype(jnp.bfloat16), f2w_ref[0],
                preferred_element_type=jnp.float32) + f2b_ref[0]
    act_ref[...] = _layernorm(x1 + h, g2_ref[0], b2_ref[0])

    @pl.when(l_id == n_l - 1)
    def _store():
        o_ref[...] = act_ref[...].reshape(bt, seq, d_model).astype(o_ref.dtype)


# ----------------------------------------------------------------------------
# Fused decoder stack kernel: embedding + all decoder layers + Conv1d/ReLU/Linear head
# ----------------------------------------------------------------------------
def _decoder_stack_kernel(y_ref, ym_ref, pe_ref, wv_ref, bv_ref, wt_ref, btm_ref,
                          enc_ref, la_ref, ed_ref,
                          sa_wqkv_ref, sa_bqkv_ref, sa_wo_ref, sa_bo_ref,
                          ca_wq_ref, ca_bq_ref, ca_wkv_ref, ca_bkv_ref, ca_wo_ref, ca_bo_ref,
                          f1w_ref, f1b_ref, f2w_ref, f2b_ref,
                          g1_ref, b1_ref, g2_ref, b2_ref, g3_ref, b3_ref,
                          wc_ref, bc_ref, wout_ref, bout_ref,
                          out_ref,
                          act_ref, ctx_ref, qkv_ref, kv_ref,
                          *, bt, lq, lk, n_heads, dh, has_la, has_ed):
    l_id = pl.program_id(1)
    n_l = pl.num_programs(1)
    d_model = act_ref.shape[-1]
    rows_q = bt * lq
    rows_k = bt * lk

    # TODO(synk): embm.OriginDataEmbedding internals unavailable (see encoder kernel).
    @pl.when(l_id == 0)
    def _embed():
        yv = y_ref[...].reshape(rows_q, y_ref.shape[-1]).astype(jnp.bfloat16)
        yt = ym_ref[...].reshape(rows_q, ym_ref.shape[-1]).astype(jnp.bfloat16)
        emb = (jnp.dot(yv, wv_ref[...], preferred_element_type=jnp.float32) + bv_ref[...]
               + jnp.dot(yt, wt_ref[...], preferred_element_type=jnp.float32) + btm_ref[...]
               + pe_ref[...])
        act_ref[...] = emb

    enc2 = enc_ref[...].reshape(rows_k, d_model)          # already bf16
    la = la_ref[...] if has_la else None
    ed = ed_ref[...] if has_ed else None

    # TODO(synk): decm.Decoder internals unavailable; standard post-norm layer used.
    y2 = act_ref[...]
    yb = y2.astype(jnp.bfloat16)
    # --- masked self-attention (fused QKV, scale folded into Q weights) ---
    qkv = jnp.dot(yb, sa_wqkv_ref[0], preferred_element_type=jnp.float32) + sa_bqkv_ref[0]
    qkv_ref[...] = qkv.astype(jnp.bfloat16)
    ctx = _mha_heads(ctx_ref, qkv_ref, qkv_ref, 0, d_model, 2 * d_model, la,
                     bt=bt, lq=lq, lk=lq, n_heads=n_heads, dh=dh, has_mask=has_la)
    a = jnp.dot(ctx.astype(jnp.bfloat16), sa_wo_ref[0],
                preferred_element_type=jnp.float32) + sa_bo_ref[0]
    y1 = _layernorm(y2 + a, g1_ref[0], b1_ref[0])
    # --- encoder-decoder cross attention (fused KV) ---
    qc = jnp.dot(y1.astype(jnp.bfloat16), ca_wq_ref[0],
                 preferred_element_type=jnp.float32) + ca_bq_ref[0]
    qkv_ref[:, pl.ds(0, d_model)] = qc.astype(jnp.bfloat16)
    kvc = jnp.dot(enc2, ca_wkv_ref[0], preferred_element_type=jnp.float32) + ca_bkv_ref[0]
    kv_ref[...] = kvc.astype(jnp.bfloat16)
    ctx = _mha_heads(ctx_ref, qkv_ref, kv_ref, 0, 0, d_model, ed,
                     bt=bt, lq=lq, lk=lk, n_heads=n_heads, dh=dh, has_mask=has_ed)
    c = jnp.dot(ctx.astype(jnp.bfloat16), ca_wo_ref[0],
                preferred_element_type=jnp.float32) + ca_bo_ref[0]
    y2n = _layernorm(y1 + c, g2_ref[0], b2_ref[0])
    # --- FFN ---
    h = jnp.maximum(jnp.dot(y2n.astype(jnp.bfloat16), f1w_ref[0],
                            preferred_element_type=jnp.float32) + f1b_ref[0], 0.0)
    h = jnp.dot(h.astype(jnp.bfloat16), f2w_ref[0],
                preferred_element_type=jnp.float32) + f2b_ref[0]
    act_ref[...] = _layernorm(y2n + h, g3_ref[0], b3_ref[0])

    # Conv1d(in=x_len, out=y_len, k=1) over the sequence axis + ReLU + Linear, fused
    # into the last layer step (dropout = identity, eval mode).
    @pl.when(l_id == n_l - 1)
    def _head():
        wc = wc_ref[...]
        wout = wout_ref[...]
        for b in range(bt):
            db = act_ref[pl.ds(b * lq, lq), :].astype(jnp.bfloat16)          # (lq, D)
            hb = jnp.dot(wc, db, preferred_element_type=jnp.float32) + bc_ref[...]
            hb = jnp.maximum(hb, 0.0)
            ob = jnp.dot(hb.astype(jnp.bfloat16), wout,
                         preferred_element_type=jnp.float32) + bout_ref[...]
            out_ref[b] = ob.astype(out_ref.dtype)


# ----------------------------------------------------------------------------
# BlockSpec helpers
# ----------------------------------------------------------------------------
def _rep(shape, single_buffer=True):
    """Grid-constant operand (same block every step); single-buffered when possible."""
    nd = len(shape)
    imap = lambda g, l, _nd=nd: (0,) * _nd
    if single_buffer:
        try:
            return pl.BlockSpec(shape, imap, pipeline_mode=pl.Buffered(1))
        except (AttributeError, TypeError):
            pass
    return pl.BlockSpec(shape, imap)


def _stk(full_shape):
    """Per-layer stacked operand: block (1, ...) indexed by the layer grid axis."""
    nd = len(full_shape)
    return pl.BlockSpec((1,) + tuple(full_shape[1:]),
                        lambda g, l, _nd=nd: (l,) + (0,) * (_nd - 1))


def _pick_batch_block(batch, seq, target_rows=256):
    """Smallest divisor of `batch` whose packed row count (bt*seq) reaches the MXU row
    target (256 for v6e/v7x, >=128 for v5e); keeps the 'parallel' grid axis as long as
    possible so both v7x TensorCores stay busy."""
    for d in range(1, batch + 1):
        if batch % d == 0 and d * seq >= target_rows:
            return d
    return batch


# ----------------------------------------------------------------------------
# pallas_call wrappers
# ----------------------------------------------------------------------------
def encoder_forward(emb, layers, x, x_mark, enc_self_mask, n_heads, bt, single_buffer=True):
    B, L, Fe = x.shape
    Te = x_mark.shape[-1]
    D = emb["wv"].shape[1]
    NL = layers["wqkv"].shape[0]
    dh = D // n_heads
    assert B % bt == 0
    G = B // bt
    rows = bt * L

    has_mask = enc_self_mask is not None
    mask = (enc_self_mask.astype(jnp.float32) if has_mask
            else jnp.zeros((8, 128), jnp.float32))      # tiny dummy, never read
    pe_tiled = jnp.tile(emb["pe"][:L], (bt, 1))          # (bt*L, D)
    rep = functools.partial(_rep, single_buffer=single_buffer)

    kernel = functools.partial(_encoder_stack_kernel, bt=bt, seq=L,
                               n_heads=n_heads, dh=dh, has_mask=has_mask)

    in_specs = [
        pl.BlockSpec((bt, L, Fe), lambda g, l: (g, 0, 0)),
        pl.BlockSpec((bt, L, Te), lambda g, l: (g, 0, 0)),
        rep(pe_tiled.shape), rep(emb["wv"].shape), rep(emb["bv"].shape),
        rep(emb["wt"].shape), rep(emb["btm"].shape),
        rep(mask.shape),
        _stk(layers["wqkv"].shape), _stk(layers["bqkv"].shape),
        _stk(layers["wo"].shape), _stk(layers["bo"].shape),
        _stk(layers["f1w"].shape), _stk(layers["f1b"].shape),
        _stk(layers["f2w"].shape), _stk(layers["f2b"].shape),
        _stk(layers["ln1g"].shape), _stk(layers["ln1b"].shape),
        _stk(layers["ln2g"].shape), _stk(layers["ln2b"].shape),
    ]

    # Explicit VMEM budget (review): blocked operands double-buffered, per-layer
    # weights double-buffered, constants single-buffered, plus scratch + headroom.
    per_layer_w = sum(int(v.nbytes) for v in layers.values()) // NL
    const_b = (sum(int(v.nbytes) for v in emb.values()) + int(mask.nbytes)
               + int(pe_tiled.nbytes))
    blk_b = 4 * rows * (Fe + Te) + 2 * rows * D
    scratch_b = 2 * 4 * rows * D + 2 * rows * 3 * D
    est = (2 * (per_layer_w + blk_b) + (1 if single_buffer else 2) * const_b
           + scratch_b + (4 << 20))
    vmem_limit = int(min(max(est, 32 << 20), 64 << 20))

    return pl.pallas_call(
        kernel,
        out_shape=jax.ShapeDtypeStruct((B, L, D), jnp.bfloat16),
        grid=(G, NL),
        in_specs=in_specs,
        out_specs=pl.BlockSpec((bt, L, D), lambda g, l: (g, 0, 0)),
        scratch_shapes=[pltpu.VMEM((rows, D), jnp.float32),
                        pltpu.VMEM((rows, D), jnp.float32),
                        pltpu.VMEM((rows, 3 * D), jnp.bfloat16)],
        compiler_params=pltpu.CompilerParams(
            dimension_semantics=("parallel", "arbitrary"),
            vmem_limit_bytes=vmem_limit),
    )(x, x_mark, pe_tiled, emb["wv"], emb["bv"], emb["wt"], emb["btm"], mask,
      layers["wqkv"], layers["bqkv"], layers["wo"], layers["bo"],
      layers["f1w"], layers["f1b"], layers["f2w"], layers["f2b"],
      layers["ln1g"], layers["ln1b"], layers["ln2g"], layers["ln2b"])


def decoder_forward(emb, layers, head, y, y_mark, enc, look_ahead_mask, enc_dec_mask,
                    n_heads, bt, single_buffer=True):
    B, Ly, Fd = y.shape
    Td = y_mark.shape[-1]
    _, Lx, D = enc.shape
    NL = layers["sa_wqkv"].shape[0]
    dh = D // n_heads
    assert B % bt == 0
    G = B // bt
    rows_q, rows_k = bt * Ly, bt * Lx
    y_out, conv_in = head["wc"].shape
    out_len = head["wout"].shape[-1]
    assert Ly == conv_in, "Conv1d(in_channels=x_len) requires decoder length == x_len"

    has_la = look_ahead_mask is not None
    has_ed = enc_dec_mask is not None
    la = (look_ahead_mask.astype(jnp.float32) if has_la
          else jnp.zeros((8, 128), jnp.float32))
    ed = (enc_dec_mask.astype(jnp.float32) if has_ed
          else jnp.zeros((8, 128), jnp.float32))
    pe_tiled = jnp.tile(emb["pe"][:Ly], (bt, 1))
    rep = functools.partial(_rep, single_buffer=single_buffer)

    kernel = functools.partial(_decoder_stack_kernel, bt=bt, lq=Ly, lk=Lx,
                               n_heads=n_heads, dh=dh, has_la=has_la, has_ed=has_ed)

    in_specs = [
        pl.BlockSpec((bt, Ly, Fd), lambda g, l: (g, 0, 0)),
        pl.BlockSpec((bt, Ly, Td), lambda g, l: (g, 0, 0)),
        rep(pe_tiled.shape), rep(emb["wv"].shape), rep(emb["bv"].shape),
        rep(emb["wt"].shape), rep(emb["btm"].shape),
        pl.BlockSpec((bt, Lx, D), lambda g, l: (g, 0, 0)),
        rep(la.shape), rep(ed.shape),
        _stk(layers["sa_wqkv"].shape), _stk(layers["sa_bqkv"].shape),
        _stk(layers["sa_wo"].shape), _stk(layers["sa_bo"].shape),
        _stk(layers["ca_wq"].shape), _stk(layers["ca_bq"].shape),
        _stk(layers["ca_wkv"].shape), _stk(layers["ca_bkv"].shape),
        _stk(layers["ca_wo"].shape), _stk(layers["ca_bo"].shape),
        _stk(layers["f1w"].shape), _stk(layers["f1b"].shape),
        _stk(layers["f2w"].shape), _stk(layers["f2b"].shape),
        _stk(layers["ln1g"].shape), _stk(layers["ln1b"].shape),
        _stk(layers["ln2g"].shape), _stk(layers["ln2b"].shape),
        _stk(layers["ln3g"].shape), _stk(layers["ln3b"].shape),
        rep(head["wc"].shape), rep(head["bc"].shape),
        rep(head["wout"].shape), rep(head["bout"].shape),
    ]

    per_layer_w = sum(int(v.nbytes) for v in layers.values()) // NL
    const_b = (sum(int(v.nbytes) for v in emb.values())
               + sum(int(v.nbytes) for v in head.values())
               + int(la.nbytes) + int(ed.nbytes) + int(pe_tiled.nbytes))
    blk_b = 4 * rows_q * (Fd + Td) + 2 * rows_k * D + 4 * bt * y_out * out_len
    scratch_b = 2 * 4 * rows_q * D + 2 * rows_q * 3 * D + 2 * rows_k * 2 * D
    est = (2 * (per_layer_w + blk_b) + (1 if single_buffer else 2) * const_b
           + scratch_b + (4 << 20))
    vmem_limit = int(min(max(est, 32 << 20), 64 << 20))

    return pl.pallas_call(
        kernel,
        out_shape=jax.ShapeDtypeStruct((B, y_out, out_len), jnp.float32),
        grid=(G, NL),
        in_specs=in_specs,
        out_specs=pl.BlockSpec((bt, y_out, out_len), lambda g, l: (g, 0, 0)),
        scratch_shapes=[pltpu.VMEM((rows_q, D), jnp.float32),
                        pltpu.VMEM((rows_q, D), jnp.float32),
                        pltpu.VMEM((rows_q, 3 * D), jnp.bfloat16),
                        pltpu.VMEM((rows_k, 2 * D), jnp.bfloat16)],
        compiler_params=pltpu.CompilerParams(
            dimension_semantics=("parallel", "arbitrary"),
            vmem_limit_bytes=vmem_limit),
    )(y, y_mark, pe_tiled, emb["wv"], emb["bv"], emb["wt"], emb["btm"],
      enc, la, ed,
      layers["sa_wqkv"], layers["sa_bqkv"], layers["sa_wo"], layers["sa_bo"],
      layers["ca_wq"], layers["ca_bq"], layers["ca_wkv"], layers["ca_bkv"],
      layers["ca_wo"], layers["ca_bo"],
      layers["f1w"], layers["f1b"], layers["f2w"], layers["f2b"],
      layers["ln1g"], layers["ln1b"], layers["ln2g"], layers["ln2b"],
      layers["ln3g"], layers["ln3b"],
      head["wc"], head["bc"], head["wout"], head["bout"])


# ----------------------------------------------------------------------------
# Full forward (matches VnAW.forward, embed_type='origin', eval mode)
# ----------------------------------------------------------------------------
def vnaw_forward(params, cfg, x, x_mark, y, y_mark, enc_self_mask=None,
                 look_ahead_mask=None, enc_dec_mask=None, single_buffer_constants=True):
    # TODO(synk): enc_layer_num == 0 / dec_layer_num == 0 paths of the original module
    # are not implemented (the fused stack kernels assume >= 1 layer).
    n_heads = cfg["n_heads"]
    bt = _pick_batch_block(x.shape[0], cfg["x_len"])
    enc = encoder_forward(params["enc_emb"], params["enc_layers"], x, x_mark,
                          enc_self_mask, n_heads, bt, single_buffer_constants)
    out = decoder_forward(params["dec_emb"], params["dec_layers"], params["head"],
                          y, y_mark, enc, look_ahead_mask, enc_dec_mask,
                          n_heads, bt, single_buffer_constants)
    return out


# ----------------------------------------------------------------------------
# Deterministic parameter init (weights bf16, biases/LN/masks/PE f32)
# ----------------------------------------------------------------------------
def _w(key, din, dout, scale=0.02):
    return scale * jax.random.normal(key, (din, dout), jnp.float32)


def sinusoidal_pe(max_len, d_model):
    pos = jnp.arange(max_len, dtype=jnp.float32)[:, None]
    i = jnp.arange(0, d_model, 2, dtype=jnp.float32)
    div = jnp.exp(-math.log(10000.0) * i / d_model)
    pe = jnp.zeros((max_len, d_model), jnp.float32)
    pe = pe.at[:, 0::2].set(jnp.sin(pos * div))
    pe = pe.at[:, 1::2].set(jnp.cos(pos * div))
    return pe


def _stack_layers(dicts):
    return jax.tree_util.tree_map(lambda *xs: jnp.stack(xs, axis=0), *dicts)


def init_embedding(key, feat_len, temp_len, d, max_len):
    kv, kt = jax.random.split(key, 2)
    return {"wv": _w(kv, feat_len, d).astype(jnp.bfloat16),
            "bv": jnp.zeros((1, d), jnp.float32),
            "wt": _w(kt, temp_len, d).astype(jnp.bfloat16),
            "btm": jnp.zeros((1, d), jnp.float32),
            "pe": sinusoidal_pe(max_len, d)}


def init_enc_stack(key, n_layers, d, dff, n_heads):
    assert n_layers >= 1
    scale = 1.0 / math.sqrt(d // n_heads)

    def one(k):
        kq, kk, kv, ko, k1, k2 = jax.random.split(k, 6)
        wqkv = jnp.concatenate([_w(kq, d, d) * scale, _w(kk, d, d), _w(kv, d, d)], axis=1)
        return {"wqkv": wqkv.astype(jnp.bfloat16),
                "bqkv": jnp.zeros((1, 3 * d), jnp.float32),
                "wo": _w(ko, d, d).astype(jnp.bfloat16), "bo": jnp.zeros((1, d), jnp.float32),
                "f1w": _w(k1, d, dff).astype(jnp.bfloat16), "f1b": jnp.zeros((1, dff), jnp.float32),
                "f2w": _w(k2, dff, d).astype(jnp.bfloat16), "f2b": jnp.zeros((1, d), jnp.float32),
                "ln1g": jnp.ones((1, d), jnp.float32), "ln1b": jnp.zeros((1, d), jnp.float32),
                "ln2g": jnp.ones((1, d), jnp.float32), "ln2b": jnp.zeros((1, d), jnp.float32)}

    return _stack_layers([one(k) for k in jax.random.split(key, n_layers)])


def init_dec_stack(key, n_layers, d, dff, n_heads):
    assert n_layers >= 1
    scale = 1.0 / math.sqrt(d // n_heads)

    def one(k):
        kq, kk, kv, ko, cq, ck, cv, co, k1, k2 = jax.random.split(k, 10)
        sa_wqkv = jnp.concatenate([_w(kq, d, d) * scale, _w(kk, d, d), _w(kv, d, d)], axis=1)
        ca_wkv = jnp.concatenate([_w(ck, d, d), _w(cv, d, d)], axis=1)
        return {"sa_wqkv": sa_wqkv.astype(jnp.bfloat16),
                "sa_bqkv": jnp.zeros((1, 3 * d), jnp.float32),
                "sa_wo": _w(ko, d, d).astype(jnp.bfloat16), "sa_bo": jnp.zeros((1, d), jnp.float32),
                "ca_wq": (_w(cq, d, d) * scale).astype(jnp.bfloat16),
                "ca_bq": jnp.zeros((1, d), jnp.float32),
                "ca_wkv": ca_wkv.astype(jnp.bfloat16), "ca_bkv": jnp.zeros((1, 2 * d), jnp.float32),
                "ca_wo": _w(co, d, d).astype(jnp.bfloat16), "ca_bo": jnp.zeros((1, d), jnp.float32),
                "f1w": _w(k1, d, dff).astype(jnp.bfloat16), "f1b": jnp.zeros((1, dff), jnp.float32),
                "f2w": _w(k2, dff, d).astype(jnp.bfloat16), "f2b": jnp.zeros((1, d), jnp.float32),
                "ln1g": jnp.ones((1, d), jnp.float32), "ln1b": jnp.zeros((1, d), jnp.float32),
                "ln2g": jnp.ones((1, d), jnp.float32), "ln2b": jnp.zeros((1, d), jnp.float32),
                "ln3g": jnp.ones((1, d), jnp.float32), "ln3b": jnp.zeros((1, d), jnp.float32)}

    return _stack_layers([one(k) for k in jax.random.split(key, n_layers)])


def init_head(key, x_len, y_len, d, out_len):
    kc, ko = jax.random.split(key, 2)
    # Conv1d(in=x_len, out=y_len, k=1) weight stored as (y_len, x_len)
    return {"wc": _w(kc, y_len, x_len).astype(jnp.bfloat16),
            "bc": jnp.zeros((y_len, 1), jnp.float32),
            "wout": _w(ko, d, out_len).astype(jnp.bfloat16),
            "bout": jnp.zeros((1, out_len), jnp.float32)}


def init_params(key, cfg):
    d, dff, H = cfg["d_model"], cfg["d_ff"], cfg["n_heads"]
    assert d % H == 0
    ks = jax.random.split(key, 5)
    return {
        "enc_emb": init_embedding(ks[0], cfg["enc_feature_len"], cfg["enc_temporal_len"],
                                  d, cfg["x_len"]),
        "dec_emb": init_embedding(ks[1], cfg["dec_feature_len"], cfg["dec_temporal_len"],
                                  d, cfg["y_len"]),
        "head": init_head(ks[2], cfg["x_len"], cfg["y_len"], d, cfg["output_length"]),
        "enc_layers": init_enc_stack(ks[3], cfg["enc_layer_num"], d, dff, H),
        "dec_layers": init_dec_stack(ks[4], cfg["dec_layer_num"], d, dff, H),
    }


# ----------------------------------------------------------------------------
if __name__ == "__main__":
    cfg = dict(x_len=8, y_len=8, d_model=64, d_ff=128, n_heads=4,
               enc_layer_num=2, dec_layer_num=2,
               enc_feature_len=4, dec_feature_len=4,
               enc_temporal_len=3, dec_temporal_len=3,
               output_length=4)

    params = init_params(jax.random.PRNGKey(0), cfg)

    B = 4
    kx, kxm, ky, kym = jax.random.split(jax.random.PRNGKey(0), 4)
    x = jax.random.normal(kx, (B, cfg["x_len"], cfg["enc_feature_len"]), jnp.float32)
    x_mark = jax.random.normal(kxm, (B, cfg["x_len"], cfg["enc_temporal_len"]), jnp.float32)
    y = jax.random.normal(ky, (B, cfg["y_len"], cfg["dec_feature_len"]), jnp.float32)
    y_mark = jax.random.normal(kym, (B, cfg["y_len"], cfg["dec_temporal_len"]), jnp.float32)

    # causal (look-ahead) additive mask for decoder self-attention
    Ly = cfg["y_len"]
    look_ahead = jnp.where(jnp.triu(jnp.ones((Ly, Ly), jnp.bool_), k=1),
                           -1e9, 0.0).astype(jnp.float32)

    def run(single_buffer):
        out = vnaw_forward(params, cfg, x, x_mark, y, y_mark,
                           enc_self_mask=None, look_ahead_mask=look_ahead,
                           enc_dec_mask=None,
                           single_buffer_constants=single_buffer)
        return jax.block_until_ready(out)

    try:
        out = run(True)
    except Exception:
        # pl.Buffered(1) single-buffering not supported on this jax/libtpu version:
        # fall back to default double-buffered constant operands.
        out = run(False)

    assert out.shape == (B, cfg["y_len"], cfg["output_length"])
    assert bool(jnp.all(jnp.isfinite(out)))
    print("KERNEL_OK")
</pallas_src>

<mosaic_0001>
module attributes {stable_mosaic.version = 11 : i64} {
  func.func @_encoder_stack_kernel(%arg0: i32, %arg1: i32, %arg2: memref<4x8x4xf32, #tpu.memory_space<vmem>>, %arg3: memref<4x8x3xf32, #tpu.memory_space<vmem>>, %arg4: memref<32x64xf32, #tpu.memory_space<vmem>>, %arg5: memref<4x64xbf16, #tpu.memory_space<vmem>>, %arg6: memref<1x64xf32, #tpu.memory_space<vmem>>, %arg7: memref<3x64xbf16, #tpu.memory_space<vmem>>, %arg8: memref<1x64xf32, #tpu.memory_space<vmem>>, %arg9: memref<8x128xf32, #tpu.memory_space<vmem>>, %arg10: memref<1x64x192xbf16, #tpu.memory_space<vmem>>, %arg11: memref<1x1x192xf32, #tpu.memory_space<vmem>>, %arg12: memref<1x64x64xbf16, #tpu.memory_space<vmem>>, %arg13: memref<1x1x64xf32, #tpu.memory_space<vmem>>, %arg14: memref<1x64x128xbf16, #tpu.memory_space<vmem>>, %arg15: memref<1x1x128xf32, #tpu.memory_space<vmem>>, %arg16: memref<1x128x64xbf16, #tpu.memory_space<vmem>>, %arg17: memref<1x1x64xf32, #tpu.memory_space<vmem>>, %arg18: memref<1x1x64xf32, #tpu.memory_space<vmem>>, %arg19: memref<1x1x64xf32, #tpu.memory_space<vmem>>, %arg20: memref<1x1x64xf32, #tpu.memory_space<vmem>>, %arg21: memref<1x1x64xf32, #tpu.memory_space<vmem>>, %arg22: memref<4x8x64xbf16, #tpu.memory_space<vmem>>, %arg23: memref<32x64xf32, #tpu.memory_space<vmem>>, %arg24: memref<32x64xf32, #tpu.memory_space<vmem>>, %arg25: memref<32x192xbf16, #tpu.memory_space<vmem>>) attributes {dimension_semantics = [#tpu.dimension_semantics<parallel>, #tpu.dimension_semantics<arbitrary>], iteration_bounds = array<i64: 1, 2>, scalar_prefetch = 0 : i64, scratch_operands = 3 : i64, tpu.core_type = #tpu.core_type<tc>, window_params = [{transform_indices = @transform_0, window_bounds = array<i64: 4, 8, 4>}, {transform_indices = @transform_1, window_bounds = array<i64: 4, 8, 3>}, {pipeline_mode = #tpu.pipeline_mode<synchronous>, transform_indices = @transform_2, window_bounds = array<i64: 32, 64>}, {pipeline_mode = #tpu.pipeline_mode<synchronous>, transform_indices = @transform_3, window_bounds = array<i64: 4, 64>}, {pipeline_mode = #tpu.pipeline_mode<synchronous>, transform_indices = @transform_4, window_bounds = array<i64: 1, 64>}, {pipeline_mode = #tpu.pipeline_mode<synchronous>, transform_indices = @transform_5, window_bounds = array<i64: 3, 64>}, {pipeline_mode = #tpu.pipeline_mode<synchronous>, transform_indices = @transform_6, window_bounds = array<i64: 1, 64>}, {pipeline_mode = #tpu.pipeline_mode<synchronous>, transform_indices = @transform_7, window_bounds = array<i64: 8, 128>}, {transform_indices = @transform_8, window_bounds = array<i64: 1, 64, 192>}, {transform_indices = @transform_9, window_bounds = array<i64: 1, 1, 192>}, {transform_indices = @transform_10, window_bounds = array<i64: 1, 64, 64>}, {transform_indices = @transform_11, window_bounds = array<i64: 1, 1, 64>}, {transform_indices = @transform_12, window_bounds = array<i64: 1, 64, 128>}, {transform_indices = @transform_13, window_bounds = array<i64: 1, 1, 128>}, {transform_indices = @transform_14, window_bounds = array<i64: 1, 128, 64>}, {transform_indices = @transform_15, window_bounds = array<i64: 1, 1, 64>}, {transform_indices = @transform_16, window_bounds = array<i64: 1, 1, 64>}, {transform_indices = @transform_17, window_bounds = array<i64: 1, 1, 64>}, {transform_indices = @transform_18, window_bounds = array<i64: 1, 1, 64>}, {transform_indices = @transform_19, window_bounds = array<i64: 1, 1, 64>}, {transform_indices = @transform_20, window_bounds = array<i64: 4, 8, 64>}]} {
    %c0_i32 = arith.constant 0 : i32
    %0 = arith.cmpi eq, %arg1, %c0_i32 : i32
    %1 = arith.extui %0 : i1 to i32
    %c0_i32_0 = arith.constant 0 : i32
    %2 = arith.cmpi ne, %1, %c0_i32_0 : i32
    scf.if %2 {
      %c0_96 = arith.constant 0 : index
      %c0_97 = arith.constant 0 : index
      %c0_98 = arith.constant 0 : index
      %183 = vector.load %arg2[%c0_96, %c0_97, %c0_98] : memref<4x8x4xf32, #tpu.memory_space<vmem>>, vector<4x8x4xf32>
      %184 = vector.shape_cast %183 : vector<4x8x4xf32> to vector<32x4xf32>
      %185 = arith.truncf %184 : vector<32x4xf32> to vector<32x4xbf16>
      %c0_99 = arith.constant 0 : index
      %c0_100 = arith.constant 0 : index
      %c0_101 = arith.constant 0 : index
      %186 = vector.load %arg3[%c0_99, %c0_100, %c0_101] : memref<4x8x3xf32, #tpu.memory_space<vmem>>, vector<4x8x3xf32>
      %187 = vector.shape_cast %186 : vector<4x8x3xf32> to vector<32x3xf32>
      %188 = arith.truncf %187 : vector<32x3xf32> to vector<32x3xbf16>
      %c0_102 = arith.constant 0 : index
      %c0_103 = arith.constant 0 : index
      %189 = vector.load %arg5[%c0_102, %c0_103] : memref<4x64xbf16, #tpu.memory_space<vmem>>, vector<4x64xbf16>
      %cst_104 = arith.constant dense<0.000000e+00> : vector<32x64xf32>
      %190 = tpu.matmul %185, %189, %cst_104 {dimension_numbers = #tpu.dot_dimension_numbers<[1], [0], [0], [1], [0, 0, 1, 1], [], []>} : vector<32x4xbf16>, vector<4x64xbf16>, vector<32x64xf32> -> vector<32x64xf32>
      %c0_105 = arith.constant 0 : index
      %c0_106 = arith.constant 0 : index
      %191 = vector.load %arg6[%c0_105, %c0_106] : memref<1x64xf32, #tpu.memory_space<vmem>>, vector<1x64xf32>
      %192 = vector.broadcast %191 : vector<1x64xf32> to vector<32x64xf32>
      %193 = arith.addf %190, %192 : vector<32x64xf32>
      %c0_107 = arith.constant 0 : index
      %c0_108 = arith.constant 0 : index
      %194 = vector.load %arg7[%c0_107, %c0_108] : memref<3x64xbf16, #tpu.memory_space<vmem>>, vector<3x64xbf16>
      %cst_109 = arith.constant dense<0.000000e+00> : vector<32x64xf32>
      %195 = tpu.matmul %188, %194, %cst_109 {dimension_numbers = #tpu.dot_dimension_numbers<[1], [0], [0], [1], [0, 0, 1, 1], [], []>} : vector<32x3xbf16>, vector<3x64xbf16>, vector<32x64xf32> -> vector<32x64xf32>
      %196 = arith.addf %193, %195 : vector<32x64xf32>
      %c0_110 = arith.constant 0 : index
      %c0_111 = arith.constant 0 : index
      %197 = vector.load %arg8[%c0_110, %c0_111] : memref<1x64xf32, #tpu.memory_space<vmem>>, vector<1x64xf32>
      %198 = vector.broadcast %197 : vector<1x64xf32> to vector<32x64xf32>
      %199 = arith.addf %196, %198 : vector<32x64xf32>
      %c0_112 = arith.constant 0 : index
      %c0_113 = arith.constant 0 : index
      %200 = vector.load %arg4[%c0_112, %c0_113] : memref<32x64xf32, #tpu.memory_space<vmem>>, vector<32x64xf32>
      %201 = arith.addf %199, %200 : vector<32x64xf32>
      %c0_114 = arith.constant 0 : index
      %c0_115 = arith.constant 0 : index
      %202 = vector.load %arg23[%c0_114, %c0_115] : memref<32x64xf32, #tpu.memory_space<vmem>>, vector<32x64xf32>
      tpu.vector_store %arg23[%c0_114, %c0_115], %201 {strides = array<i32>} : memref<32x64xf32, #tpu.memory_space<vmem>>, vector<32x64xf32>,
    } else {
    }
    %c0 = arith.constant 0 : index
    %c0_1 = arith.constant 0 : index
    %3 = vector.load %arg23[%c0, %c0_1] : memref<32x64xf32, #tpu.memory_space<vmem>>, vector<32x64xf32>
    %4 = arith.truncf %3 : vector<32x64xf32> to vector<32x64xbf16>
    %c0_2 = arith.constant 0 : index
    %c0_3 = arith.constant 0 : index
    %c0_4 = arith.constant 0 : index
    %5 = vector.load %arg10[%c0_2, %c0_3, %c0_4] : memref<1x64x192xbf16, #tpu.memory_space<vmem>>, vector<1x64x192xbf16>
    %6 = vector.shape_cast %5 : vector<1x64x192xbf16> to vector<64x192xbf16>
    %cst = arith.constant dense<0.000000e+00> : vector<32x192xf32>
    %7 = tpu.matmul %4, %6, %cst {dimension_numbers = #tpu.dot_dimension_numbers<[1], [0], [0], [1], [0, 0, 1, 1], [], []>} : vector<32x64xbf16>, vector<64x192xbf16>, vector<32x192xf32> -> vector<32x192xf32>
    %c0_5 = arith.constant 0 : index
    %c0_6 = arith.constant 0 : index
    %c0_7 = arith.constant 0 : index
    %8 = vector.load %arg11[%c0_5, %c0_6, %c0_7] : memref<1x1x192xf32, #tpu.memory_space<vmem>>, vector<1x1x192xf32>
    %9 = vector.shape_cast %8 : vector<1x1x192xf32> to vector<1x192xf32>
    %10 = vector.broadcast %9 : vector<1x192xf32> to vector<32x192xf32>
    %11 = arith.addf %7, %10 : vector<32x192xf32>
    %12 = arith.truncf %11 : vector<32x192xf32> to vector<32x192xbf16>
    %c0_8 = arith.constant 0 : index
    %c0_9 = arith.constant 0 : index
    %13 = vector.load %arg25[%c0_8, %c0_9] : memref<32x192xbf16, #tpu.memory_space<vmem>>, vector<32x192xbf16>
    tpu.vector_store %arg25[%c0_8, %c0_9], %12 {strides = array<i32>} : memref<32x192xbf16, #tpu.memory_space<vmem>>, vector<32x192xbf16>,
    %c0_10 = arith.constant 0 : index
    %c0_11 = arith.constant 0 : index
    %14 = vector.load %arg25[%c0_10, %c0_11] : memref<32x192xbf16, #tpu.memory_space<vmem>>, vector<32x16xbf16>
    %15 = vector.shape_cast %14 : vector<32x16xbf16> to vector<4x8x16xbf16>
    %c0_12 = arith.constant 0 : index
    %c64 = arith.constant 64 : index
    %16 = vector.load %arg25[%c0_12, %c64] : memref<32x192xbf16, #tpu.memory_space<vmem>>, vector<32x16xbf16>
    %17 = vector.shape_cast %16 : vector<32x16xbf16> to vector<4x8x16xbf16>
    %c0_13 = arith.constant 0 : index
    %c128 = arith.constant 128 : index
    %18 = vector.load %arg25[%c0_13, %c128] : memref<32x192xbf16, #tpu.memory_space<vmem>>, vector<32x16xbf16>
    %19 = vector.shape_cast %18 : vector<32x16xbf16> to vector<4x8x16xbf16>
    "tpu.trace_start"() <{level = 10 : i32, message = "bqd,bkd->bqk"}> : () -> ()
    %cst_14 = arith.constant dense<0.000000e+00> : vector<4x8x8xf32>
    %20 = tpu.matmul %15, %17, %cst_14 {dimension_numbers = #tpu.dot_dimension_numbers<[2], [2], [1], [1], [0, 0, 0, 1, 1, 1], [0], [0]>} : vector<4x8x16xbf16>, vector<4x8x16xbf16>, vector<4x8x8xf32> -> vector<4x8x8xf32>
    "tpu.trace_stop"() : () -> ()
    %cst_15 = arith.constant dense<0xFF800000> : vector<4x8xf32>
    %21 = vector.multi_reduction <maximumf>, %20, %cst_15 [2] : vector<4x8x8xf32> to vector<4x8xf32>
    %22 = vector.shape_cast %21 : vector<4x8xf32> to vector<4x8x1xf32>
    %23 = vector.broadcast %22 : vector<4x8x1xf32> to vector<4x8x8xf32>
    %24 = arith.subf %20, %23 : vector<4x8x8xf32>
    %25 = math.exp %24 : vector<4x8x8xf32>
    %cst_16 = arith.constant dense<0.000000e+00> : vector<4x8xf32>
    %26 = vector.multi_reduction <add>, %25, %cst_16 [2] : vector<4x8x8xf32> to vector<4x8xf32>
    %27 = vector.shape_cast %26 : vector<4x8xf32> to vector<4x8x1xf32>
    %28 = tpu.reciprocal %27 {approx = true} : vector<4x8x1xf32> -> vector<4x8x1xf32>
    %29 = vector.broadcast %28 : vector<4x8x1xf32> to vector<4x8x8xf32>
    %30 = arith.mulf %25, %29 : vector<4x8x8xf32>
    %31 = arith.truncf %30 : vector<4x8x8xf32> to vector<4x8x8xbf16>
    "tpu.trace_start"() <{level = 10 : i32, message = "bqk,bkd->bqd"}> : () -> ()
    %cst_17 = arith.constant dense<0.000000e+00> : vector<4x8x16xf32>
    %32 = tpu.matmul %31, %19, %cst_17 {dimension_numbers = #tpu.dot_dimension_numbers<[2], [1], [1], [2], [0, 0, 0, 1, 1, 2], [0], [0]>} : vector<4x8x8xbf16>, vector<4x8x16xbf16>, vector<4x8x16xf32> -> vector<4x8x16xf32>
    "tpu.trace_stop"() : () -> ()
    %33 = vector.shape_cast %32 : vector<4x8x16xf32> to vector<32x16xf32>
    %c0_18 = arith.constant 0 : index
    %c0_19 = arith.constant 0 : index
    %34 = vector.load %arg24[%c0_18, %c0_19] : memref<32x64xf32, #tpu.memory_space<vmem>>, vector<32x16xf32>
    tpu.vector_store %arg24[%c0_18, %c0_19], %33 {strides = array<i32>} : memref<32x64xf32, #tpu.memory_space<vmem>>, vector<32x16xf32>,
    %c0_20 = arith.constant 0 : index
    %c16 = arith.constant 16 : index
    %35 = vector.load %arg25[%c0_20, %c16] : memref<32x192xbf16, #tpu.memory_space<vmem>>, vector<32x16xbf16>
    %36 = vector.shape_cast %35 : vector<32x16xbf16> to vector<4x8x16xbf16>
    %c0_21 = arith.constant 0 : index
    %c80 = arith.constant 80 : index
    %37 = vector.load %arg25[%c0_21, %c80] : memref<32x192xbf16, #tpu.memory_space<vmem>>, vector<32x16xbf16>
    %38 = vector.shape_cast %37 : vector<32x16xbf16> to vector<4x8x16xbf16>
    %c0_22 = arith.constant 0 : index
    %c144 = arith.constant 144 : index
    %39 = vector.load %arg25[%c0_22, %c144] : memref<32x192xbf16, #tpu.memory_space<vmem>>, vector<32x16xbf16>
    %40 = vector.shape_cast %39 : vector<32x16xbf16> to vector<4x8x16xbf16>
    "tpu.trace_start"() <{level = 10 : i32, message = "bqd,bkd->bqk"}> : () -> ()
    %cst_23 = arith.constant dense<0.000000e+00> : vector<4x8x8xf32>
    %41 = tpu.matmul %36, %38, %cst_23 {dimension_numbers = #tpu.dot_dimension_numbers<[2], [2], [1], [1], [0, 0, 0, 1, 1, 1], [0], [0]>} : vector<4x8x16xbf16>, vector<4x8x16xbf16>, vector<4x8x8xf32> -> vector<4x8x8xf32>
    "tpu.trace_stop"() : () -> ()
    %cst_24 = arith.constant dense<0xFF800000> : vector<4x8xf32>
    %42 = vector.multi_reduction <maximumf>, %41, %cst_24 [2] : vector<4x8x8xf32> to vector<4x8xf32>
    %43 = vector.shape_cast %42 : vector<4x8xf32> to vector<4x8x1xf32>
    %44 = vector.broadcast %43 : vector<4x8x1xf32> to vector<4x8x8xf32>
    %45 = arith.subf %41, %44 : vector<4x8x8xf32>
    %46 = math.exp %45 : vector<4x8x8xf32>
    %cst_25 = arith.constant dense<0.000000e+00> : vector<4x8xf32>
    %47 = vector.multi_reduction <add>, %46, %cst_25 [2] : vector<4x8x8xf32> to vector<4x8xf32>
    %48 = vector.shape_cast %47 : vector<4x8xf32> to vector<4x8x1xf32>
    %49 = tpu.reciprocal %48 {approx = true} : vector<4x8x1xf32> -> vector<4x8x1xf32>
    %50 = vector.broadcast %49 : vector<4x8x1xf32> to vector<4x8x8xf32>
    %51 = arith.mulf %46, %50 : vector<4x8x8xf32>
    %52 = arith.truncf %51 : vector<4x8x8xf32> to vector<4x8x8xbf16>
    "tpu.trace_start"() <{level = 10 : i32, message = "bqk,bkd->bqd"}> : () -> ()
    %cst_26 = arith.constant dense<0.000000e+00> : vector<4x8x16xf32>
    %53 = tpu.matmul %52, %40, %cst_26 {dimension_numbers = #tpu.dot_dimension_numbers<[2], [1], [1], [2], [0, 0, 0, 1, 1, 2], [0], [0]>} : vector<4x8x8xbf16>, vector<4x8x16xbf16>, vector<4x8x16xf32> -> vector<4x8x16xf32>
    "tpu.trace_stop"() : () -> ()
    %54 = vector.shape_cast %53 : vector<4x8x16xf32> to vector<32x16xf32>
    %c0_27 = arith.constant 0 : index
    %c16_28 = arith.constant 16 : index
    %55 = vector.load %arg24[%c0_27, %c16_28] : memref<32x64xf32, #tpu.memory_space<vmem>>, vector<32x16xf32>
    tpu.vector_store %arg24[%c0_27, %c16_28], %54 {strides = array<i32>} : memref<32x64xf32, #tpu.memory_space<vmem>>, vector<32x16xf32>,
    %c0_29 = arith.constant 0 : index
    %c32 = arith.constant 32 : index
    %56 = vector.load %arg25[%c0_29, %c32] : memref<32x192xbf16, #tpu.memory_space<vmem>>, vector<32x16xbf16>
    %57 = vector.shape_cast %56 : vector<32x16xbf16> to vector<4x8x16xbf16>
    %c0_30 = arith.constant 0 : index
    %c96 = arith.constant 96 : index
    %58 = vector.load %arg25[%c0_30, %c96] : memref<32x192xbf16, #tpu.memory_space<vmem>>, vector<32x16xbf16>
    %59 = vector.shape_cast %58 : vector<32x16xbf16> to vector<4x8x16xbf16>
    %c0_31 = arith.constant 0 : index
    %c160 = arith.constant 160 : index
    %60 = vector.load %arg25[%c0_31, %c160] : memref<32x192xbf16, #tpu.memory_space<vmem>>, vector<32x16xbf16>
    %61 = vector.shape_cast %60 : vector<32x16xbf16> to vector<4x8x16xbf16>
    "tpu.trace_start"() <{level = 10 : i32, message = "bqd,bkd->bqk"}> : () -> ()
    %cst_32 = arith.constant dense<0.000000e+00> : vector<4x8x8xf32>
    %62 = tpu.matmul %57, %59, %cst_32 {dimension_numbers = #tpu.dot_dimension_numbers<[2], [2], [1], [1], [0, 0, 0, 1, 1, 1], [0], [0]>} : vector<4x8x16xbf16>, vector<4x8x16xbf16>, vector<4x8x8xf32> -> vector<4x8x8xf32>
    "tpu.trace_stop"() : () -> ()
    %cst_33 = arith.constant dense<0xFF800000> : vector<4x8xf32>
    %63 = vector.multi_reduction <maximumf>, %62, %cst_33 [2] : vector<4x8x8xf32> to vector<4x8xf32>
    %64 = vector.shape_cast %63 : vector<4x8xf32> to vector<4x8x1xf32>
    %65 = vector.broadcast %64 : vector<4x8x1xf32> to vector<4x8x8xf32>
    %66 = arith.subf %62, %65 : vector<4x8x8xf32>
    %67 = math.exp %66 : vector<4x8x8xf32>
    %cst_34 = arith.constant dense<0.000000e+00> : vector<4x8xf32>
    %68 = vector.multi_reduction <add>, %67, %cst_34 [2] : vector<4x8x8xf32> to vector<4x8xf32>
    %69 = vector.shape_cast %68 : vector<4x8xf32> to vector<4x8x1xf32>
    %70 = tpu.reciprocal %69 {approx = true} : vector<4x8x1xf32> -> vector<4x8x1xf32>
    %71 = vector.broadcast %70 : vector<4x8x1xf32> to vector<4x8x8xf32>
    %72 = arith.mulf %67, %71 : vector<4x8x8xf32>
    %73 = arith.truncf %72 : vector<4x8x8xf32> to vector<4x8x8xbf16>
    "tpu.trace_start"() <{level = 10 : i32, message = "bqk,bkd->bqd"}> : () -> ()
    %cst_35 = arith.constant dense<0.000000e+00> : vector<4x8x16xf32>
    %74 = tpu.matmul %73, %61, %cst_35 {dimension_numbers = #tpu.dot_dimension_numbers<[2], [1], [1], [2], [0, 0, 0, 1, 1, 2], [0], [0]>} : vector<4x8x8xbf16>, vector<4x8x16xbf16>, vector<4x8x16xf32> -> vector<4x8x16xf32>
    "tpu.trace_stop"() : () -> ()
    %75 = vector.shape_cast %74 : vector<4x8x16xf32> to vector<32x16xf32>
    %c0_36 = arith.constant 0 : index
    %c32_37 = arith.constant 32 : index
    %76 = vector.load %arg24[%c0_36, %c32_37] : memref<32x64xf32, #tpu.memory_space<vmem>>, vector<32x16xf32>
    tpu.vector_store %arg24[%c0_36, %c32_37], %75 {strides = array<i32>} : memref<32x64xf32, #tpu.memory_space<vmem>>, vector<32x16xf32>,
    %c0_38 = arith.constant 0 : index
    %c48 = arith.constant 48 : index
    %77 = vector.load %arg25[%c0_38, %c48] : memref<32x192xbf16, #tpu.memory_space<vmem>>, vector<32x16xbf16>
    %78 = vector.shape_cast %77 : vector<32x16xbf16> to vector<4x8x16xbf16>
    %c0_39 = arith.constant 0 : index
    %c112 = arith.constant 112 : index
    %79 = vector.load %arg25[%c0_39, %c112] : memref<32x192xbf16, #tpu.memory_space<vmem>>, vector<32x16xbf16>
    %80 = vector.shape_cast %79 : vector<32x16xbf16> to vector<4x8x16xbf16>
    %c0_40 = arith.constant 0 : index
    %c176 = arith.constant 176 : index
    %81 = vector.load %arg25[%c0_40, %c176] : memref<32x192xbf16, #tpu.memory_space<vmem>>, vector<32x16xbf16>
    %82 = vector.shape_cast %81 : vector<32x16xbf16> to vector<4x8x16xbf16>
    "tpu.trace_start"() <{level = 10 : i32, message = "bqd,bkd->bqk"}> : () -> ()
    %cst_41 = arith.constant dense<0.000000e+00> : vector<4x8x8xf32>
    %83 = tpu.matmul %78, %80, %cst_41 {dimension_numbers = #tpu.dot_dimension_numbers<[2], [2], [1], [1], [0, 0, 0, 1, 1, 1], [0], [0]>} : vector<4x8x16xbf16>, vector<4x8x16xbf16>, vector<4x8x8xf32> -> vector<4x8x8xf32>
    "tpu.trace_stop"() : () -> ()
    %cst_42 = arith.constant dense<0xFF800000> : vector<4x8xf32>
    %84 = vector.multi_reduction <maximumf>, %83, %cst_42 [2] : vector<4x8x8xf32> to vector<4x8xf32>
    %85 = vector.shape_cast %84 : vector<4x8xf32> to vector<4x8x1xf32>
    %86 = vector.broadcast %85 : vector<4x8x1xf32> to vector<4x8x8xf32>
    %87 = arith.subf %83, %86 : vector<4x8x8xf32>
    %88 = math.exp %87 : vector<4x8x8xf32>
    %cst_43 = arith.constant dense<0.000000e+00> : vector<4x8xf32>
    %89 = vector.multi_reduction <add>, %88, %cst_43 [2] : vector<4x8x8xf32> to vector<4x8xf32>
    %90 = vector.shape_cast %89 : vector<4x8xf32> to vector<4x8x1xf32>
    %91 = tpu.reciprocal %90 {approx = true} : vector<4x8x1xf32> -> vector<4x8x1xf32>
    %92 = vector.broadcast %91 : vector<4x8x1xf32> to vector<4x8x8xf32>
    %93 = arith.mulf %88, %92 : vector<4x8x8xf32>
    %94 = arith.truncf %93 : vector<4x8x8xf32> to vector<4x8x8xbf16>
    "tpu.trace_start"() <{level = 10 : i32, message = "bqk,bkd->bqd"}> : () -> ()
    %cst_44 = arith.constant dense<0.000000e+00> : vector<4x8x16xf32>
    %95 = tpu.matmul %94, %82, %cst_44 {dimension_numbers = #tpu.dot_dimension_numbers<[2], [1], [1], [2], [0, 0, 0, 1, 1, 2], [0], [0]>} : vector<4x8x8xbf16>, vector<4x8x16xbf16>, vector<4x8x16xf32> -> vector<4x8x16xf32>
    "tpu.trace_stop"() : () -> ()
    %96 = vector.shape_cast %95 : vector<4x8x16xf32> to vector<32x16xf32>
    %c0_45 = arith.constant 0 : index
    %c48_46 = arith.constant 48 : index
    %97 = vector.load %arg24[%c0_45, %c48_46] : memref<32x64xf32, #tpu.memory_space<vmem>>, vector<32x16xf32>
    tpu.vector_store %arg24[%c0_45, %c48_46], %96 {strides = array<i32>} : memref<32x64xf32, #tpu.memory_space<vmem>>, vector<32x16xf32>,
    %c0_47 = arith.constant 0 : index
    %c0_48 = arith.constant 0 : index
    %98 = vector.load %arg24[%c0_47, %c0_48] : memref<32x64xf32, #tpu.memory_space<vmem>>, vector<32x64xf32>
    %99 = arith.truncf %98 : vector<32x64xf32> to vector<32x64xbf16>
    %c0_49 = arith.constant 0 : index
    %c0_50 = arith.constant 0 : index
    %c0_51 = arith.constant 0 : index
    %100 = vector.load %arg12[%c0_49, %c0_50, %c0_51] : memref<1x64x64xbf16, #tpu.memory_space<vmem>>, vector<1x64x64xbf16>
    %101 = vector.shape_cast %100 : vector<1x64x64xbf16> to vector<64x64xbf16>
    %cst_52 = arith.constant dense<0.000000e+00> : vector<32x64xf32>
    %102 = tpu.matmul %99, %101, %cst_52 {dimension_numbers = #tpu.dot_dimension_numbers<[1], [0], [0], [1], [0, 0, 1, 1], [], []>} : vector<32x64xbf16>, vector<64x64xbf16>, vector<32x64xf32> -> vector<32x64xf32>
    %c0_53 = arith.constant 0 : index
    %c0_54 = arith.constant 0 : index
    %c0_55 = arith.constant 0 : index
    %103 = vector.load %arg13[%c0_53, %c0_54, %c0_55] : memref<1x1x64xf32, #tpu.memory_space<vmem>>, vector<1x1x64xf32>
    %104 = vector.shape_cast %103 : vector<1x1x64xf32> to vector<1x64xf32>
    %105 = vector.broadcast %104 : vector<1x64xf32> to vector<32x64xf32>
    %106 = arith.addf %102, %105 : vector<32x64xf32>
    %107 = arith.addf %3, %106 : vector<32x64xf32>
    %c0_56 = arith.constant 0 : index
    %c0_57 = arith.constant 0 : index
    %c0_58 = arith.constant 0 : index
    %108 = vector.load %arg18[%c0_56, %c0_57, %c0_58] : memref<1x1x64xf32, #tpu.memory_space<vmem>>, vector<1x1x64xf32>
    %109 = vector.shape_cast %108 : vector<1x1x64xf32> to vector<1x64xf32>
    %c0_59 = arith.constant 0 : index
    %c0_60 = arith.constant 0 : index
    %c0_61 = arith.constant 0 : index
    %110 = vector.load %arg19[%c0_59, %c0_60, %c0_61] : memref<1x1x64xf32, #tpu.memory_space<vmem>>, vector<1x1x64xf32>
    %111 = vector.shape_cast %110 : vector<1x1x64xf32> to vector<1x64xf32>
    %cst_62 = arith.constant dense<0.000000e+00> : vector<32xf32>
    %112 = vector.multi_reduction <add>, %107, %cst_62 [1] : vector<32x64xf32> to vector<32xf32>
    %113 = vector.shape_cast %112 : vector<32xf32> to vector<32x1xf32>
    %cst_63 = arith.constant 6.400000e+01 : f32
    %114 = vector.broadcast %cst_63 : f32 to vector<32x1xf32>
    %115 = arith.divf %113, %114 : vector<32x1xf32>
    %116 = vector.broadcast %115 : vector<32x1xf32> to vector<32x64xf32>
    %117 = arith.subf %107, %116 : vector<32x64xf32>
    %118 = arith.mulf %117, %117 : vector<32x64xf32>
    %cst_64 = arith.constant dense<0.000000e+00> : vector<32xf32>
    %119 = vector.multi_reduction <add>, %118, %cst_64 [1] : vector<32x64xf32> to vector<32xf32>
    %120 = vector.shape_cast %119 : vector<32xf32> to vector<32x1xf32>
    %cst_65 = arith.constant 6.400000e+01 : f32
    %121 = vector.broadcast %cst_65 : f32 to vector<32x1xf32>
    %122 = arith.divf %120, %121 : vector<32x1xf32>
    %123 = vector.broadcast %115 : vector<32x1xf32> to vector<32x64xf32>
    %124 = arith.subf %107, %123 : vector<32x64xf32>
    %cst_66 = arith.constant 9.99999974E-6 : f32
    %125 = vector.broadcast %cst_66 : f32 to vector<32x1xf32>
    %126 = arith.addf %122, %125 : vector<32x1xf32>
    %127 = math.rsqrt %126 : vector<32x1xf32>
    %128 = vector.broadcast %127 : vector<32x1xf32> to vector<32x64xf32>
    %129 = arith.mulf %124, %128 : vector<32x64xf32>
    %130 = vector.broadcast %109 : vector<1x64xf32> to vector<32x64xf32>
    %131 = arith.mulf %129, %130 : vector<32x64xf32>
    %132 = vector.broadcast %111 : vector<1x64xf32> to vector<32x64xf32>
    %133 = arith.addf %131, %132 : vector<32x64xf32>
    %134 = arith.truncf %133 : vector<32x64xf32> to vector<32x64xbf16>
    %c0_67 = arith.constant 0 : index
    %c0_68 = arith.constant 0 : index
    %c0_69 = arith.constant 0 : index
    %135 = vector.load %arg14[%c0_67, %c0_68, %c0_69] : memref<1x64x128xbf16, #tpu.memory_space<vmem>>, vector<1x64x128xbf16>
    %136 = vector.shape_cast %135 : vector<1x64x128xbf16> to vector<64x128xbf16>
    %cst_70 = arith.constant dense<0.000000e+00> : vector<32x128xf32>
    %137 = tpu.matmul %134, %136, %cst_70 {dimension_numbers = #tpu.dot_dimension_numbers<[1], [0], [0], [1], [0, 0, 1, 1], [], []>} : vector<32x64xbf16>, vector<64x128xbf16>, vector<32x128xf32> -> vector<32x128xf32>
    %c0_71 = arith.constant 0 : index
    %c0_72 = arith.constant 0 : index
    %c0_73 = arith.constant 0 : index
    %138 = vector.load %arg15[%c0_71, %c0_72, %c0_73] : memref<1x1x128xf32, #tpu.memory_space<vmem>>, vector<1x1x128xf32>
    %139 = vector.shape_cast %138 : vector<1x1x128xf32> to vector<1x128xf32>
    %140 = vector.broadcast %139 : vector<1x128xf32> to vector<32x128xf32>
    %141 = arith.addf %137, %140 : vector<32x128xf32>
    %cst_74 = arith.constant 0.000000e+00 : f32
    %142 = vector.broadcast %cst_74 : f32 to vector<32x128xf32>
    %143 = arith.maximumf %141, %142 : vector<32x128xf32>
    %144 = arith.truncf %143 : vector<32x128xf32> to vector<32x128xbf16>
    %c0_75 = arith.constant 0 : index
    %c0_76 = arith.constant 0 : index
    %c0_77 = arith.constant 0 : index
    %145 = vector.load %arg16[%c0_75, %c0_76, %c0_77] : memref<1x128x64xbf16, #tpu.memory_space<vmem>>, vector<1x128x64xbf16>
    %146 = vector.shape_cast %145 : vector<1x128x64xbf16> to vector<128x64xbf16>
    %cst_78 = arith.constant dense<0.000000e+00> : vector<32x64xf32>
    %147 = tpu.matmul %144, %146, %cst_78 {dimension_numbers = #tpu.dot_dimension_numbers<[1], [0], [0], [1], [0, 0, 1, 1], [], []>} : vector<32x128xbf16>, vector<128x64xbf16>, vector<32x64xf32> -> vector<32x64xf32>
    %c0_79 = arith.constant 0 : index
    %c0_80 = arith.constant 0 : index
    %c0_81 = arith.constant 0 : index
    %148 = vector.load %arg17[%c0_79, %c0_80, %c0_81] : memref<1x1x64xf32, #tpu.memory_space<vmem>>, vector<1x1x64xf32>
    %149 = vector.shape_cast %148 : vector<1x1x64xf32> to vector<1x64xf32>
    %150 = vector.broadcast %149 : vector<1x64xf32> to vector<32x64xf32>
    %151 = arith.addf %147, %150 : vector<32x64xf32>
    %152 = arith.addf %133, %151 : vector<32x64xf32>
    %c0_82 = arith.constant 0 : index
    %c0_83 = arith.constant 0 : index
    %c0_84 = arith.constant 0 : index
    %153 = vector.load %arg20[%c0_82, %c0_83, %c0_84] : memref<1x1x64xf32, #tpu.memory_space<vmem>>, vector<1x1x64xf32>
    %154 = vector.shape_cast %153 : vector<1x1x64xf32> to vector<1x64xf32>
    %c0_85 = arith.constant 0 : index
    %c0_86 = arith.constant 0 : index
    %c0_87 = arith.constant 0 : index
    %155 = vector.load %arg21[%c0_85, %c0_86, %c0_87] : memref<1x1x64xf32, #tpu.memory_space<vmem>>, vector<1x1x64xf32>
    %156 = vector.shape_cast %155 : vector<1x1x64xf32> to vector<1x64xf32>
    %cst_88 = arith.constant dense<0.000000e+00> : vector<32xf32>
    %157 = vector.multi_reduction <add>, %152, %cst_88 [1] : vector<32x64xf32> to vector<32xf32>
    %158 = vector.shape_cast %157 : vector<32xf32> to vector<32x1xf32>
    %cst_89 = arith.constant 6.400000e+01 : f32
    %159 = vector.broadcast %cst_89 : f32 to vector<32x1xf32>
    %160 = arith.divf %158, %159 : vector<32x1xf32>
    %161 = vector.broadcast %160 : vector<32x1xf32> to vector<32x64xf32>
    %162 = arith.subf %152, %161 : vector<32x64xf32>
    %163 = arith.mulf %162, %162 : vector<32x64xf32>
    %cst_90 = arith.constant dense<0.000000e+00> : vector<32xf32>
    %164 = vector.multi_reduction <add>, %163, %cst_90 [1] : vector<32x64xf32> to vector<32xf32>
    %165 = vector.shape_cast %164 : vector<32xf32> to vector<32x1xf32>
    %cst_91 = arith.constant 6.400000e+01 : f32
    %166 = vector.broadcast %cst_91 : f32 to vector<32x1xf32>
    %167 = arith.divf %165, %166 : vector<32x1xf32>
    %168 = vector.broadcast %160 : vector<32x1xf32> to vector<32x64xf32>
    %169 = arith.subf %152, %168 : vector<32x64xf32>
    %cst_92 = arith.constant 9.99999974E-6 : f32
    %170 = vector.broadcast %cst_92 : f32 to vector<32x1xf32>
    %171 = arith.addf %167, %170 : vector<32x1xf32>
    %172 = math.rsqrt %171 : vector<32x1xf32>
    %173 = vector.broadcast %172 : vector<32x1xf32> to vector<32x64xf32>
    %174 = arith.mulf %169, %173 : vector<32x64xf32>
    %175 = vector.broadcast %154 : vector<1x64xf32> to vector<32x64xf32>
    %176 = arith.mulf %174, %175 : vector<32x64xf32>
    %177 = vector.broadcast %156 : vector<1x64xf32> to vector<32x64xf32>
    %178 = arith.addf %176, %177 : vector<32x64xf32>
    %c0_93 = arith.constant 0 : index
    %c0_94 = arith.constant 0 : index
    %179 = vector.load %arg23[%c0_93, %c0_94] : memref<32x64xf32, #tpu.memory_space<vmem>>, vector<32x64xf32>
    tpu.vector_store %arg23[%c0_93, %c0_94], %178 {strides = array<i32>} : memref<32x64xf32, #tpu.memory_space<vmem>>, vector<32x64xf32>,
    %c1_i32 = arith.constant 1 : i32
    %180 = arith.cmpi eq, %arg1, %c1_i32 : i32
    %181 = arith.extui %180 : i1 to i32
    %c0_i32_95 = arith.constant 0 : i32
    %182 = arith.cmpi ne, %181, %c0_i32_95 : i32
    scf.if %182 {
      %c0_96 = arith.constant 0 : index
      %c0_97 = arith.constant 0 : index
      %183 = vector.load %arg23[%c0_96, %c0_97] : memref<32x64xf32, #tpu.memory_space<vmem>>, vector<32x64xf32>
      %184 = vector.shape_cast %183 : vector<32x64xf32> to vector<4x8x64xf32>
      %185 = arith.truncf %184 : vector<4x8x64xf32> to vector<4x8x64xbf16>
      %c0_98 = arith.constant 0 : index
      %c0_99 = arith.constant 0 : index
      %c0_100 = arith.constant 0 : index
      %186 = vector.load %arg22[%c0_98, %c0_99, %c0_100] : memref<4x8x64xbf16, #tpu.memory_space<vmem>>, vector<4x8x64xbf16>
      tpu.vector_store %arg22[%c0_98, %c0_99, %c0_100], %185 {strides = array<i32>} : memref<4x8x64xbf16, #tpu.memory_space<vmem>>, vector<4x8x64xbf16>,
    } else {
    }
    return
  }
  func.func @transform_0(%arg0: i32, %arg1: i32) -> (i32, i32, i32) {
    %c0_i32 = arith.constant 0 : i32
    %c0_i32_0 = arith.constant 0 : i32
    %c0_i32_1 = arith.constant 0 : i32
    return %arg0, %c0_i32, %c0_i32_0 : i32, i32, i32
  }
  func.func @transform_1(%arg0: i32, %arg1: i32) -> (i32, i32, i32) {
    %c0_i32 = arith.constant 0 : i32
    %c0_i32_0 = arith.constant 0 : i32
    %c0_i32_1 = arith.constant 0 : i32
    return %arg0, %c0_i32, %c0_i32_0 : i32, i32, i32
  }
  func.func @transform_2(%arg0: i32, %arg1: i32) -> (i32, i32) {
    %c0_i32 = arith.constant 0 : i32
    %c0_i32_0 = arith.constant 0 : i32
    %c0_i32_1 = arith.constant 0 : i32
    return %c0_i32, %c0_i32_0 : i32, i32
  }
  func.func @transform_3(%arg0: i32, %arg1: i32) -> (i32, i32) {
    %c0_i32 = arith.constant 0 : i32
    %c0_i32_0 = arith.constant 0 : i32
    %c0_i32_1 = arith.constant 0 : i32
    return %c0_i32, %c0_i32_0 : i32, i32
  }
  func.func @transform_4(%arg0: i32, %arg1: i32) -> (i32, i32) {
    %c0_i32 = arith.constant 0 : i32
    %c0_i32_0 = arith.constant 0 : i32
    %c0_i32_1 = arith.constant 0 : i32
    return %c0_i32, %c0_i32_0 : i32, i32
  }
  func.func @transform_5(%arg0: i32, %arg1: i32) -> (i32, i32) {
    %c0_i32 = arith.constant 0 : i32
    %c0_i32_0 = arith.constant 0 : i32
    %c0_i32_1 = arith.constant 0 : i32
    return %c0_i32, %c0_i32_0 : i32, i32
  }
  func.func @transform_6(%arg0: i32, %arg1: i32) -> (i32, i32) {
    %c0_i32 = arith.constant 0 : i32
    %c0_i32_0 = arith.constant 0 : i32
    %c0_i32_1 = arith.constant 0 : i32
    return %c0_i32, %c0_i32_0 : i32, i32
  }
  func.func @transform_7(%arg0: i32, %arg1: i32) -> (i32, i32) {
    %c0_i32 = arith.constant 0 : i32
    %c0_i32_0 = arith.constant 0 : i32
    %c0_i32_1 = arith.constant 0 : i32
    return %c0_i32, %c0_i32_0 : i32, i32
  }
  func.func @transform_8(%arg0: i32, %arg1: i32) -> (i32, i32, i32) {
    %c0_i32 = arith.constant 0 : i32
    %c0_i32_0 = arith.constant 0 : i32
    %c0_i32_1 = arith.constant 0 : i32
    return %arg1, %c0_i32, %c0_i32_0 : i32, i32, i32
  }
  func.func @transform_9(%arg0: i32, %arg1: i32) -> (i32, i32, i32) {
    %c0_i32 = arith.constant 0 : i32
    %c0_i32_0 = arith.constant 0 : i32
    %c0_i32_1 = arith.constant 0 : i32
    return %arg1, %c0_i32, %c0_i32_0 : i32, i32, i32
  }
  func.func @transform_10(%arg0: i32, %arg1: i32) -> (i32, i32, i32) {
    %c0_i32 = arith.constant 0 : i32
    %c0_i32_0 = arith.constant 0 : i32
    %c0_i32_1 = arith.constant 0 : i32
    return %arg1, %c0_i32, %c0_i32_0 : i32, i32, i32
  }
  func.func @transform_11(%arg0: i32, %arg1: i32) -> (i32, i32, i32) {
    %c0_i32 = arith.constant 0 : i32
    %c0_i32_0 = arith.constant 0 : i32
    %c0_i32_1 = arith.constant 0 : i32
    return %arg1, %c0_i32, %c0_i32_0 : i32, i32, i32
  }
  func.func @transform_12(%arg0: i32, %arg1: i32) -> (i32, i32, i32) {
    %c0_i32 = arith.constant 0 : i32
    %c0_i32_0 = arith.constant 0 : i32
    %c0_i32_1 = arith.constant 0 : i32
    return %arg1, %c0_i32, %c0_i32_0 : i32, i32, i32
  }
  func.func @transform_13(%arg0: i32, %arg1: i32) -> (i32, i32, i32) {
    %c0_i32 = arith.constant 0 : i32
    %c0_i32_0 = arith.constant 0 : i32
    %c0_i32_1 = arith.constant 0 : i32
    return %arg1, %c0_i32, %c0_i32_0 : i32, i32, i32
  }
  func.func @transform_14(%arg0: i32, %arg1: i32) -> (i32, i32, i32) {
    %c0_i32 = arith.constant 0 : i32
    %c0_i32_0 = arith.constant 0 : i32
    %c0_i32_1 = arith.constant 0 : i32
    return %arg1, %c0_i32, %c0_i32_0 : i32, i32, i32
  }
  func.func @transform_15(%arg0: i32, %arg1: i32) -> (i32, i32, i32) {
    %c0_i32 = arith.constant 0 : i32
    %c0_i32_0 = arith.constant 0 : i32
    %c0_i32_1 = arith.constant 0 : i32
    return %arg1, %c0_i32, %c0_i32_0 : i32, i32, i32
  }
  func.func @transform_16(%arg0: i32, %arg1: i32) -> (i32, i32, i32) {
    %c0_i32 = arith.constant 0 : i32
    %c0_i32_0 = arith.constant 0 : i32
    %c0_i32_1 = arith.constant 0 : i32
    return %arg1, %c0_i32, %c0_i32_0 : i32, i32, i32
  }
  func.func @transform_17(%arg0: i32, %arg1: i32) -> (i32, i32, i32) {
    %c0_i32 = arith.constant 0 : i32
    %c0_i32_0 = arith.constant 0 : i32
    %c0_i32_1 = arith.constant 0 : i32
    return %arg1, %c0_i32, %c0_i32_0 : i32, i32, i32
  }
  func.func @transform_18(%arg0: i32, %arg1: i32) -> (i32, i32, i32) {
    %c0_i32 = arith.constant 0 : i32
    %c0_i32_0 = arith.constant 0 : i32
    %c0_i32_1 = arith.constant 0 : i32
    return %arg1, %c0_i32, %c0_i32_0 : i32, i32, i32
  }
  func.func @transform_19(%arg0: i32, %arg1: i32) -> (i32, i32, i32) {
    %c0_i32 = arith.constant 0 : i32
    %c0_i32_0 = arith.constant 0 : i32
    %c0_i32_1 = arith.constant 0 : i32
    return %arg1, %c0_i32, %c0_i32_0 : i32, i32, i32
  }
  func.func @transform_20(%arg0: i32, %arg1: i32) -> (i32, i32, i32) {
    %c0_i32 = arith.constant 0 : i32
    %c0_i32_0 = arith.constant 0 : i32
    %c0_i32_1 = arith.constant 0 : i32
    return %arg0, %c0_i32, %c0_i32_0 : i32, i32, i32
  }
}

module attributes {stable_mosaic.version = 11 : i64} {
  func.func @_encoder_stack_kernel(%arg0: i32, %arg1: i32, %arg2: memref<4x8x4xf32, #tpu.memory_space<vmem>>, %arg3: memref<4x8x3xf32, #tpu.memory_space<vmem>>, %arg4: memref<32x64xf32, #tpu.memory_space<vmem>>, %arg5: memref<4x64xbf16, #tpu.memory_space<vmem>>, %arg6: memref<1x64xf32, #tpu.memory_space<vmem>>, %arg7: memref<3x64xbf16, #tpu.memory_space<vmem>>, %arg8: memref<1x64xf32, #tpu.memory_space<vmem>>, %arg9: memref<8x128xf32, #tpu.memory_space<vmem>>, %arg10: memref<1x64x192xbf16, #tpu.memory_space<vmem>>, %arg11: memref<1x1x192xf32, #tpu.memory_space<vmem>>, %arg12: memref<1x64x64xbf16, #tpu.memory_space<vmem>>, %arg13: memref<1x1x64xf32, #tpu.memory_space<vmem>>, %arg14: memref<1x64x128xbf16, #tpu.memory_space<vmem>>, %arg15: memref<1x1x128xf32, #tpu.memory_space<vmem>>, %arg16: memref<1x128x64xbf16, #tpu.memory_space<vmem>>, %arg17: memref<1x1x64xf32, #tpu.memory_space<vmem>>, %arg18: memref<1x1x64xf32, #tpu.memory_space<vmem>>, %arg19: memref<1x1x64xf32, #tpu.memory_space<vmem>>, %arg20: memref<1x1x64xf32, #tpu.memory_space<vmem>>, %arg21: memref<1x1x64xf32, #tpu.memory_space<vmem>>, %arg22: memref<4x8x64xbf16, #tpu.memory_space<vmem>>, %arg23: memref<32x64xf32, #tpu.memory_space<vmem>>, %arg24: memref<32x64xf32, #tpu.memory_space<vmem>>, %arg25: memref<32x192xbf16, #tpu.memory_space<vmem>>) attributes {dimension_semantics = [#tpu.dimension_semantics<parallel>, #tpu.dimension_semantics<arbitrary>], iteration_bounds = array<i64: 1, 2>, scalar_prefetch = 0 : i64, scratch_operands = 3 : i64, tpu.core_type = #tpu.core_type<tc>, window_params = [{transform_indices = @transform_0, window_bounds = array<i64: 4, 8, 4>}, {transform_indices = @transform_1, window_bounds = array<i64: 4, 8, 3>}, {pipeline_mode = #tpu.pipeline_mode<synchronous>, transform_indices = @transform_2, window_bounds = array<i64: 32, 64>}, {pipeline_mode = #tpu.pipeline_mode<synchronous>, transform_indices = @transform_3, window_bounds = array<i64: 4, 64>}, {pipeline_mode = #tpu.pipeline_mode<synchronous>, transform_indices = @transform_4, window_bounds = array<i64: 1, 64>}, {pipeline_mode = #tpu.pipeline_mode<synchronous>, transform_indices = @transform_5, window_bounds = array<i64: 3, 64>}, {pipeline_mode = #tpu.pipeline_mode<synchronous>, transform_indices = @transform_6, window_bounds = array<i64: 1, 64>}, {pipeline_mode = #tpu.pipeline_mode<synchronous>, transform_indices = @transform_7, window_bounds = array<i64: 8, 128>}, {transform_indices = @transform_8, window_bounds = array<i64: 1, 64, 192>}, {transform_indices = @transform_9, window_bounds = array<i64: 1, 1, 192>}, {transform_indices = @transform_10, window_bounds = array<i64: 1, 64, 64>}, {transform_indices = @transform_11, window_bounds = array<i64: 1, 1, 64>}, {transform_indices = @transform_12, window_bounds = array<i64: 1, 64, 128>}, {transform_indices = @transform_13, window_bounds = array<i64: 1, 1, 128>}, {transform_indices = @transform_14, window_bounds = array<i64: 1, 128, 64>}, {transform_indices = @transform_15, window_bounds = array<i64: 1, 1, 64>}, {transform_indices = @transform_16, window_bounds = array<i64: 1, 1, 64>}, {transform_indices = @transform_17, window_bounds = array<i64: 1, 1, 64>}, {transform_indices = @transform_18, window_bounds = array<i64: 1, 1, 64>}, {transform_indices = @transform_19, window_bounds = array<i64: 1, 1, 64>}, {transform_indices = @transform_20, window_bounds = array<i64: 4, 8, 64>}]} {
    %c0_i32 = arith.constant 0 : i32
    %0 = arith.cmpi eq, %arg1, %c0_i32 : i32
    %1 = arith.extui %0 : i1 to i32
    %c0_i32_0 = arith.constant 0 : i32
    %2 = arith.cmpi ne, %1, %c0_i32_0 : i32
    scf.if %2 {
      %c0_96 = arith.constant 0 : index
      %c0_97 = arith.constant 0 : index
      %c0_98 = arith.constant 0 : index
      %183 = vector.load %arg2[%c0_96, %c0_97, %c0_98] : memref<4x8x4xf32, #tpu.memory_space<vmem>>, vector<4x8x4xf32>
      %184 = vector.shape_cast %183 : vector<4x8x4xf32> to vector<32x4xf32>
      %185 = arith.truncf %184 : vector<32x4xf32> to vector<32x4xbf16>
      %c0_99 = arith.constant 0 : index
      %c0_100 = arith.constant 0 : index
      %c0_101 = arith.constant 0 : index
      %186 = vector.load %arg3[%c0_99, %c0_100, %c0_101] : memref<4x8x3xf32, #tpu.memory_space<vmem>>, vector<4x8x3xf32>
      %187 = vector.shape_cast %186 : vector<4x8x3xf32> to vector<32x3xf32>
      %188 = arith.truncf %187 : vector<32x3xf32> to vector<32x3xbf16>
      %c0_102 = arith.constant 0 : index
      %c0_103 = arith.constant 0 : index
      %189 = vector.load %arg5[%c0_102, %c0_103] : memref<4x64xbf16, #tpu.memory_space<vmem>>, vector<4x64xbf16>
      %cst_104 = arith.constant dense<0.000000e+00> : vector<32x64xf32>
      %190 = tpu.matmul %185, %189, %cst_104 {dimension_numbers = #tpu.dot_dimension_numbers<[1], [0], [0], [1], [0, 0, 1, 1], [], []>} : vector<32x4xbf16>, vector<4x64xbf16>, vector<32x64xf32> -> vector<32x64xf32>
      %c0_105 = arith.constant 0 : index
      %c0_106 = arith.constant 0 : index
      %191 = vector.load %arg6[%c0_105, %c0_106] : memref<1x64xf32, #tpu.memory_space<vmem>>, vector<1x64xf32>
      %192 = vector.broadcast %191 : vector<1x64xf32> to vector<32x64xf32>
      %193 = arith.addf %190, %192 : vector<32x64xf32>
      %c0_107 = arith.constant 0 : index
      %c0_108 = arith.constant 0 : index
      %194 = vector.load %arg7[%c0_107, %c0_108] : memref<3x64xbf16, #tpu.memory_space<vmem>>, vector<3x64xbf16>
      %cst_109 = arith.constant dense<0.000000e+00> : vector<32x64xf32>
      %195 = tpu.matmul %188, %194, %cst_109 {dimension_numbers = #tpu.dot_dimension_numbers<[1], [0], [0], [1], [0, 0, 1, 1], [], []>} : vector<32x3xbf16>, vector<3x64xbf16>, vector<32x64xf32> -> vector<32x64xf32>
      %196 = arith.addf %193, %195 : vector<32x64xf32>
      %c0_110 = arith.constant 0 : index
      %c0_111 = arith.constant 0 : index
      %197 = vector.load %arg8[%c0_110, %c0_111] : memref<1x64xf32, #tpu.memory_space<vmem>>, vector<1x64xf32>
      %198 = vector.broadcast %197 : vector<1x64xf32> to vector<32x64xf32>
      %199 = arith.addf %196, %198 : vector<32x64xf32>
      %c0_112 = arith.constant 0 : index
      %c0_113 = arith.constant 0 : index
      %200 = vector.load %arg4[%c0_112, %c0_113] : memref<32x64xf32, #tpu.memory_space<vmem>>, vector<32x64xf32>
      %201 = arith.addf %199, %200 : vector<32x64xf32>
      %c0_114 = arith.constant 0 : index
      %c0_115 = arith.constant 0 : index
      %202 = vector.load %arg23[%c0_114, %c0_115] : memref<32x64xf32, #tpu.memory_space<vmem>>, vector<32x64xf32>
      tpu.vector_store %arg23[%c0_114, %c0_115], %201 {strides = array<i32>} : memref<32x64xf32, #tpu.memory_space<vmem>>, vector<32x64xf32>,
    } else {
    }
    %c0 = arith.constant 0 : index
    %c0_1 = arith.constant 0 : index
    %3 = vector.load %arg23[%c0, %c0_1] : memref<32x64xf32, #tpu.memory_space<vmem>>, vector<32x64xf32>
    %4 = arith.truncf %3 : vector<32x64xf32> to vector<32x64xbf16>
    %c0_2 = arith.constant 0 : index
    %c0_3 = arith.constant 0 : index
    %c0_4 = arith.constant 0 : index
    %5 = vector.load %arg10[%c0_2, %c0_3, %c0_4] : memref<1x64x192xbf16, #tpu.memory_space<vmem>>, vector<1x64x192xbf16>
    %6 = vector.shape_cast %5 : vector<1x64x192xbf16> to vector<64x192xbf16>
    %cst = arith.constant dense<0.000000e+00> : vector<32x192xf32>
    %7 = tpu.matmul %4, %6, %cst {dimension_numbers = #tpu.dot_dimension_numbers<[1], [0], [0], [1], [0, 0, 1, 1], [], []>} : vector<32x64xbf16>, vector<64x192xbf16>, vector<32x192xf32> -> vector<32x192xf32>
    %c0_5 = arith.constant 0 : index
    %c0_6 = arith.constant 0 : index
    %c0_7 = arith.constant 0 : index
    %8 = vector.load %arg11[%c0_5, %c0_6, %c0_7] : memref<1x1x192xf32, #tpu.memory_space<vmem>>, vector<1x1x192xf32>
    %9 = vector.shape_cast %8 : vector<1x1x192xf32> to vector<1x192xf32>
    %10 = vector.broadcast %9 : vector<1x192xf32> to vector<32x192xf32>
    %11 = arith.addf %7, %10 : vector<32x192xf32>
    %12 = arith.truncf %11 : vector<32x192xf32> to vector<32x192xbf16>
    %c0_8 = arith.constant 0 : index
    %c0_9 = arith.constant 0 : index
    %13 = vector.load %arg25[%c0_8, %c0_9] : memref<32x192xbf16, #tpu.memory_space<vmem>>, vector<32x192xbf16>
    tpu.vector_store %arg25[%c0_8, %c0_9], %12 {strides = array<i32>} : memref<32x192xbf16, #tpu.memory_space<vmem>>, vector<32x192xbf16>,
    %c0_10 = arith.constant 0 : index
    %c0_11 = arith.constant 0 : index
    %14 = vector.load %arg25[%c0_10, %c0_11] : memref<32x192xbf16, #tpu.memory_space<vmem>>, vector<32x16xbf16>
    %15 = vector.shape_cast %14 : vector<32x16xbf16> to vector<4x8x16xbf16>
    %c0_12 = arith.constant 0 : index
    %c64 = arith.constant 64 : index
    %16 = vector.load %arg25[%c0_12, %c64] : memref<32x192xbf16, #tpu.memory_space<vmem>>, vector<32x16xbf16>
    %17 = vector.shape_cast %16 : vector<32x16xbf16> to vector<4x8x16xbf16>
    %c0_13 = arith.constant 0 : index
    %c128 = arith.constant 128 : index
    %18 = vector.load %arg25[%c0_13, %c128] : memref<32x192xbf16, #tpu.memory_space<vmem>>, vector<32x16xbf16>
    %19 = vector.shape_cast %18 : vector<32x16xbf16> to vector<4x8x16xbf16>
    "tpu.trace_start"() <{level = 10 : i32, message = "bqd,bkd->bqk"}> : () -> ()
    %cst_14 = arith.constant dense<0.000000e+00> : vector<4x8x8xf32>
    %20 = tpu.matmul %15, %17, %cst_14 {dimension_numbers = #tpu.dot_dimension_numbers<[2], [2], [1], [1], [0, 0, 0, 1, 1, 1], [0], [0]>} : vector<4x8x16xbf16>, vector<4x8x16xbf16>, vector<4x8x8xf32> -> vector<4x8x8xf32>
    "tpu.trace_stop"() : () -> ()
    %cst_15 = arith.constant dense<0xFF800000> : vector<4x8xf32>
    %21 = vector.multi_reduction <maximumf>, %20, %cst_15 [2] : vector<4x8x8xf32> to vector<4x8xf32>
    %22 = vector.shape_cast %21 : vector<4x8xf32> to vector<4x8x1xf32>
    %23 = vector.broadcast %22 : vector<4x8x1xf32> to vector<4x8x8xf32>
    %24 = arith.subf %20, %23 : vector<4x8x8xf32>
    %25 = math.exp %24 : vector<4x8x8xf32>
    %cst_16 = arith.constant dense<0.000000e+00> : vector<4x8xf32>
    %26 = vector.multi_reduction <add>, %25, %cst_16 [2] : vector<4x8x8xf32> to vector<4x8xf32>
    %27 = vector.shape_cast %26 : vector<4x8xf32> to vector<4x8x1xf32>
    %28 = tpu.reciprocal %27 {approx = true} : vector<4x8x1xf32> -> vector<4x8x1xf32>
    %29 = vector.broadcast %28 : vector<4x8x1xf32> to vector<4x8x8xf32>
    %30 = arith.mulf %25, %29 : vector<4x8x8xf32>
    %31 = arith.truncf %30 : vector<4x8x8xf32> to vector<4x8x8xbf16>
    "tpu.trace_start"() <{level = 10 : i32, message = "bqk,bkd->bqd"}> : () -> ()
    %cst_17 = arith.constant dense<0.000000e+00> : vector<4x8x16xf32>
    %32 = tpu.matmul %31, %19, %cst_17 {dimension_numbers = #tpu.dot_dimension_numbers<[2], [1], [1], [2], [0, 0, 0, 1, 1, 2], [0], [0]>} : vector<4x8x8xbf16>, vector<4x8x16xbf16>, vector<4x8x16xf32> -> vector<4x8x16xf32>
    "tpu.trace_stop"() : () -> ()
    %33 = vector.shape_cast %32 : vector<4x8x16xf32> to vector<32x16xf32>
    %c0_18 = arith.constant 0 : index
    %c0_19 = arith.constant 0 : index
    %34 = vector.load %arg24[%c0_18, %c0_19] : memref<32x64xf32, #tpu.memory_space<vmem>>, vector<32x16xf32>
    tpu.vector_store %arg24[%c0_18, %c0_19], %33 {strides = array<i32>} : memref<32x64xf32, #tpu.memory_space<vmem>>, vector<32x16xf32>,
    %c0_20 = arith.constant 0 : index
    %c16 = arith.constant 16 : index
    %35 = vector.load %arg25[%c0_20, %c16] : memref<32x192xbf16, #tpu.memory_space<vmem>>, vector<32x16xbf16>
    %36 = vector.shape_cast %35 : vector<32x16xbf16> to vector<4x8x16xbf16>
    %c0_21 = arith.constant 0 : index
    %c80 = arith.constant 80 : index
    %37 = vector.load %arg25[%c0_21, %c80] : memref<32x192xbf16, #tpu.memory_space<vmem>>, vector<32x16xbf16>
    %38 = vector.shape_cast %37 : vector<32x16xbf16> to vector<4x8x16xbf16>
    %c0_22 = arith.constant 0 : index
    %c144 = arith.constant 144 : index
    %39 = vector.load %arg25[%c0_22, %c144] : memref<32x192xbf16, #tpu.memory_space<vmem>>, vector<32x16xbf16>
    %40 = vector.shape_cast %39 : vector<32x16xbf16> to vector<4x8x16xbf16>
    "tpu.trace_start"() <{level = 10 : i32, message = "bqd,bkd->bqk"}> : () -> ()
    %cst_23 = arith.constant dense<0.000000e+00> : vector<4x8x8xf32>
    %41 = tpu.matmul %36, %38, %cst_23 {dimension_numbers = #tpu.dot_dimension_numbers<[2], [2], [1], [1], [0, 0, 0, 1, 1, 1], [0], [0]>} : vector<4x8x16xbf16>, vector<4x8x16xbf16>, vector<4x8x8xf32> -> vector<4x8x8xf32>
    "tpu.trace_stop"() : () -> ()
    %cst_24 = arith.constant dense<0xFF800000> : vector<4x8xf32>
    %42 = vector.multi_reduction <maximumf>, %41, %cst_24 [2] : vector<4x8x8xf32> to vector<4x8xf32>
    %43 = vector.shape_cast %42 : vector<4x8xf32> to vector<4x8x1xf32>
    %44 = vector.broadcast %43 : vector<4x8x1xf32> to vector<4x8x8xf32>
    %45 = arith.subf %41, %44 : vector<4x8x8xf32>
    %46 = math.exp %45 : vector<4x8x8xf32>
    %cst_25 = arith.constant dense<0.000000e+00> : vector<4x8xf32>
    %47 = vector.multi_reduction <add>, %46, %cst_25 [2] : vector<4x8x8xf32> to vector<4x8xf32>
    %48 = vector.shape_cast %47 : vector<4x8xf32> to vector<4x8x1xf32>
    %49 = tpu.reciprocal %48 {approx = true} : vector<4x8x1xf32> -> vector<4x8x1xf32>
    %50 = vector.broadcast %49 : vector<4x8x1xf32> to vector<4x8x8xf32>
    %51 = arith.mulf %46, %50 : vector<4x8x8xf32>
    %52 = arith.truncf %51 : vector<4x8x8xf32> to vector<4x8x8xbf16>
    "tpu.trace_start"() <{level = 10 : i32, message = "bqk,bkd->bqd"}> : () -> ()
    %cst_26 = arith.constant dense<0.000000e+00> : vector<4x8x16xf32>
    %53 = tpu.matmul %52, %40, %cst_26 {dimension_numbers = #tpu.dot_dimension_numbers<[2], [1], [1], [2], [0, 0, 0, 1, 1, 2], [0], [0]>} : vector<4x8x8xbf16>, vector<4x8x16xbf16>, vector<4x8x16xf32> -> vector<4x8x16xf32>
    "tpu.trace_stop"() : () -> ()
    %54 = vector.shape_cast %53 : vector<4x8x16xf32> to vector<32x16xf32>
    %c0_27 = arith.constant 0 : index
    %c16_28 = arith.constant 16 : index
    %55 = vector.load %arg24[%c0_27, %c16_28] : memref<32x64xf32, #tpu.memory_space<vmem>>, vector<32x16xf32>
    tpu.vector_store %arg24[%c0_27, %c16_28], %54 {strides = array<i32>} : memref<32x64xf32, #tpu.memory_space<vmem>>, vector<32x16xf32>,
    %c0_29 = arith.constant 0 : index
    %c32 = arith.constant 32 : index
    %56 = vector.load %arg25[%c0_29, %c32] : memref<32x192xbf16, #tpu.memory_space<vmem>>, vector<32x16xbf16>
    %57 = vector.shape_cast %56 : vector<32x16xbf16> to vector<4x8x16xbf16>
    %c0_30 = arith.constant 0 : index
    %c96 = arith.constant 96 : index
    %58 = vector.load %arg25[%c0_30, %c96] : memref<32x192xbf16, #tpu.memory_space<vmem>>, vector<32x16xbf16>
    %59 = vector.shape_cast %58 : vector<32x16xbf16> to vector<4x8x16xbf16>
    %c0_31 = arith.constant 0 : index
    %c160 = arith.constant 160 : index
    %60 = vector.load %arg25[%c0_31, %c160] : memref<32x192xbf16, #tpu.memory_space<vmem>>, vector<32x16xbf16>
    %61 = vector.shape_cast %60 : vector<32x16xbf16> to vector<4x8x16xbf16>
    "tpu.trace_start"() <{level = 10 : i32, message = "bqd,bkd->bqk"}> : () -> ()
    %cst_32 = arith.constant dense<0.000000e+00> : vector<4x8x8xf32>
    %62 = tpu.matmul %57, %59, %cst_32 {dimension_numbers = #tpu.dot_dimension_numbers<[2], [2], [1], [1], [0, 0, 0, 1, 1, 1], [0], [0]>} : vector<4x8x16xbf16>, vector<4x8x16xbf16>, vector<4x8x8xf32> -> vector<4x8x8xf32>
    "tpu.trace_stop"() : () -> ()
    %cst_33 = arith.constant dense<0xFF800000> : vector<4x8xf32>
    %63 = vector.multi_reduction <maximumf>, %62, %cst_33 [2] : vector<4x8x8xf32> to vector<4x8xf32>
    %64 = vector.shape_cast %63 : vector<4x8xf32> to vector<4x8x1xf32>
    %65 = vector.broadcast %64 : vector<4x8x1xf32> to vector<4x8x8xf32>
    %66 = arith.subf %62, %65 : vector<4x8x8xf32>
    %67 = math.exp %66 : vector<4x8x8xf32>
    %cst_34 = arith.constant dense<0.000000e+00> : vector<4x8xf32>
    %68 = vector.multi_reduction <add>, %67, %cst_34 [2] : vector<4x8x8xf32> to vector<4x8xf32>
    %69 = vector.shape_cast %68 : vector<4x8xf32> to vector<4x8x1xf32>
    %70 = tpu.reciprocal %69 {approx = true} : vector<4x8x1xf32> -> vector<4x8x1xf32>
    %71 = vector.broadcast %70 : vector<4x8x1xf32> to vector<4x8x8xf32>
    %72 = arith.mulf %67, %71 : vector<4x8x8xf32>
    %73 = arith.truncf %72 : vector<4x8x8xf32> to vector<4x8x8xbf16>
    "tpu.trace_start"() <{level = 10 : i32, message = "bqk,bkd->bqd"}> : () -> ()
    %cst_35 = arith.constant dense<0.000000e+00> : vector<4x8x16xf32>
    %74 = tpu.matmul %73, %61, %cst_35 {dimension_numbers = #tpu.dot_dimension_numbers<[2], [1], [1], [2], [0, 0, 0, 1, 1, 2], [0], [0]>} : vector<4x8x8xbf16>, vector<4x8x16xbf16>, vector<4x8x16xf32> -> vector<4x8x16xf32>
    "tpu.trace_stop"() : () -> ()
    %75 = vector.shape_cast %74 : vector<4x8x16xf32> to vector<32x16xf32>
    %c0_36 = arith.constant 0 : index
    %c32_37 = arith.constant 32 : index
    %76 = vector.load %arg24[%c0_36, %c32_37] : memref<32x64xf32, #tpu.memory_space<vmem>>, vector<32x16xf32>
    tpu.vector_store %arg24[%c0_36, %c32_37], %75 {strides = array<i32>} : memref<32x64xf32, #tpu.memory_space<vmem>>, vector<32x16xf32>,
    %c0_38 = arith.constant 0 : index
    %c48 = arith.constant 48 : index
    %77 = vector.load %arg25[%c0_38, %c48] : memref<32x192xbf16, #tpu.memory_space<vmem>>, vector<32x16xbf16>
    %78 = vector.shape_cast %77 : vector<32x16xbf16> to vector<4x8x16xbf16>
    %c0_39 = arith.constant 0 : index
    %c112 = arith.constant 112 : index
    %79 = vector.load %arg25[%c0_39, %c112] : memref<32x192xbf16, #tpu.memory_space<vmem>>, vector<32x16xbf16>
    %80 = vector.shape_cast %79 : vector<32x16xbf16> to vector<4x8x16xbf16>
    %c0_40 = arith.constant 0 : index
    %c176 = arith.constant 176 : index
    %81 = vector.load %arg25[%c0_40, %c176] : memref<32x192xbf16, #tpu.memory_space<vmem>>, vector<32x16xbf16>
    %82 = vector.shape_cast %81 : vector<32x16xbf16> to vector<4x8x16xbf16>
    "tpu.trace_start"() <{level = 10 : i32, message = "bqd,bkd->bqk"}> : () -> ()
    %cst_41 = arith.constant dense<0.000000e+00> : vector<4x8x8xf32>
    %83 = tpu.matmul %78, %80, %cst_41 {dimension_numbers = #tpu.dot_dimension_numbers<[2], [2], [1], [1], [0, 0, 0, 1, 1, 1], [0], [0]>} : vector<4x8x16xbf16>, vector<4x8x16xbf16>, vector<4x8x8xf32> -> vector<4x8x8xf32>
    "tpu.trace_stop"() : () -> ()
    %cst_42 = arith.constant dense<0xFF800000> : vector<4x8xf32>
    %84 = vector.multi_reduction <maximumf>, %83, %cst_42 [2] : vector<4x8x8xf32> to vector<4x8xf32>
    %85 = vector.shape_cast %84 : vector<4x8xf32> to vector<4x8x1xf32>
    %86 = vector.broadcast %85 : vector<4x8x1xf32> to vector<4x8x8xf32>
    %87 = arith.subf %83, %86 : vector<4x8x8xf32>
    %88 = math.exp %87 : vector<4x8x8xf32>
    %cst_43 = arith.constant dense<0.000000e+00> : vector<4x8xf32>
    %89 = vector.multi_reduction <add>, %88, %cst_43 [2] : vector<4x8x8xf32> to vector<4x8xf32>
    %90 = vector.shape_cast %89 : vector<4x8xf32> to vector<4x8x1xf32>
    %91 = tpu.reciprocal %90 {approx = true} : vector<4x8x1xf32> -> vector<4x8x1xf32>
    %92 = vector.broadcast %91 : vector<4x8x1xf32> to vector<4x8x8xf32>
    %93 = arith.mulf %88, %92 : vector<4x8x8xf32>
    %94 = arith.truncf %93 : vector<4x8x8xf32> to vector<4x8x8xbf16>
    "tpu.trace_start"() <{level = 10 : i32, message = "bqk,bkd->bqd"}> : () -> ()
    %cst_44 = arith.constant dense<0.000000e+00> : vector<4x8x16xf32>
    %95 = tpu.matmul %94, %82, %cst_44 {dimension_numbers = #tpu.dot_dimension_numbers<[2], [1], [1], [2], [0, 0, 0, 1, 1, 2], [0], [0]>} : vector<4x8x8xbf16>, vector<4x8x16xbf16>, vector<4x8x16xf32> -> vector<4x8x16xf32>
    "tpu.trace_stop"() : () -> ()
    %96 = vector.shape_cast %95 : vector<4x8x16xf32> to vector<32x16xf32>
    %c0_45 = arith.constant 0 : index
    %c48_46 = arith.constant 48 : index
    %97 = vector.load %arg24[%c0_45, %c48_46] : memref<32x64xf32, #tpu.memory_space<vmem>>, vector<32x16xf32>
    tpu.vector_store %arg24[%c0_45, %c48_46], %96 {strides = array<i32>} : memref<32x64xf32, #tpu.memory_space<vmem>>, vector<32x16xf32>,
    %c0_47 = arith.constant 0 : index
    %c0_48 = arith.constant 0 : index
    %98 = vector.load %arg24[%c0_47, %c0_48] : memref<32x64xf32, #tpu.memory_space<vmem>>, vector<32x64xf32>
    %99 = arith.truncf %98 : vector<32x64xf32> to vector<32x64xbf16>
    %c0_49 = arith.constant 0 : index
    %c0_50 = arith.constant 0 : index
    %c0_51 = arith.constant 0 : index
    %100 = vector.load %arg12[%c0_49, %c0_50, %c0_51] : memref<1x64x64xbf16, #tpu.memory_space<vmem>>, vector<1x64x64xbf16>
    %101 = vector.shape_cast %100 : vector<1x64x64xbf16> to vector<64x64xbf16>
    %cst_52 = arith.constant dense<0.000000e+00> : vector<32x64xf32>
    %102 = tpu.matmul %99, %101, %cst_52 {dimension_numbers = #tpu.dot_dimension_numbers<[1], [0], [0], [1], [0, 0, 1, 1], [], []>} : vector<32x64xbf16>, vector<64x64xbf16>, vector<32x64xf32> -> vector<32x64xf32>
    %c0_53 = arith.constant 0 : index
    %c0_54 = arith.constant 0 : index
    %c0_55 = arith.constant 0 : index
    %103 = vector.load %arg13[%c0_53, %c0_54, %c0_55] : memref<1x1x64xf32, #tpu.memory_space<vmem>>, vector<1x1x64xf32>
    %104 = vector.shape_cast %103 : vector<1x1x64xf32> to vector<1x64xf32>
    %105 = vector.broadcast %104 : vector<1x64xf32> to vector<32x64xf32>
    %106 = arith.addf %102, %105 : vector<32x64xf32>
    %107 = arith.addf %3, %106 : vector<32x64xf32>
    %c0_56 = arith.constant 0 : index
    %c0_57 = arith.constant 0 : index
    %c0_58 = arith.constant 0 : index
    %108 = vector.load %arg18[%c0_56, %c0_57, %c0_58] : memref<1x1x64xf32, #tpu.memory_space<vmem>>, vector<1x1x64xf32>
    %109 = vector.shape_cast %108 : vector<1x1x64xf32> to vector<1x64xf32>
    %c0_59 = arith.constant 0 : index
    %c0_60 = arith.constant 0 : index
    %c0_61 = arith.constant 0 : index
    %110 = vector.load %arg19[%c0_59, %c0_60, %c0_61] : memref<1x1x64xf32, #tpu.memory_space<vmem>>, vector<1x1x64xf32>
    %111 = vector.shape_cast %110 : vector<1x1x64xf32> to vector<1x64xf32>
    %cst_62 = arith.constant dense<0.000000e+00> : vector<32xf32>
    %112 = vector.multi_reduction <add>, %107, %cst_62 [1] : vector<32x64xf32> to vector<32xf32>
    %113 = vector.shape_cast %112 : vector<32xf32> to vector<32x1xf32>
    %cst_63 = arith.constant 6.400000e+01 : f32
    %114 = vector.broadcast %cst_63 : f32 to vector<32x1xf32>
    %115 = arith.divf %113, %114 : vector<32x1xf32>
    %116 = vector.broadcast %115 : vector<32x1xf32> to vector<32x64xf32>
    %117 = arith.subf %107, %116 : vector<32x64xf32>
    %118 = arith.mulf %117, %117 : vector<32x64xf32>
    %cst_64 = arith.constant dense<0.000000e+00> : vector<32xf32>
    %119 = vector.multi_reduction <add>, %118, %cst_64 [1] : vector<32x64xf32> to vector<32xf32>
    %120 = vector.shape_cast %119 : vector<32xf32> to vector<32x1xf32>
    %cst_65 = arith.constant 6.400000e+01 : f32
    %121 = vector.broadcast %cst_65 : f32 to vector<32x1xf32>
    %122 = arith.divf %120, %121 : vector<32x1xf32>
    %123 = vector.broadcast %115 : vector<32x1xf32> to vector<32x64xf32>
    %124 = arith.subf %107, %123 : vector<32x64xf32>
    %cst_66 = arith.constant 9.99999974E-6 : f32
    %125 = vector.broadcast %cst_66 : f32 to vector<32x1xf32>
    %126 = arith.addf %122, %125 : vector<32x1xf32>
    %127 = math.rsqrt %126 : vector<32x1xf32>
    %128 = vector.broadcast %127 : vector<32x1xf32> to vector<32x64xf32>
    %129 = arith.mulf %124, %128 : vector<32x64xf32>
    %130 = vector.broadcast %109 : vector<1x64xf32> to vector<32x64xf32>
    %131 = arith.mulf %129, %130 : vector<32x64xf32>
    %132 = vector.broadcast %111 : vector<1x64xf32> to vector<32x64xf32>
    %133 = arith.addf %131, %132 : vector<32x64xf32>
    %134 = arith.truncf %133 : vector<32x64xf32> to vector<32x64xbf16>
    %c0_67 = arith.constant 0 : index
    %c0_68 = arith.constant 0 : index
    %c0_69 = arith.constant 0 : index
    %135 = vector.load %arg14[%c0_67, %c0_68, %c0_69] : memref<1x64x128xbf16, #tpu.memory_space<vmem>>, vector<1x64x128xbf16>
    %136 = vector.shape_cast %135 : vector<1x64x128xbf16> to vector<64x128xbf16>
    %cst_70 = arith.constant dense<0.000000e+00> : vector<32x128xf32>
    %137 = tpu.matmul %134, %136, %cst_70 {dimension_numbers = #tpu.dot_dimension_numbers<[1], [0], [0], [1], [0, 0, 1, 1], [], []>} : vector<32x64xbf16>, vector<64x128xbf16>, vector<32x128xf32> -> vector<32x128xf32>
    %c0_71 = arith.constant 0 : index
    %c0_72 = arith.constant 0 : index
    %c0_73 = arith.constant 0 : index
    %138 = vector.load %arg15[%c0_71, %c0_72, %c0_73] : memref<1x1x128xf32, #tpu.memory_space<vmem>>, vector<1x1x128xf32>
    %139 = vector.shape_cast %138 : vector<1x1x128xf32> to vector<1x128xf32>
    %140 = vector.broadcast %139 : vector<1x128xf32> to vector<32x128xf32>
    %141 = arith.addf %137, %140 : vector<32x128xf32>
    %cst_74 = arith.constant 0.000000e+00 : f32
    %142 = vector.broadcast %cst_74 : f32 to vector<32x128xf32>
    %143 = arith.maximumf %141, %142 : vector<32x128xf32>
    %144 = arith.truncf %143 : vector<32x128xf32> to vector<32x128xbf16>
    %c0_75 = arith.constant 0 : index
    %c0_76 = arith.constant 0 : index
    %c0_77 = arith.constant 0 : index
    %145 = vector.load %arg16[%c0_75, %c0_76, %c0_77] : memref<1x128x64xbf16, #tpu.memory_space<vmem>>, vector<1x128x64xbf16>
    %146 = vector.shape_cast %145 : vector<1x128x64xbf16> to vector<128x64xbf16>
    %cst_78 = arith.constant dense<0.000000e+00> : vector<32x64xf32>
    %147 = tpu.matmul %144, %146, %cst_78 {dimension_numbers = #tpu.dot_dimension_numbers<[1], [0], [0], [1], [0, 0, 1, 1], [], []>} : vector<32x128xbf16>, vector<128x64xbf16>, vector<32x64xf32> -> vector<32x64xf32>
    %c0_79 = arith.constant 0 : index
    %c0_80 = arith.constant 0 : index
    %c0_81 = arith.constant 0 : index
    %148 = vector.load %arg17[%c0_79, %c0_80, %c0_81] : memref<1x1x64xf32, #tpu.memory_space<vmem>>, vector<1x1x64xf32>
    %149 = vector.shape_cast %148 : vector<1x1x64xf32> to vector<1x64xf32>
    %150 = vector.broadcast %149 : vector<1x64xf32> to vector<32x64xf32>
    %151 = arith.addf %147, %150 : vector<32x64xf32>
    %152 = arith.addf %133, %151 : vector<32x64xf32>
    %c0_82 = arith.constant 0 : index
    %c0_83 = arith.constant 0 : index
    %c0_84 = arith.constant 0 : index
    %153 = vector.load %arg20[%c0_82, %c0_83, %c0_84] : memref<1x1x64xf32, #tpu.memory_space<vmem>>, vector<1x1x64xf32>
    %154 = vector.shape_cast %153 : vector<1x1x64xf32> to vector<1x64xf32>
    %c0_85 = arith.constant 0 : index
    %c0_86 = arith.constant 0 : index
    %c0_87 = arith.constant 0 : index
    %155 = vector.load %arg21[%c0_85, %c0_86, %c0_87] : memref<1x1x64xf32, #tpu.memory_space<vmem>>, vector<1x1x64xf32>
    %156 = vector.shape_cast %155 : vector<1x1x64xf32> to vector<1x64xf32>
    %cst_88 = arith.constant dense<0.000000e+00> : vector<32xf32>
    %157 = vector.multi_reduction <add>, %152, %cst_88 [1] : vector<32x64xf32> to vector<32xf32>
    %158 = vector.shape_cast %157 : vector<32xf32> to vector<32x1xf32>
    %cst_89 = arith.constant 6.400000e+01 : f32
    %159 = vector.broadcast %cst_89 : f32 to vector<32x1xf32>
    %160 = arith.divf %158, %159 : vector<32x1xf32>
    %161 = vector.broadcast %160 : vector<32x1xf32> to vector<32x64xf32>
    %162 = arith.subf %152, %161 : vector<32x64xf32>
    %163 = arith.mulf %162, %162 : vector<32x64xf32>
    %cst_90 = arith.constant dense<0.000000e+00> : vector<32xf32>
    %164 = vector.multi_reduction <add>, %163, %cst_90 [1] : vector<32x64xf32> to vector<32xf32>
    %165 = vector.shape_cast %164 : vector<32xf32> to vector<32x1xf32>
    %cst_91 = arith.constant 6.400000e+01 : f32
    %166 = vector.broadcast %cst_91 : f32 to vector<32x1xf32>
    %167 = arith.divf %165, %166 : vector<32x1xf32>
    %168 = vector.broadcast %160 : vector<32x1xf32> to vector<32x64xf32>
    %169 = arith.subf %152, %168 : vector<32x64xf32>
    %cst_92 = arith.constant 9.99999974E-6 : f32
    %170 = vector.broadcast %cst_92 : f32 to vector<32x1xf32>
    %171 = arith.addf %167, %170 : vector<32x1xf32>
    %172 = math.rsqrt %171 : vector<32x1xf32>
    %173 = vector.broadcast %172 : vector<32x1xf32> to vector<32x64xf32>
    %174 = arith.mulf %169, %173 : vector<32x64xf32>
    %175 = vector.broadcast %154 : vector<1x64xf32> to vector<32x64xf32>
    %176 = arith.mulf %174, %175 : vector<32x64xf32>
    %177 = vector.broadcast %156 : vector<1x64xf32> to vector<32x64xf32>
    %178 = arith.addf %176, %177 : vector<32x64xf32>
    %c0_93 = arith.constant 0 : index
    %c0_94 = arith.constant 0 : index
    %179 = vector.load %arg23[%c0_93, %c0_94] : memref<32x64xf32, #tpu.memory_space<vmem>>, vector<32x64xf32>
    tpu.vector_store %arg23[%c0_93, %c0_94], %178 {strides = array<i32>} : memref<32x64xf32, #tpu.memory_space<vmem>>, vector<32x64xf32>,
    %c1_i32 = arith.constant 1 : i32
    %180 = arith.cmpi eq, %arg1, %c1_i32 : i32
    %181 = arith.extui %180 : i1 to i32
    %c0_i32_95 = arith.constant 0 : i32
    %182 = arith.cmpi ne, %181, %c0_i32_95 : i32
    scf.if %182 {
      %c0_96 = arith.constant 0 : index
      %c0_97 = arith.constant 0 : index
      %183 = vector.load %arg23[%c0_96, %c0_97] : memref<32x64xf32, #tpu.memory_space<vmem>>, vector<32x64xf32>
      %184 = vector.shape_cast %183 : vector<32x64xf32> to vector<4x8x64xf32>
      %185 = arith.truncf %184 : vector<4x8x64xf32> to vector<4x8x64xbf16>
      %c0_98 = arith.constant 0 : index
      %c0_99 = arith.constant 0 : index
      %c0_100 = arith.constant 0 : index
      %186 = vector.load %arg22[%c0_98, %c0_99, %c0_100] : memref<4x8x64xbf16, #tpu.memory_space<vmem>>, vector<4x8x64xbf16>
      tpu.vector_store %arg22[%c0_98, %c0_99, %c0_100], %185 {strides = array<i32>} : memref<4x8x64xbf16, #tpu.memory_space<vmem>>, vector<4x8x64xbf16>,
    } else {
    }
    return
  }
  func.func @transform_0(%arg0: i32, %arg1: i32) -> (i32, i32, i32) {
    %c0_i32 = arith.constant 0 : i32
    %c0_i32_0 = arith.constant 0 : i32
    %c0_i32_1 = arith.constant 0 : i32
    return %arg0, %c0_i32, %c0_i32_0 : i32, i32, i32
  }
  func.func @transform_1(%arg0: i32, %arg1: i32) -> (i32, i32, i32) {
    %c0_i32 = arith.constant 0 : i32
    %c0_i32_0 = arith.constant 0 : i32
    %c0_i32_1 = arith.constant 0 : i32
    return %arg0, %c0_i32, %c0_i32_0 : i32, i32, i32
  }
  func.func @transform_2(%arg0: i32, %arg1: i32) -> (i32, i32) {
    %c0_i32 = arith.constant 0 : i32
    %c0_i32_0 = arith.constant 0 : i32
    %c0_i32_1 = arith.constant 0 : i32
    return %c0_i32, %c0_i32_0 : i32, i32
  }
  func.func @transform_3(%arg0: i32, %arg1: i32) -> (i32, i32) {
    %c0_i32 = arith.constant 0 : i32
    %c0_i32_0 = arith.constant 0 : i32
    %c0_i32_1 = arith.constant 0 : i32
    return %c0_i32, %c0_i32_0 : i32, i32
  }
  func.func @transform_4(%arg0: i32, %arg1: i32) -> (i32, i32) {
    %c0_i32 = arith.constant 0 : i32
    %c0_i32_0 = arith.constant 0 : i32
    %c0_i32_1 = arith.constant 0 : i32
    return %c0_i32, %c0_i32_0 : i32, i32
  }
  func.func @transform_5(%arg0: i32, %arg1: i32) -> (i32, i32) {
    %c0_i32 = arith.constant 0 : i32
    %c0_i32_0 = arith.constant 0 : i32
    %c0_i32_1 = arith.constant 0 : i32
    return %c0_i32, %c0_i32_0 : i32, i32
  }
  func.func @transform_6(%arg0: i32, %arg1: i32) -> (i32, i32) {
    %c0_i32 = arith.constant 0 : i32
    %c0_i32_0 = arith.constant 0 : i32
    %c0_i32_1 = arith.constant 0 : i32
    return %c0_i32, %c0_i32_0 : i32, i32
  }
  func.func @transform_7(%arg0: i32, %arg1: i32) -> (i32, i32) {
    %c0_i32 = arith.constant 0 : i32
    %c0_i32_0 = arith.constant 0 : i32
    %c0_i32_1 = arith.constant 0 : i32
    return %c0_i32, %c0_i32_0 : i32, i32
  }
  func.func @transform_8(%arg0: i32, %arg1: i32) -> (i32, i32, i32) {
    %c0_i32 = arith.constant 0 : i32
    %c0_i32_0 = arith.constant 0 : i32
    %c0_i32_1 = arith.constant 0 : i32
    return %arg1, %c0_i32, %c0_i32_0 : i32, i32, i32
  }
  func.func @transform_9(%arg0: i32, %arg1: i32) -> (i32, i32, i32) {
    %c0_i32 = arith.constant 0 : i32
    %c0_i32_0 = arith.constant 0 : i32
    %c0_i32_1 = arith.constant 0 : i32
    return %arg1, %c0_i32, %c0_i32_0 : i32, i32, i32
  }
  func.func @transform_10(%arg0: i32, %arg1: i32) -> (i32, i32, i32) {
    %c0_i32 = arith.constant 0 : i32
    %c0_i32_0 = arith.constant 0 : i32
    %c0_i32_1 = arith.constant 0 : i32
    return %arg1, %c0_i32, %c0_i32_0 : i32, i32, i32
  }
  func.func @transform_11(%arg0: i32, %arg1: i32) -> (i32, i32, i32) {
    %c0_i32 = arith.constant 0 : i32
    %c0_i32_0 = arith.constant 0 : i32
    %c0_i32_1 = arith.constant 0 : i32
    return %arg1, %c0_i32, %c0_i32_0 : i32, i32, i32
  }
  func.func @transform_12(%arg0: i32, %arg1: i32) -> (i32, i32, i32) {
    %c0_i32 = arith.constant 0 : i32
    %c0_i32_0 = arith.constant 0 : i32
    %c0_i32_1 = arith.constant 0 : i32
    return %arg1, %c0_i32, %c0_i32_0 : i32, i32, i32
  }
  func.func @transform_13(%arg0: i32, %arg1: i32) -> (i32, i32, i32) {
    %c0_i32 = arith.constant 0 : i32
    %c0_i32_0 = arith.constant 0 : i32
    %c0_i32_1 = arith.constant 0 : i32
    return %arg1, %c0_i32, %c0_i32_0 : i32, i32, i32
  }
  func.func @transform_14(%arg0: i32, %arg1: i32) -> (i32, i32, i32) {
    %c0_i32 = arith.constant 0 : i32
    %c0_i32_0 = arith.constant 0 : i32
    %c0_i32_1 = arith.constant 0 : i32
    return %arg1, %c0_i32, %c0_i32_0 : i32, i32, i32
  }
  func.func @transform_15(%arg0: i32, %arg1: i32) -> (i32, i32, i32) {
    %c0_i32 = arith.constant 0 : i32
    %c0_i32_0 = arith.constant 0 : i32
    %c0_i32_1 = arith.constant 0 : i32
    return %arg1, %c0_i32, %c0_i32_0 : i32, i32, i32
  }
  func.func @transform_16(%arg0: i32, %arg1: i32) -> (i32, i32, i32) {
    %c0_i32 = arith.constant 0 : i32
    %c0_i32_0 = arith.constant 0 : i32
    %c0_i32_1 = arith.constant 0 : i32
    return %arg1, %c0_i32, %c0_i32_0 : i32, i32, i32
  }
  func.func @transform_17(%arg0: i32, %arg1: i32) -> (i32, i32, i32) {
    %c0_i32 = arith.constant 0 : i32
    %c0_i32_0 = arith.constant 0 : i32
    %c0_i32_1 = arith.constant 0 : i32
    return %arg1, %c0_i32, %c0_i32_0 : i32, i32, i32
  }
  func.func @transform_18(%arg0: i32, %arg1: i32) -> (i32, i32, i32) {
    %c0_i32 = arith.constant 0 : i32
    %c0_i32_0 = arith.constant 0 : i32
    %c0_i32_1 = arith.constant 0 : i32
    return %arg1, %c0_i32, %c0_i32_0 : i32, i32, i32
  }
  func.func @transform_19(%arg0: i32, %arg1: i32) -> (i32, i32, i32) {
    %c0_i32 = arith.constant 0 : i32
    %c0_i32_0 = arith.constant 0 : i32
    %c0_i32_1 = arith.constant 0 : i32
    return %arg1, %c0_i32, %c0_i32_0 : i32, i32, i32
  }
  func.func @transform_20(%arg0: i32, %arg1: i32) -> (i32, i32, i32) {
    %c0_i32 = arith.constant 0 : i32
    %c0_i32_0 = arith.constant 0 : i32
    %c0_i32_1 = arith.constant 0 : i32
    return %arg0, %c0_i32, %c0_i32_0 : i32, i32, i32
  }
}

</mosaic_0001>

<bundles_post_ra>
// kernel: tpu_custom_call.1
= control target key start
LH: loop header
LB: loop body
LE: loop exit
PB: predicated region body
PF: predicated region fallthrough
CT: control target
= control target key end

     0   :  { %s5632_s0 = inlined_call_operand.vmem [shape: f32[4,8,4], index: 0, kind: input, shape index: {}]   ;;  %s5633_s1 = inlined_call_operand.vmem [shape: f32[4,8,3], index: 1, kind: input, shape index: {}]   ;;  %s5634_s2 = inlined_call_operand.vmem [shape: f32[32,64], index: 2, kind: input, shape index: {}]   ;;  %s5635_s3 = inlined_call_operand.vmem [shape: bf16[4,64], index: 3, kind: input, shape index: {}]   ;;  %s5636_s4 = inlined_call_operand.hbm [shape: f32[1,64], index: 4, kind: input, shape index: {}]   ;;  %s5637_s5 = inlined_call_operand.vmem [shape: bf16[3,64], index: 5, kind: input, shape index: {}]   ;;  %s5638_s6 = inlined_call_operand.hbm [shape: f32[1,64], index: 6, kind: input, shape index: {}]   ;;  %s5639_s7 = inlined_call_operand.vmem [shape: f32[8,128], index: 7, kind: input, shape index: {}]   ;;  %s5640_s8 = inlined_call_operand.vmem [shape: bf16[2,64,192], index: 8, kind: input, shape index: {}]   ;;  %s5641_s9 = inlined_call_operand.vmem [shape: f32[2,1,192], index: 9, kind: input, shape index: {}]   ;;  %s5642_s10 = inlined_call_operand.vmem [shape: bf16[2,64,64], index: 10, kind: input, shape index: {}]   ;;  %s5643_s11 = inlined_call_operand.vmem [shape: f32[2,1,64], index: 11, kind: input, shape index: {}]   ;;  %s5644_s12 = inlined_call_operand.hbm [shape: bf16[2,64,128], index: 12, kind: input, shape index: {}]   ;;  %s5645_s13 = inlined_call_operand.vmem [shape: f32[2,1,128], index: 13, kind: input, shape index: {}]   ;;  %s5646_s14 = inlined_call_operand.vmem [shape: bf16[2,128,64], index: 14, kind: input, shape index: {}]   ;;  %s5647_s15 = inlined_call_operand.hbm [shape: f32[2,1,64], index: 15, kind: input, shape index: {}]   ;;  %s5648_s16 = inlined_call_operand.vmem [shape: f32[2,1,64], index: 16, kind: input, shape index: {}]   ;;  %s5649_s17 = inlined_call_operand.vmem [shape: f32[2,1,64], index: 17, kind: input, shape index: {}]   ;;  %s5650_s18 = inlined_call_operand.vmem [shape: f32[2,1,64], index: 18, kind: input, shape index: {}]   ;;  %s5651_s19 = inlined_call_operand.vmem [shape: f32[2,1,64], index: 19, kind: input, shape index: {}]   ;;  %s5652_s20 = inlined_call_operand.hbm [shape: bf16[4,8,64], index: 20, kind: output, shape index: {}]  }
   0x1   :  { %5665 = sst [smem:[#allocation24_spill]] %s5632_s0 }
   0x2   :  { %5666 = sst [smem:[#allocation25_spill]] %s5633_s1 }
   0x3   :  { %5667 = sst [smem:[#allocation26_spill]] %s5634_s2 }
   0x4   :  { %5668 = sst [smem:[#allocation27_spill]] %s5635_s3 }
   0x5   :  { %5669 = sst [smem:[#allocation28_spill]] %s5636_s4 }
   0x6   :  { %5670 = sst [smem:[#allocation29_spill]] %s5637_s5 }
   0x7   :  { %5671 = sst [smem:[#allocation30_spill]] %s5638_s6 }
   0x8   :  { %5672 = sst [smem:[#allocation31_spill]] %s5640_s8 }
   0x9   :  { %5673 = sst [smem:[#allocation32_spill]] %s5641_s9 }
   0xa   :  { %5674 = sst [smem:[#allocation33_spill]] %s5642_s10 }
   0xb   :  { %5675 = sst [smem:[#allocation34_spill]] %s5644_s12 }
   0xc   :  { %5676 = sst [smem:[#allocation35_spill]] %s5646_s14 }
   0xd   :  { %5677 = sst [smem:[#allocation36_spill]] %s5647_s15 }
   0xe   :  { %5678 = sst [smem:[#allocation37_spill]] %s5648_s16 }
   0xf   :  { %5679 = sst [smem:[#allocation38_spill]] %s5649_s17 }
  0x10   :  { %5680 = sst [smem:[#allocation39_spill]] %s5650_s18 }
  0x11   :  { %5681 = sst [smem:[#allocation40_spill]] %s5651_s19 }
  0x12   :  { %5682 = sst [smem:[#allocation41_spill]] %s5652_s20 }
  0x13   :  { %25 = vsyncpa [#allocation6], 0 }
  0x14   :  { %26 = vsyncpa [#allocation9], 0 }
  0x15   :  { %27 = vsyncpa [#allocation7], 0  ;;  %s4962_s21 = smov 0   ;;  %s4964_s1 = smov 0  }
  0x16   :  { %s4966_s22 = smov 0   ;;  %s4968_s7 = smov 0  }
  0x17   :  { %s4970_s23 = smov 0   ;;  %s4972_s2 = smov 0  }
  0x18 LB: > { %5683 = sst [smem:[#allocation17_spill]] %s4820_s1  ;;  %s4991_s24 = sadd.s32 4294967295, %s4836_s2   ;;  %s4836_s2 = sphi %s4972_s2, %s33_s2   ;;  %s4832_s23 = sphi %s4970_s23, %s5732_s23   ;;  %s4828_s7 = sphi %s4968_s7, %s5731_s7   ;;  %s4824_s22 = sphi %s4966_s22, %s5730_s22   ;;  %s4820_s1 = sphi %s4964_s1, %s5729_s1   ;;  %s4816_s21 = sphi %s4962_s21, %s5728_s21  }
  0x19   : > { %5684 = sst [smem:[#allocation18_spill]] %s4824_s22  ;;  %p341_p0 = scmp.ne.s32.totalorder %s4824_s22, %s4820_s1 }
  0x1a   : > { %5685 = sst [smem:[#allocation19_spill]] %s4832_s23  ;;  %p342_p1 = scmp.eq.s32.totalorder %s4836_s2, 0 }
  0x1b   : > { %5686 = sst [smem:[#allocation20_spill]] %s4836_s2  ;;  %p347_p2 = scmp.ne.s32.totalorder %s4820_s1, %s4816_s21 }
  0x1c   : > { %5687 = sst [smem:[#allocation21_spill]] %s4991_s24  ;;  %p5656_p3 = scmp.eq.s32.totalorder %s4991_s24, 0 }
  0x1d   : > { %p343_p4 = por %p342_p1, %p341_p0  ;;  %p3917_p5 = scmp.ge.s32.totalorder %s4836_s2, 1 }
  0x1e   : > { %p5002_p6 = por %p5656_p3, %p347_p2  ;;  %p566_p7 = scmp.lt.s32.totalorder %s4836_s2, 3 }
  0x1f   : > { %s4838_s27 = smov [#allocation5]   ;;  %p4432_p10 = scmp.lt.s32.totalorder %s4836_s2, 2 }
  0x20   : > { %p5007_p8 = pnand %p3917_p5, %p566_p7  ;;  %s603_s4 = sshll.u32 %s4838_s27, 4  ;;  %s604_s4 = int_to_ptr.vmem [resolvable:$true] %s603_s4 }
  0x21   : > { %s660_s28 = sand.u32 1, %s4836_s2   ;;  %p5021_p12 = pnand %p4432_p10, %p343_p4 }
  0x22   : > { %p4416_p9 = pneg %p5007_p8  ;;  %s4653_s0 = scalar_lea.vmem %s604_s4, 16 }
  0x23   : > { %p4654_p0 = scmp.ne.s32.totalorder %s604_s4, %s4653_s0  ;;  %s4660_s21 = scalar_lea.vmem %s604_s4, 32 }
  0x24   : > { %p5017_p11 = pnand %p4416_p9, %p5656_p3  ;;  %p4661_p5 = scmp.lt.s32.totalorder %s604_s4, %s604_s4 }
  0x25   : > { %p4662_p7 = scmp.lt.s32.totalorder %s4660_s21, %s4653_s0 }
  0x26   : > { %p4644_p13 = pneg %p5017_p11 }
  0x27   : > { %p4663_p9 = por %p4662_p7, %p4661_p5 }
  0x28   : > { %p4656_p1 = pnand %p4654_p0, %p4644_p13 }
  0x2a   : > { %p4657_p2 = pneg %p4656_p1 }
  0x2c   : > { %p4664_p3 = pnand %p4663_p9, %p4657_p2 }
  0x2e   : > { %4667 = shalt.err (!%p4664_p3)
}
  0x2f   : > { %s5692_s2 = sld [smem:[#allocation28_spill]]  ;;  %s42_s20 = sadd.s32 1, %s4832_s23 }
  0x30   : > { %s5658_s5 = sand.u32 1, %s4824_s22   ;;  %p43_p4 = scmp.ge.s32.totalorder %s42_s20, 2 }
  0x31   : > { %s3923_s0 = sshll.u32 %s5658_s5, 5  ;;  %s4051_s21 = sshll.u32 %s4832_s23, 9 }
  0x32   : > { %s5734_s20 = smov (%p43_p4, %s42_s20), 0  ;;  %s5694_s12 = sld [smem:[#allocation34_spill]] }
  0x33   : > { %5693 = sst [smem:[#allocation22_spill]] %s5734_s20  ;;  %s664_s18 = scalar_lea.vmem [#allocation10], %s3923_s0 }
  0x34   : > { %s671_s17 = sshll.u32 %s664_s18, 4  ;;  %s331_s16 = ssub.s32 %s4832_s23, %s5734_s20  ;;  %s672_s17 = int_to_ptr.vmem [resolvable:$true] %s671_s17 }
  0x35   : > { %4419 = dma.hbm_to_vmem [thread:$0]  (!%p5017_p11), %s5692_s2, 16, %s604_s4, [#allocation6]  }
  0x36   : > { %p332_p3 = scmp.eq.s32.totalorder %s331_s16, 0  ;;  %s5695_s2 = sadd.s32 1, %s4824_s22 }
  0x37   : > { %s5052_s14 = scalar_lea.sflag [#allocation6], %s660_s28  ;;  %p4670_p10 = pneg %p5021_p12 }
  0x38   : > { %s670_s27 = scalar_lea.hbm %s5694_s12, %s4051_s21  ;;  %s4681_s5 = scalar_lea.vmem %s672_s17, 512 }
  0x39   : > { %s5050_s4 = scalar_select %p332_p3, %s4824_s22, %s5695_s2  }
  0x3a   : > { %p4682_p0 = scmp.ne.s32.totalorder %s672_s17, %s4681_s5  ;;  %s4839_s19 = smov [#allocation10]  }
  0x3b   : > { %5696 = sst [smem:[#allocation23_spill]] %s5050_s4  ;;  %s4686_s21 = sshll.u32 %s4839_s19, 4  ;;  %s4687_s21 = int_to_ptr.vmem [resolvable:$false] %s4686_s21 }
  0x3c   : > { %p4684_p1 = pnand %p4682_p0, %p4670_p10  ;;  %s4688_s18 = scalar_lea.vmem %s4687_s21, 1024 }
  0x3d   : > { %p4689_p5 = scmp.lt.s32.totalorder %s672_s17, %s4687_s21  ;;  %p4690_p7 = scmp.lt.s32.totalorder %s4688_s18, %s4681_s5 }
  0x3e   : > { %p4685_p2 = pneg %p4684_p1 }
  0x3f   : > { %p4691_p9 = por %p4690_p7, %p4689_p5 }
  0x41   : > { %p4692_p4 = pnand %p4691_p9, %p4685_p2 }
  0x43   : > { %4695 = shalt.err (!%p4692_p4)
}
  0x44   : > { %s4840_s16 = smov 64   ;;  %s4841_s28 = smov 4  }
  0x45   : > { %4426 = dma.hbm_to_vmem [thread:$0]  (!%p5021_p12), %s670_s27, 512, %s672_s17, %s5052_s14, %s4840_s16, %s4840_s16, %s4841_s28  }
  0x46   : > { %s4842_s0 = smov [#allocation8]   ;;  %s3926_s2 = sshll.u32 %s4832_s23, 4 }
  0x47   : > { %s617_s3 = sshll.u32 %s4842_s0, 4  ;;  %s618_s3 = int_to_ptr.vmem [resolvable:$true] %s617_s3 }
  0x48   : > { %s4707_s19 = scalar_lea.vmem %s618_s3, 16  ;;  %s4714_s5 = scalar_lea.vmem %s618_s3, 32 }
  0x49   : > { %p4708_p3 = scmp.ne.s32.totalorder %s618_s3, %s4707_s19  ;;  %p4715_p2 = scmp.lt.s32.totalorder %s618_s3, %s618_s3 }
  0x4a   : > { %p4716_p5 = scmp.lt.s32.totalorder %s4714_s5, %s4707_s19 }
  0x4b   : > { %p4710_p0 = pnand %p4708_p3, %p4644_p13 }
  0x4c   : > { %p4717_p7 = por %p4716_p5, %p4715_p2 }
  0x4d   : > { %p4711_p1 = pneg %p4710_p0 }
  0x4f   : > { %p4718_p9 = pnand %p4717_p7, %p4711_p1 }
  0x51   : > { %4721 = shalt.err (!%p4718_p9)
}
  0x52   : > { %s5697_s6 = sld [smem:[#allocation30_spill]]  ;;  %s5699_s28 = sand.u32 1, %s4824_s22  }
  0x53   : > { %s5698_s15 = sld [smem:[#allocation36_spill]]  ;;  %s698_s0 = scalar_lea.vmem [#allocation11], %s5699_s28 }
  0x54   : > { %s705_s12 = sshll.u32 %s698_s0, 4  ;;  %s4843_s29 = smov [#allocation11]   ;;  %s706_s12 = int_to_ptr.vmem [resolvable:$true] %s705_s12 }
  0x55   : > { %s4735_s19 = scalar_lea.vmem %s706_s12, 16  ;;  %s4740_s5 = sshll.u32 %s4843_s29, 4  ;;  %s4741_s5 = int_to_ptr.vmem [resolvable:$false] %s4740_s5 }
  0x56   : > { %p4736_p13 = scmp.ne.s32.totalorder %s706_s12, %s4735_s19  ;;  %s4742_s21 = scalar_lea.vmem %s4741_s5, 32 }
  0x57   : > { %p4743_p0 = scmp.lt.s32.totalorder %s706_s12, %s4741_s5 }
  0x58   : > { %4422 = dma.hbm_to_vmem [thread:$0]  (!%p5017_p11), %s5697_s6, 16, %s618_s3, [#allocation9]  }
  0x59   : > { %s703_s16 = scalar_lea.hbm %s5698_s15, %s3926_s2  ;;  %p4738_p4 = pnand %p4736_p13, %p4670_p10 }
  0x5a   : > { %p4744_p11 = scmp.lt.s32.totalorder %s4742_s21, %s4735_s19 }
  0x5b   : > { %p4739_p3 = pneg %p4738_p4 }
  0x5c   : > { %p4745_p1 = por %p4744_p11, %p4743_p0 }
  0x5e   : > { %p4746_p2 = pnand %p4745_p1, %p4739_p3 }
  0x60   : > { %4749 = shalt.err (!%p4746_p2)
}
  0x61   : > { %4429 = dma.hbm_to_vmem [thread:$0]  (!%p5021_p12), %s703_s16, 16, %s706_s12, %s5052_s14  }
  0x62   : > { %738 = sbr.rel (%p5007_p8) target bundleno = 4515 (0x11a3), region = 100  ;;  %p5700_p5 = scmp.eq.s32.totalorder (!%p5007_p8), %s4991_s24, 0 }
  0x67   : > { %4799 = dma.done.wait (%p5700_p5), [#allocation6], 16   ;;  %p5701_p10 = pmov %p5700_p5 }
  0x68   : > { %p5702_p7 = pmov %p5700_p5 }
  0x69   : > { %4801 = vsyncadd (%p5701_p10), [#allocation6], 4294967280 }
  0x6a   : > { %4803 = dma.done.wait (%p5702_p7), [#allocation9], 16   ;;  %p5703_p9 = pmov %p5700_p5 }
  0x6b   : > { %s748_s30 = sand.u32 1, %s4991_s24   ;;  %s750_s12 = sand.u32 1, %s4820_s1  }
  0x6c   : > { %4805 = vsyncadd (%p5703_p9), [#allocation9], 4294967280  ;;  %s3930_s14 = sshll.u32 %s750_s12, 5  ;;  %s749_s26 = scalar_lea.sflag [#allocation6], %s748_s30 }
  0x6d   : > { %s5094_s3 = scalar_lea.vmem [#allocation10], %s3930_s14 }
  0x6e   : > { %4807 = dma.done.wait (%p5002_p6), %s749_s26, 528  }
  0x6f   : > { %4809 = vsyncadd (%p5002_p6), %s749_s26, 4294966768  ;;  %p875_p8 = scmp.lt.s32.totalorder %s4828_s7, 1  ;;  %s5704_s8 = sld [smem:[#allocation31_spill]] }
  0x70   : > { %s5705_s9 = sld [smem:[#allocation32_spill]]  ;;  %s5151_s24 = scalar_lea.vmem [#allocation11], %s750_s12 }
  0x71   : > { %s5102_s2 = scalar_select %p875_p8, %s4828_s7, 1 }
  0x72   : > { %s5706_s10 = sld [smem:[#allocation33_spill]]  ;;  %p3938_p6 = scmp.ne.s32.totalorder %s4828_s7, 0 }
  0x73   : > { %s4052_s17 = sshll.u32 %s5102_s2, 6  ;;  %s3933_s27 = sshll.u32 %s5102_s2, 1 }
  0x74   : > { %s4053_s29 = sshll.u32 %s5102_s2, 5  ;;  %s5707_s23 = sld [smem:[#allocation35_spill]] }
  0x75   : > { %s5109_s25 = scalar_lea.vmem %s5704_s8, %s4052_s17  ;;  %s5709_s30 = sld [smem:[#allocation38_spill]] }
  0x76   : > { %s5114_s19 = scalar_lea.vmem %s5705_s9, %s3933_s27  ;;  %s5708_s9 = sld [smem:[#allocation37_spill]] }
  0x77   : > { %s5710_s26 = sld [smem:[#allocation39_spill]] }
  0x78   : > { %s5124_s6 = scalar_lea.vmem %s5706_s10, %s4053_s29  ;;  %s5711_s20 = sld [smem:[#allocation40_spill]] }
  0x79   : > { %s5713_s16 = sld [smem:[#allocation24_spill]] (!%p3938_p6) }
  0x7a   : > { %s5133_s28 = scalar_lea.vmem %s5707_s23, %s4052_s17  ;;  %917 = sbr.rel (%p3938_p6) target bundleno = 344 (0x158), region = 120 }
  0x7b   : > { %s905_s22 = scalar_lea.vmem %s5709_s30, %s5102_s2  ;;  %s5715_s8 = sld [smem:[#allocation25_spill]] (!%p3938_p6) }
  0x7c   : > { %s902_s4 = scalar_lea.vmem %s5708_s9, %s5102_s2  ;;  %s5712_s9 = sld [smem:[#allocation27_spill]] (!%p3938_p6) }
  0x7d   : > { %s908_s10 = scalar_lea.vmem %s5710_s26, %s5102_s2  ;;  %s5714_s26 = sld [smem:[#allocation29_spill]] (!%p3938_p6) }
  0x7e   : > { %s911_s18 = scalar_lea.vmem %s5711_s20, %s5102_s2  ;;  %s5716_s5 = sld [smem:[#allocation26_spill]] (!%p3938_p6) }
  0x7f   : > { %vm945_vm0 = vcmask 1041408   ;;  %v918_v1 = vld [vmem:[%s5713_s16] sm:$0xff]  ;;  %v919_v2 = vld [vmem:[%s5713_s16 + $0x8] sm:$0xff]  ;;  %vm938_vm1 = vcmask 31744   ;;  %v920_v5 = vld [vmem:[%s5713_s16 + $0x10] sm:$0xff]  ;;  %vm1006_vm2 = vcmask 1040384  }
  0x80   : > { %v922_v4 = vpack.c.bf16 %v919_v2, %v918_v1  ;;  %v921_v6 = vld [vmem:[%s5713_s16 + $0x18] sm:$0xff]  ;;  %vm999_vm3 = vcmask 23552   ;;  %v4844_v11 = vmov 65535   ;;  %v3939_v20 = vld [vmem:[#allocation5] ss:$0 sm:$0xff]  ;;  %vm1084_vm4 = vcmask 523264  }
  0x81   : > { %v923_v7 = vpack.c.bf16 %v921_v6, %v920_v5  ;;  %v924_v9 = vld [vmem:[%s5715_s8] sm:$0xff]  ;;  %v925_v10 = vld [vmem:[%s5715_s8 + $0x8] sm:$0xff]  ;;  %v1007_v12 = vsel %vm1006_vm2, 4294967295, %v4844_v11  ;;  %v926_v15 = vld [vmem:[%s5715_s8 + $0x10] sm:$0xff] }
  0x82   : > { %v930_v0 = vld [vmem:[%s5712_s9] sm:$0x3]  ;;  %4153 = vmatprep.mubr.msk.bf16.mxu0 %vm938_vm1, %v922_v4  ;;  %v928_v13 = vpack.c.bf16 %v925_v10, %v924_v9  ;;  %v1008_v14 = vsel %vm945_vm0, %v1007_v12, 0  ;;  %v927_v16 = vld [vmem:[%s5715_s8 + $0x18] sm:$0xff]  ;;  %v3944_v25 = vld [vmem:[#allocation8] ss:$0 sm:$0xff] }
  0x83   : > { %4399 = vmatprep.subr.msk.bf16.mxu0 %vm945_vm0, %v930_v0  ;;  %v947_v3 = vsel %vm945_vm0, %v930_v0, 0  ;;  %v998_v8 = vld [vmem:[%s5714_s26] sm:$0x3]  ;;  %v929_v18 = vpack.c.bf16 %v927_v16, %v926_v15 }
  0x84   : > { %4152 = vmatpush3.bf16.msra.mxu0 %v947_v3  ;;  %v1010_v17 = vand.u32 %v1008_v14, %v998_v8  ;;  %4159 = vmatprep.mubr.msk.bf16.mxu1 %vm999_vm3, %v928_v13  ;;  %v1078_v28 = vld [vmem:[%s5716_s5 + $0x10] sm:$0xff]  ;;  %v1076_v34 = vld [vmem:[%s5716_s5] sm:$0xff]  ;;  %v1079_v40 = vld [vmem:[%s5716_s5 + $0x18] sm:$0xff] }
  0x85   : > { %v1077_v45 = vld [vmem:[%s5716_s5 + $0x8] sm:$0xff] }
  0x86   : > { %4157 = vmatprep.subr.bf16.mxu1 %v1010_v17 }
  0x87   : > { %4154 = vmatmul.mubr.msk.bf16.vlgmr.msra.gmra.mxu0 %vm938_vm1, %v923_v7  ;;  %4158 = vmatpush3.bf16.msra.mxu1 %v1010_v17 }
  0x8a   : > { %4160 = vmatmul.mubr.msk.bf16.vlgmr.msra.gmra.mxu1 %vm999_vm3, %v929_v18 }
 0x147   : > { %v4155_v19 = vpop.f32.mrf.mxu0 }
 0x148   : > { %v992_v22 = vadd.f32 %v4155_v19, %v3939_v20 }
 0x149   : > { %v983_v21 = vpop.f32.mrf.mxu0 }
 0x14a   : > { %v4161_v24 = vpop.f32.mrf.mxu1  ;;  %v984_v26 = vadd.f32 %v3939_v20, %v983_v21 }
 0x14b   : > { %v4156_v23 = vpop.f32.mrf.mxu0  ;;  %v1063_v27 = vadd.f32 %v4161_v24, %v992_v22 }
 0x14c   : > { %v1046_v30 = vpop.f32.mrf.mxu1  ;;  %v995_v31 = vadd.f32 %v4156_v23, %v3939_v20 }
 0x14d   : > { %v986_v29 = vpop.f32.mrf.mxu0  ;;  %v1074_v32 = vadd.f32 %v3944_v25, %v1063_v27  ;;  %v1061_v33 = vadd.f32 %v1046_v30, %v984_v26 }
 0x14e   : > { %v4162_v35 = vpop.f32.mrf.mxu1  ;;  %v987_v37 = vadd.f32 %v3939_v20, %v986_v29 }
 0x14f   : > { %v1082_v36 = vadd.f32 %v1078_v28, %v1074_v32  ;;  %v1072_v38 = vadd.f32 %v3944_v25, %v1061_v33  ;;  %v1064_v39 = vadd.f32 %v4162_v35, %v995_v31 }
 0x150   : > { %v1049_v41 = vpop.f32.mrf.mxu1 }
 0x151   : > { %1087 = vst.msk [vmem:[#allocation2 + $0x10] sm:$0xff] %vm1084_vm4, %v1082_v36  ;;  %v1080_v42 = vadd.f32 %v1076_v34, %v1072_v38  ;;  %v1075_v43 = vadd.f32 %v3944_v25, %v1064_v39  ;;  %v1062_v44 = vadd.f32 %v1049_v41, %v987_v37 }
 0x153   : > { %1085 = vst.msk [vmem:[#allocation2] sm:$0xff] %vm1084_vm4, %v1080_v42  ;;  %v1083_v46 = vadd.f32 %v1079_v40, %v1075_v43  ;;  %v1073_v47 = vadd.f32 %v3944_v25, %v1062_v44 }
 0x155   : > { %1088 = vst.msk [vmem:[#allocation2 + $0x18] sm:$0xff] %vm1084_vm4, %v1083_v46  ;;  %v1081_v48 = vadd.f32 %v1077_v45, %v1073_v47 }
 0x157   : > { %1086 = vst.msk [vmem:[#allocation2 + $0x8] sm:$0xff] %vm1084_vm4, %v1081_v48 }
 0x158 PF: > { %v4502_v49 = vld [vmem:[%s5109_s25 + $0x34] ss:$8 sps:$4 sm:$0xff]   ;;  %v4504_v50 = vld [vmem:[%s5109_s25 + $0x30] ss:$8 sps:$4 sm:$0xff]   ;;  %v4845_v51 = vmov 0   ;;  %vm1155_vm5 = vcmask 523264   ;;  %v1105_v0 = vlaneseq  ;;  %s5719_s1 = scalar_lea.vmem %s5643_s11, %s5102_s2  ;;  %s5722_s15 = scalar_lea.vmem %s5645_s13, %s5102_s2 }
 0x159   : > { %1194 = vmatprep.mubr.bf16.mxu0 %v4845_v51  ;;  %1170 = vmatprep.subr.bf16.mxu0 %v4502_v49  ;;  %v4505_v52 = vld [vmem:[%s5109_s25 + $0x24] ss:$8 sps:$4 sm:$0xff]   ;;  %v4507_v53 = vld [vmem:[%s5109_s25 + $0x20] ss:$8 sps:$4 sm:$0xff]   ;;  %v4508_v54 = vld [vmem:[%s5109_s25 + $0x14] ss:$8 sps:$4 sm:$0xff]  }
 0x15a   : > { %1171 = vmatpush1.bf16.msra.mxu0 %v4504_v50  ;;  %v4510_v55 = vld [vmem:[%s5109_s25 + $0x10] ss:$8 sps:$4 sm:$0xff]   ;;  %v4511_v56 = vld [vmem:[%s5109_s25 + $0x4] ss:$8 sps:$4 sm:$0xff]   ;;  %v4513_v57 = vld [vmem:[%s5109_s25] ss:$8 sps:$4 sm:$0xff]  }
 0x15b   : > { %1172 = vmatprep.subr.bf16.mxu0 %v4505_v52  ;;  %v1089_v58 = vld [vmem:[#allocation2] sm:$0xff]  ;;  %v1091_v61 = vld [vmem:[#allocation2 + $0x10] sm:$0xff]  ;;  %v1106_v1 = vshrl.u32 %v1105_v0, 7  ;;  %vm1239_vm6 = vcmask 1043456   ;;  %vm1240_vm7 = vcmask 523268   ;;  %v4846_v13 = vmov 0.0  }
 0x15c   : > { %v1092_v62 = vld [vmem:[#allocation2 + $0x18] sm:$0xff]  ;;  %v1103_v4 = vld [vmem:[%s5114_s19] sm:$0x3]  ;;  %vm5217_vm8 = vmor %vm1240_vm7, %vm1239_vm6  ;;  %4169 = vmatprep.subr.bf16.mxu1 %v4846_v13  ;;  %vm4847_vm9 = vmmov 0   ;;  %s4848_s25 = smov 64   ;;  %vm1259_vm10 = vcmask 130048  }
 0x15d   : > { %v1094_v63 = vpack.c.bf16 %v1092_v62, %v1091_v61  ;;  %v1107_v2 = vsub.s32 0, %v1106_v1  ;;  %v1111_v3 = vsub.s32 1, %v1106_v1  ;;  %4171 = vmatprep.mubr.msk.bf16.mxu1 %vm4847_vm9, %v4846_v13  ;;  %vm1459_vm11 = vcmask 64512   ;;  %s4849_s19 = smov 48   ;;  %s4850_s23 = smov 112  }
 0x15e   : > { %1173 = vmatpush1.bf16.msra.mxu0 %v4507_v53  ;;  %v1090_v59 = vld [vmem:[#allocation2 + $0x8] sm:$0xff]  ;;  %s4851_s9 = smov 32   ;;  %s4852_s17 = smov 96   ;;  %vm2184_vm12 = vcmask 261248   ;;  %vm2677_vm13 = vcmask 392448   ;;  %vm3170_vm14 = vcmask 523648  }
 0x15f   : > { %1174 = vmatprep.subr.bf16.mxu0 %v4508_v54  ;;  %v1093_v60 = vpack.c.bf16 %v1090_v59, %v1089_v58  ;;  %v1108_v5 = vrot.slane %v1103_v4, %v1107_v2  ;;  %v1112_v6 = vrot.slane %v1103_v4, %v1111_v3  ;;  %s4853_s30 = smov 16   ;;  %s4854_s27 = smov 80  }
 0x160   : > { %p4046_p12 = scmp.ne.s32.totalorder %s4828_s7, 1 }
 0x162   : > { %1175 = vmatpush1.bf16.msra.mxu0 %v4510_v55 }
 0x163   : > { %1176 = vmatprep.subr.bf16.mxu0 %v4511_v56 }
 0x166   : > { %1177 = vmatpush1.bf16.msra.mxu0 %v4513_v57 }
 0x167   : > { %4163 = vmatprep.subr.bf16.mxu0 %v4846_v13 }
 0x169   : > { %3953 = vmatmul.mubr.msk.bf16.vlgmr.msra.gmra.mxu0 %vm1155_vm5, %v1093_v60 }
 0x16a   : > { %1204 = vmatprep.mubr.bf16.mxu0 %v4845_v51 }
 0x171   : > { %3954 = vmatmul.mubr.msk.bf16.gmra.mxu0 %vm1155_vm5, %v1094_v63 }
 0x172   : > { %4165 = vmatprep.mubr.msk.bf16.mxu0 %vm4847_vm9, %v4846_v13 }
 0x229   : > { %v1196_v7 = vpop.f32.mrf.mxu0 }
 0x22a   : > { %v1197_v9 = vadd.f32 %v1196_v7, %v1108_v5 }
 0x22b   : > { %v1198_v8 = vpop.f32.mrf.mxu0 }
 0x22c   : > { %v1199_v10 = vadd.f32 %v1198_v8, %v1112_v6 }
 0x22d   : > { %v1200_v12 = vpop.f32.mrf.mxu0 }
 0x22e   : > { %v4055_v14 = vpack.c.bf16 %v1199_v10, %v1197_v9  ;;  %v1201_v16 = vadd.f32 %v1200_v12, %v1108_v5 }
 0x22f   : > { %v1202_v15 = vpop.f32.mrf.mxu0 }
 0x230   : > { %1242 = vst.msk [vmem:[#allocation4] sm:$0xff] %vm5217_vm8, %v4055_v14  ;;  %v1203_v17 = vadd.f32 %v1202_v15, %v1112_v6 }
 0x231   : > { %v1206_v18 = vpop.f32.mrf.mxu0 }
 0x232   : > { %v4056_v19 = vpack.c.bf16 %v1203_v17, %v1201_v16  ;;  %v1207_v20 = vadd.f32 %v1206_v18, %v1108_v5 }
 0x233   : > { %v1208_v21 = vpop.f32.mrf.mxu0 }
 0x234   : > { %1243 = vst.msk [vmem:[#allocation4 + $0x8] sm:$0xff] %vm5217_vm8, %v4056_v19  ;;  %v1209_v22 = vadd.f32 %v1208_v21, %v1112_v6 }
 0x235   : > { %v1210_v23 = vpop.f32.mrf.mxu0 }
 0x236   : > { %v4057_v24 = vpack.c.bf16 %v1209_v22, %v1207_v20  ;;  %v1211_v25 = vadd.f32 %v1210_v23, %v1108_v5 }
 0x237   : > { %v1212_v26 = vpop.f32.mrf.mxu0  ;;  %v1246_v27 = vld [vmem:[#allocation4] sm:$0xf]  ;;  %v1250_v45 = vld [vmem:[#allocation4 + $0x4] sm:$0xf] }
 0x238   : > { %1244 = vst.msk [vmem:[#allocation4 + $0x10] sm:$0xff] %vm5217_vm8, %v4057_v24  ;;  %v1213_v28 = vadd.f32 %v1212_v26, %v1112_v6  ;;  %v3959_v29 = vcombine.low %v1246_v27, %v1246_v27  ;;  %v1512_v47 = vsel %vm1239_vm6, %v1250_v45, 0  ;;  %v4518_v22 = vld [vmem:[#allocation4] ss:$0 sps:$4 sm:$0xff]  }
 0x23a   : > { %v4058_v30 = vpack.c.bf16 %v1213_v28, %v1211_v25  ;;  %1257 = vrot.lane.b32.xlu0 %v3959_v29, %s4848_s25 }
 0x23b   : > { %v1247_v31 = vld [vmem:[#allocation4 + $0x8] sm:$0xf]  ;;  %v1251_v46 = vld [vmem:[#allocation4 + $0xc] sm:$0xf] }
 0x23c   : > { %1245 = vst.msk [vmem:[#allocation4 + $0x18] sm:$0xff] %vm5217_vm8, %v4058_v30  ;;  %v3961_v32 = vcombine.low %v1247_v31, %v1247_v31  ;;  %v1558_v48 = vsel %vm1239_vm6, %v1251_v46, 0  ;;  %v4519_v25 = vld [vmem:[#allocation4 + $0x8] ss:$0 sps:$4 sm:$0xff]  }
 0x23e   : > { %1309 = vrot.lane.b32.xlu0 %v3961_v32, %s4848_s25 }
 0x23f   : > { %v1248_v33 = vld [vmem:[#allocation4 + $0x10] sm:$0xf] }
 0x240   : > { %v3963_v34 = vcombine.low %v1248_v33, %v1248_v33  ;;  %v4520_v26 = vld [vmem:[#allocation4 + $0x10] ss:$0 sps:$4 sm:$0xff]  }
 0x242   : > { %1360 = vrot.lane.b32.xlu1 %v3963_v34, %s4848_s25 }
 0x243   : > { %v1249_v35 = vld [vmem:[#allocation4 + $0x18] sm:$0xf] }
 0x244   : > { %v3965_v36 = vcombine.low %v1249_v35, %v1249_v35  ;;  %v4521_v29 = vld [vmem:[#allocation4 + $0x18] ss:$0 sps:$4 sm:$0xff]  }
 0x246   : > { %1411 = vrot.lane.b32.xlu1 %v3965_v36, %s4848_s25 }
 0x2ac   : > { %v1258_v37 = vpop.permute.xlu0 %1257 }
 0x2ad   : > { %v1264_v38 = vsel %vm1259_vm10, %v1258_v37, 0 }
 0x2ae   : > { %4164 = vmatpush3.bf16.xpose.msra.mxu0 %v1264_v38 }
 0x2af   : > { %4181 = vmatprep.subr.bf16.mxu0 %v4846_v13 }
 0x2b0   : > { %v1310_v39 = vpop.permute.xlu0 %1309 }
 0x2b1   : > { %v1315_v40 = vsel %vm1259_vm10, %v1310_v39, 0 }
 0x2b2   : > { %4170 = vmatpush3.bf16.xpose.msra.mxu1 %v1315_v40  ;;  %v1253_v40 = vld [vmem:[#allocation4 + $0x1c] sm:$0xf] }
 0x2b3   : > { %4175 = vmatprep.subr.bf16.mxu1 %v4846_v13 }
 0x2b4   : > { %v1361_v41 = vpop.permute.xlu1 %1360 }
 0x2b5   : > { %4166 = vmatmul.mubr.msk.bf16.vlgmr.msra.gmra.mxu0 %vm1259_vm10, %v1246_v27  ;;  %v1366_v42 = vsel %vm1259_vm10, %v1361_v41, 0 }
 0x2b6   : > { %4183 = vmatprep.mubr.msk.bf16.mxu0 %vm4847_vm9, %v4846_v13 }
 0x2b8   : > { %v1412_v43 = vpop.permute.xlu1 %1411 }
 0x2b9   : > { %v1417_v44 = vsel %vm1259_vm10, %v1412_v43, 0  ;;  %4172 = vmatmul.mubr.msk.bf16.vlgmr.msra.gmra.mxu1 %vm1259_vm10, %v1247_v31 }
 0x2ba   : > { %4176 = vmatpush3.bf16.xpose.msra.mxu1 %v1366_v42  ;;  %4182 = vmatpush3.bf16.xpose.msra.mxu0 %v1417_v44  ;;  %v1650_v42 = vsel %vm1239_vm6, %v1253_v40, 0 }
 0x2bb   : > { %4177 = vmatprep.mubr.msk.bf16.mxu1 %vm4847_vm9, %v4846_v13  ;;  %4187 = vmatprep.subr.bf16.mxu1 %v4846_v13 }
 0x2bc   : > { %4193 = vmatprep.subr.bf16.mxu0 %v4846_v13 }
 0x2c1   : > { %4178 = vmatmul.mubr.msk.bf16.vlgmr.msra.gmra.mxu1 %vm1259_vm10, %v1248_v33  ;;  %4184 = vmatmul.mubr.msk.bf16.vlgmr.msra.gmra.mxu0 %vm1259_vm10, %v1249_v35  ;;  %v1252_v35 = vld [vmem:[#allocation4 + $0x14] sm:$0xf] }
 0x2c2   : > { %4188 = vmatpush3.bf16.msra.mxu1 %v1512_v47  ;;  %4194 = vmatpush3.bf16.msra.mxu0 %v1558_v48  ;;  %v1604_v38 = vsel %vm1239_vm6, %v1252_v35, 0 }
 0x2c3   : > { %4189 = vmatprep.mubr.msk.bf16.mxu1 %vm4847_vm9, %v4846_v13  ;;  %4199 = vmatprep.subr.bf16.mxu1 %v4846_v13 }
 0x2c4   : > { %4195 = vmatprep.mubr.msk.bf16.mxu0 %vm4847_vm9, %v4846_v13  ;;  %4205 = vmatprep.subr.bf16.mxu0 %v4846_v13 }
 0x375   : > { %v1300_v49 = vpop.f32.mrf.mxu0 }
 0x376   : > { %v1460_v50 = vsel %vm1459_vm11, %v1300_v49, -inf }
 0x377   : > { %1461 = vmax.xlane.f32.xlu0 %v1460_v50  ;;  %v4167_v51 = vpop.f32.mrf.mxu0 }
 0x379   : > { %v1303_v52 = vpop.f32.mrf.mxu0  ;;  %v1351_v53 = vpop.f32.mrf.mxu1 }
 0x37a   : > { %v1463_v54 = vsel %vm1459_vm11, %v1351_v53, -inf }
 0x37b   : > { %v4168_v55 = vpop.f32.mrf.mxu0  ;;  %1464 = vmax.xlane.f32.xlu1 %v1463_v54  ;;  %v4173_v56 = vpop.f32.mrf.mxu1 }
 0x37d   : > { %v1354_v57 = vpop.f32.mrf.mxu1 }
 0x37f   : > { %v4174_v58 = vpop.f32.mrf.mxu1 }
 0x381   : > { %v1402_v59 = vpop.f32.mrf.mxu1  ;;  %v1453_v60 = vpop.f32.mrf.mxu0 }
 0x382   : > { %v1466_v61 = vsel %vm1459_vm11, %v1402_v59, -inf  ;;  %v1469_v2 = vsel %vm1459_vm11, %v1453_v60, -inf }
 0x383   : > { %v4185_v62 = vpop.f32.mrf.mxu0  ;;  %1467 = vmax.xlane.f32.xlu0 %v1466_v61  ;;  %v4179_v63 = vpop.f32.mrf.mxu1 }
 0x385   : > { %v1405_v0 = vpop.f32.mrf.mxu1  ;;  %v1456_v1 = vpop.f32.mrf.mxu0 }
 0x387   : > { %v4186_v3 = vpop.f32.mrf.mxu0  ;;  %1470 = vmax.xlane.f32.xlu0 %v1469_v2  ;;  %v4180_v4 = vpop.f32.mrf.mxu1 }
 0x400   : > { %v1462_v5 = vpop.xlane.xlu0 %1461 }
 0x401   : > { %v1472_v6 = vsub.f32 %v1300_v49, %v1462_v5 }
 0x403   : > { %v1476_v7 = vmul.f32 1.442695, %v1472_v6 }
 0x404   : > { %v1465_v8 = vpop.xlane.xlu1 %1464 }
 0x405   : > { %4558 = vpow2.f32 %v1476_v7  ;;  %v1473_v9 = vsub.f32 %v1351_v53, %v1465_v8 }
 0x407   : > { %v1478_v10 = vmul.f32 1.442695, %v1473_v9 }
 0x409   : > { %4560 = vpow2.f32 %v1478_v10 }
 0x40c   : > { %v1468_v11 = vpop.xlane.xlu0 %1467 }
 0x40d   : > { %v1474_v23 = vsub.f32 %v1402_v59, %v1468_v11 }
 0x40f   : > { %v1480_v24 = vmul.f32 1.442695, %v1474_v23  ;;  %v4522_v23 = vld [vmem:[#allocation4 + $0x4] ss:$0 sps:$4 sm:$0xff]  }
 0x410   : > { %v1471_v12 = vpop.xlane.xlu0 %1470 }
 0x411   : > { %v1475_v14 = vsub.f32 %v1453_v60, %v1471_v12 }
 0x412   : > { %v4559_v15 = vpop.eup %4558 }
 0x413   : > { %v1482_v16 = vmul.f32 1.442695, %v1475_v14  ;;  %v1484_v17 = vsel %vm1459_vm11, %v4559_v15, 0.0 }
 0x414   : > { %1485 = vadd.xlane.f32.xlu1 %v1484_v17 }
 0x415   : > { %4562 = vpow2.f32 %v1482_v16 }
 0x416   : > { %v4561_v18 = vpop.eup %4560  ;;  %4564 = vpow2.f32 %v1480_v24 }
 0x417   : > { %v1487_v19 = vsel %vm1459_vm11, %v4561_v18, 0.0 }
 0x418   : > { %1488 = vadd.xlane.f32.xlu0 %v1487_v19 }
 0x422   : > { %v4563_v20 = vpop.eup %4562 }
 0x423   : > { %v1493_v21 = vsel %vm1459_vm11, %v4563_v20, 0.0  ;;  %v4565_v27 = vpop.eup %4564 }
 0x424   : > { %1494 = vadd.xlane.f32.xlu0 %v1493_v21  ;;  %v1490_v28 = vsel %vm1459_vm11, %v4565_v27, 0.0 }
 0x425   : > { %1709 = vrot.lane.b32.xlu1 %v4518_v22, %s4849_s19 }
 0x43a   : > { %1762 = vrot.lane.b32.xlu0 %v4519_v25, %s4849_s19 }
 0x43e   : > { %1815 = vrot.lane.b32.xlu0 %v4520_v26, %s4849_s19 }
 0x442   : > { %1813 = vrot.lane.b32.xlu0 %v4520_v26, %s4850_s23 }
 0x449   : > { %1491 = vadd.xlane.f32.xlu1 %v1490_v28 }
 0x45a   : > { %1707 = vrot.lane.b32.xlu1 %v4518_v22, %s4850_s23 }
 0x45e   : > { %1760 = vrot.lane.b32.xlu1 %v4519_v25, %s4850_s23 }
 0x462   : > { %1868 = vrot.lane.b32.xlu1 %v4521_v29, %s4849_s19 }
 0x466   : > { %1866 = vrot.lane.b32.xlu1 %v4521_v29, %s4850_s23 }
 0x49d   : > { %v1486_v30 = vpop.xlane.xlu1 %1485 }
 0x49e   : > { %4566 = vrcp.f32 %v1486_v30 }
 0x4a1   : > { %v1489_v31 = vpop.xlane.xlu0 %1488  ;;  %v1710_v48 = vpop.permute.xlu1 %1709 }
 0x4a2   : > { %4568 = vrcp.f32 %v1489_v31  ;;  %v1715_v57 = vsel %vm1259_vm10, %v1710_v48, 0 }
 0x4ab   : > { %v4567_v32 = vpop.eup %4566 }
 0x4ac   : > { %v1500_v33 = vmul.f32 %v4567_v32, %v4559_v15 }
 0x4ad   : > { %v1495_v34 = vpop.xlane.xlu0 %1494 }
 0x4ae   : > { %4570 = vrcp.f32 %v1495_v34  ;;  %v1504_v36 = vpack.c.bf16 %v1500_v33, %v1500_v33 }
 0x4af   : > { %v4569_v37 = vpop.eup %4568 }
 0x4b0   : > { %4190 = vmatmul.mubr.msk.bf16.vlgmr.msra.gmra.mxu1 %vm1459_vm11, %v1504_v36  ;;  %v1501_v39 = vmul.f32 %v4569_v37, %v4561_v18 }
 0x4b1   : > { %4200 = vmatpush3.bf16.msra.mxu1 %v1604_v38  ;;  %4201 = vmatprep.mubr.msk.bf16.mxu1 %vm4847_vm9, %v4846_v13  ;;  %v1763_v45 = vpop.permute.xlu0 %1762 }
 0x4b2   : > { %v1505_v41 = vpack.c.bf16 %v1501_v39, %v1501_v39  ;;  %4211 = vmatprep.subr.bf16.mxu1 %v4846_v13  ;;  %v1768_v47 = vsel %vm1259_vm10, %v1763_v45, 0 }
 0x4b4   : > { %4196 = vmatmul.mubr.msk.bf16.vlgmr.msra.gmra.mxu0 %vm1459_vm11, %v1505_v41 }
 0x4b5   : > { %4206 = vmatpush3.bf16.msra.mxu0 %v1650_v42  ;;  %4207 = vmatprep.mubr.msk.bf16.mxu0 %vm4847_vm9, %v4846_v13  ;;  %v1816_v59 = vpop.permute.xlu0 %1815 }
 0x4b6   : > { %4217 = vmatprep.subr.bf16.mxu0 %v4846_v13  ;;  %v1821_v60 = vsel %vm1259_vm10, %v1816_v59, 0 }
 0x4b9   : > { %v1814_v61 = vpop.permute.xlu0 %1813 }
 0x4bb   : > { %v4571_v43 = vpop.eup %4570 }
 0x4bc   : > { %v1503_v44 = vmul.f32 %v4571_v43, %v4563_v20 }
 0x4be   : > { %v1507_v46 = vpack.c.bf16 %v1503_v44, %v1503_v44 }
 0x4c0   : > { %4208 = vmatmul.mubr.msk.bf16.vlgmr.msra.gmra.mxu0 %vm1459_vm11, %v1507_v46 }
 0x4c1   : > { %4218 = vmatpush3.bf16.xpose.msra.mxu0 %v1768_v47  ;;  %4219 = vmatprep.mubr.msk.bf16.mxu0 %vm4847_vm9, %v4846_v13 }
 0x4c2   : > { %4229 = vmatprep.subr.bf16.mxu0 %v4846_v13 }
 0x4d2   : > { %v1492_v49 = vpop.xlane.xlu1 %1491 }
 0x4d3   : > { %4572 = vrcp.f32 %v1492_v49  ;;  %v4523_v49 = vld [vmem:[#allocation4 + $0xc] ss:$0 sps:$4 sm:$0xff]  }
 0x4d6   : > { %v1708_v50 = vpop.permute.xlu1 %1707 }
 0x4da   : > { %v1761_v51 = vpop.permute.xlu1 %1760 }
 0x4db   : > { %4220 = vmatmul.mubr.msk.bf16.vlgmr.msra.gmra.mxu0 %vm1259_vm10, %v1761_v51 }
 0x4dc   : > { %4231 = vmatprep.mubr.msk.bf16.mxu0 %vm4847_vm9, %v4846_v13 }
 0x4de   : > { %v1869_v52 = vpop.permute.xlu1 %1868 }
 0x4df   : > { %v1874_v53 = vsel %vm1259_vm10, %v1869_v52, 0 }
 0x4e0   : > { %v4573_v54 = vpop.eup %4572  ;;  %4230 = vmatpush3.bf16.xpose.msra.mxu0 %v1874_v53  ;;  %v4524_v53 = vld [vmem:[#allocation4 + $0x14] ss:$0 sps:$4 sm:$0xff]  }
 0x4e1   : > { %v1502_v55 = vmul.f32 %v4573_v54, %v4565_v27  ;;  %4241 = vmatprep.subr.bf16.mxu0 %v4846_v13  ;;  %v4525_v54 = vld [vmem:[#allocation4 + $0x1c] ss:$0 sps:$4 sm:$0xff]  }
 0x4e2   : > { %v1867_v58 = vpop.permute.xlu1 %1866 }
 0x4e3   : > { %v1506_v56 = vpack.c.bf16 %v1502_v55, %v1502_v55 }
 0x4e5   : > { %4202 = vmatmul.mubr.msk.bf16.vlgmr.msra.gmra.mxu1 %vm1459_vm11, %v1506_v56 }
 0x4e6   : > { %4212 = vmatpush3.bf16.xpose.msra.mxu1 %v1715_v57  ;;  %4213 = vmatprep.mubr.msk.bf16.mxu1 %vm4847_vm9, %v4846_v13 }
 0x4e7   : > { %4232 = vmatmul.mubr.msk.bf16.vlgmr.msra.gmra.mxu0 %vm1259_vm10, %v1867_v58  ;;  %4223 = vmatprep.subr.bf16.mxu1 %v4846_v13 }
 0x4e8   : > { %4243 = vmatprep.mubr.msk.bf16.mxu0 %vm4847_vm9, %v4846_v13 }
 0x4ed   : > { %4214 = vmatmul.mubr.msk.bf16.vlgmr.msra.gmra.mxu1 %vm1259_vm10, %v1708_v50 }
 0x4ee   : > { %4224 = vmatpush3.bf16.xpose.msra.mxu1 %v1821_v60  ;;  %4225 = vmatprep.mubr.msk.bf16.mxu1 %vm4847_vm9, %v4846_v13  ;;  %v4526_v60 = vld [vmem:[#allocation4] ss:$0 sps:$4 sm:$0xff]  }
 0x4ef   : > { %4235 = vmatprep.subr.bf16.mxu1 %v4846_v13 }
 0x4f5   : > { %4226 = vmatmul.mubr.msk.bf16.vlgmr.msra.gmra.mxu1 %vm1259_vm10, %v1814_v61 }
 0x4f6   : > { %4237 = vmatprep.mubr.msk.bf16.mxu1 %vm4847_vm9, %v4846_v13 }
 0x570   : > { %v1548_v62 = vpop.f32.mrf.mxu1 }
 0x571   : > { %1692 = vst.msk [vmem:[#allocation3] sm:$0xff] %vm1259_vm10, %v1548_v62  ;;  %v4527_v62 = vld [vmem:[#allocation4 + $0x10] ss:$0 sps:$4 sm:$0xff]  }
 0x572   : > { %v4191_v63 = vpop.f32.mrf.mxu1 }
 0x573   : > { %v4528_v63 = vld [vmem:[#allocation4 + $0x8] ss:$0 sps:$4 sm:$0xff]  }
 0x574   : > { %v1551_v0 = vpop.f32.mrf.mxu1  ;;  %v1594_v1 = vpop.f32.mrf.mxu0 }
 0x575   : > { %1693 = vst.msk [vmem:[#allocation3 + $0x8] sm:$0xff] %vm1259_vm10, %v1594_v1  ;;  %v4529_v0 = vld [vmem:[#allocation4 + $0x18] ss:$0 sps:$4 sm:$0xff]  }
 0x576   : > { %v4192_v2 = vpop.f32.mrf.mxu1  ;;  %v4197_v3 = vpop.f32.mrf.mxu0 }
 0x578   : > { %v1597_v4 = vpop.f32.mrf.mxu0 }
 0x57a   : > { %v4198_v5 = vpop.f32.mrf.mxu0 }
 0x580   : > { %v1686_v6 = vpop.f32.mrf.mxu0 }
 0x581   : > { %1695 = vst.msk [vmem:[#allocation3 + $0x18] sm:$0xff] %vm1259_vm10, %v1686_v6 }
 0x582   : > { %v4209_v7 = vpop.f32.mrf.mxu0 }
 0x584   : > { %v1689_v8 = vpop.f32.mrf.mxu0 }
 0x586   : > { %v4210_v9 = vpop.f32.mrf.mxu0 }
 0x59b   : > { %v1804_v10 = vpop.f32.mrf.mxu0 }
 0x59c   : > { %v1919_v11 = vsel %vm1459_vm11, %v1804_v10, -inf }
 0x59d   : > { %1920 = vmax.xlane.f32.xlu1 %v1919_v11  ;;  %v4221_v12 = vpop.f32.mrf.mxu0 }
 0x59f   : > { %v1807_v14 = vpop.f32.mrf.mxu0 }
 0x5a1   : > { %v4222_v15 = vpop.f32.mrf.mxu0 }
 0x5a5   : > { %v1640_v16 = vpop.f32.mrf.mxu1 }
 0x5a6   : > { %1694 = vst.msk [vmem:[#allocation3 + $0x10] sm:$0xff] %vm1259_vm10, %v1640_v16 }
 0x5a7   : > { %v4203_v17 = vpop.f32.mrf.mxu1  ;;  %v1910_v18 = vpop.f32.mrf.mxu0 }
 0x5a8   : > { %v1925_v34 = vsel %vm1459_vm11, %v1910_v18, -inf }
 0x5a9   : > { %v1643_v19 = vpop.f32.mrf.mxu1  ;;  %v4233_v20 = vpop.f32.mrf.mxu0 }
 0x5ab   : > { %v4204_v21 = vpop.f32.mrf.mxu1  ;;  %v1913_v22 = vpop.f32.mrf.mxu0 }
 0x5ad   : > { %v1751_v24 = vpop.f32.mrf.mxu1  ;;  %v4234_v25 = vpop.f32.mrf.mxu0 }
 0x5ae   : > { %1967 = vrot.lane.b32.xlu1 %v4522_v23, %s4850_s23  ;;  %v1916_v26 = vsel %vm1459_vm11, %v1751_v24, -inf }
 0x5af   : > { %v4215_v27 = vpop.f32.mrf.mxu1  ;;  %1917 = vmax.xlane.f32.xlu0 %v1916_v26 }
 0x5b1   : > { %v1754_v28 = vpop.f32.mrf.mxu1 }
 0x5b3   : > { %v4216_v29 = vpop.f32.mrf.mxu1 }
 0x5b5   : > { %v1857_v30 = vpop.f32.mrf.mxu1 }
 0x5b6   : > { %v1922_v31 = vsel %vm1459_vm11, %v1857_v30, -inf }
 0x5b7   : > { %1923 = vmax.xlane.f32.xlu0 %v1922_v31  ;;  %v4227_v32 = vpop.f32.mrf.mxu1 }
 0x5b9   : > { %v1860_v33 = vpop.f32.mrf.mxu1 }
 0x5bb   : > { %1926 = vmax.xlane.f32.xlu0 %v1925_v34  ;;  %v4228_v35 = vpop.f32.mrf.mxu1 }
 0x626   : > { %v1921_v36 = vpop.xlane.xlu1 %1920 }
 0x627   : > { %v1929_v37 = vsub.f32 %v1804_v10, %v1921_v36 }
 0x629   : > { %v1934_v38 = vmul.f32 1.442695, %v1929_v37 }
 0x62a   : > { %v1968_v39 = vpop.permute.xlu1 %1967 }
 0x62b   : > { %4574 = vpow2.f32 %v1934_v38  ;;  %v1973_v40 = vsel %vm1239_vm6, %v1968_v39, 0 }
 0x62c   : > { %4236 = vmatpush3.bf16.msra.mxu1 %v1973_v40 }
 0x62d   : > { %4247 = vmatprep.subr.bf16.mxu1 %v4846_v13 }
 0x638   : > { %v4575_v41 = vpop.eup %4574  ;;  %v1918_v42 = vpop.xlane.xlu0 %1917 }
 0x639   : > { %v1928_v43 = vsub.f32 %v1751_v24, %v1918_v42  ;;  %v1943_v44 = vsel %vm1459_vm11, %v4575_v41, 0.0 }
 0x63a   : > { %1944 = vadd.xlane.f32.xlu0 %v1943_v44 }
 0x63b   : > { %v1932_v45 = vmul.f32 1.442695, %v1928_v43 }
 0x63d   : > { %4576 = vpow2.f32 %v1932_v45 }
 0x640   : > { %v1924_v48 = vpop.xlane.xlu0 %1923 }
 0x641   : > { %v1930_v56 = vsub.f32 %v1857_v30, %v1924_v48 }
 0x643   : > { %v1936_v58 = vmul.f32 1.442695, %v1930_v56 }
 0x644   : > { %v1927_v50 = vpop.xlane.xlu0 %1926 }
 0x645   : > { %v1931_v51 = vsub.f32 %v1910_v18, %v1927_v50 }
 0x647   : > { %v1938_v52 = vmul.f32 1.442695, %v1931_v51 }
 0x649   : > { %4578 = vpow2.f32 %v1938_v52 }
 0x64a   : > { %v4577_v46 = vpop.eup %4576  ;;  %4580 = vpow2.f32 %v1936_v58 }
 0x64b   : > { %v1940_v47 = vsel %vm1459_vm11, %v4577_v46, 0.0 }
 0x64c   : > { %1941 = vadd.xlane.f32.xlu1 %v1940_v47 }
 0x650   : > { %2018 = vrot.lane.b32.xlu0 %v4523_v49, %s4850_s23 }
 0x656   : > { %v4579_v55 = vpop.eup %4578 }
 0x657   : > { %v1949_v57 = vsel %vm1459_vm11, %v4579_v55, 0.0  ;;  %v5332_v59 = vpop.eup %4580 }
 0x658   : > { %v1946_v61 = vsel %vm1459_vm11, %v5332_v59, 0.0 }
 0x65d   : > { %2069 = vrot.lane.b32.xlu1 %v4524_v53, %s4850_s23 }
 0x661   : > { %2120 = vrot.lane.b32.xlu1 %v4525_v54, %s4850_s23 }
 0x66f   : > { %1950 = vadd.xlane.f32.xlu0 %v1949_v57 }
 0x685   : > { %1947 = vadd.xlane.f32.xlu1 %v1946_v61  ;;  %2202 = vrot.lane.b32.xlu0 %v4526_v60, %s4851_s9 }
 0x689   : > { %2200 = vrot.lane.b32.xlu0 %v4526_v60, %s4852_s17 }
 0x68d   : > { %2308 = vrot.lane.b32.xlu0 %v4527_v62, %s4851_s9 }
 0x691   : > { %2306 = vrot.lane.b32.xlu0 %v4527_v62, %s4852_s17 }
 0x696   : > { %2255 = vrot.lane.b32.xlu1 %v4528_v63, %s4851_s9 }
 0x69a   : > { %2253 = vrot.lane.b32.xlu1 %v4528_v63, %s4852_s17 }
 0x69e   : > { %2361 = vrot.lane.b32.xlu1 %v4529_v0, %s4851_s9 }
 0x6a2   : > { %2359 = vrot.lane.b32.xlu1 %v4529_v0, %s4852_s17  ;;  %v4530_v0 = vld [vmem:[#allocation4 + $0x4] ss:$0 sps:$4 sm:$0xff]  }
 0x6c3   : > { %v1945_v1 = vpop.xlane.xlu0 %1944 }
 0x6c4   : > { %4582 = vrcp.f32 %v1945_v1 }
 0x6c7   : > { %v2019_v2 = vpop.permute.xlu0 %2018 }
 0x6c8   : > { %v2024_v3 = vsel %vm1239_vm6, %v2019_v2, 0 }
 0x6c9   : > { %4242 = vmatpush3.bf16.msra.mxu0 %v2024_v3 }
 0x6ca   : > { %4253 = vmatprep.subr.bf16.mxu0 %v4846_v13 }
 0x6d1   : > { %v4583_v4 = vpop.eup %4582 }
 0x6d2   : > { %v1957_v5 = vmul.f32 %v4583_v4, %v4575_v41 }
 0x6d4   : > { %v1961_v6 = vpack.c.bf16 %v1957_v5, %v1957_v5 }
 0x6d5   : > { %v1942_v7 = vpop.xlane.xlu1 %1941 }
 0x6d6   : > { %4584 = vrcp.f32 %v1942_v7  ;;  %4244 = vmatmul.mubr.msk.bf16.vlgmr.msra.gmra.mxu0 %vm1459_vm11, %v1961_v6 }
 0x6d7   : > { %4255 = vmatprep.mubr.msk.bf16.mxu0 %vm4847_vm9, %v4846_v13 }
 0x6d9   : > { %v2070_v8 = vpop.permute.xlu1 %2069 }
 0x6da   : > { %v2075_v15 = vsel %vm1239_vm6, %v2070_v8, 0 }
 0x6dd   : > { %v2121_v9 = vpop.permute.xlu1 %2120 }
 0x6de   : > { %v2126_v10 = vsel %vm1239_vm6, %v2121_v9, 0 }
 0x6df   : > { %4254 = vmatpush3.bf16.msra.mxu0 %v2126_v10 }
 0x6e0   : > { %4265 = vmatprep.subr.bf16.mxu0 %v4846_v13 }
 0x6e3   : > { %v4585_v11 = vpop.eup %4584 }
 0x6e4   : > { %v1956_v12 = vmul.f32 %v4585_v11, %v4577_v46 }
 0x6e6   : > { %v1960_v14 = vpack.c.bf16 %v1956_v12, %v1956_v12 }
 0x6e8   : > { %4238 = vmatmul.mubr.msk.bf16.vlgmr.msra.gmra.mxu1 %vm1459_vm11, %v1960_v14 }
 0x6e9   : > { %4248 = vmatpush3.bf16.msra.mxu1 %v2075_v15  ;;  %4249 = vmatprep.mubr.msk.bf16.mxu1 %vm4847_vm9, %v4846_v13 }
 0x6ea   : > { %4259 = vmatprep.subr.bf16.mxu1 %v4846_v13 }
 0x6f8   : > { %v1951_v16 = vpop.xlane.xlu0 %1950 }
 0x6f9   : > { %4586 = vrcp.f32 %v1951_v16 }
 0x6fc   : > { %v2203_v24 = vpop.permute.xlu0 %2202 }
 0x6fd   : > { %v2208_v31 = vsel %vm1259_vm10, %v2203_v24, 0 }
 0x700   : > { %v2201_v30 = vpop.permute.xlu0 %2200 }
 0x704   : > { %v2309_v33 = vpop.permute.xlu0 %2308 }
 0x705   : > { %v2314_v34 = vsel %vm1259_vm10, %v2309_v33, 0 }
 0x706   : > { %v4587_v17 = vpop.eup %4586 }
 0x707   : > { %v1959_v18 = vmul.f32 %v4587_v17, %v4579_v55 }
 0x708   : > { %v2307_v35 = vpop.permute.xlu0 %2306 }
 0x709   : > { %v1963_v19 = vpack.c.bf16 %v1959_v18, %v1959_v18 }
 0x70b   : > { %4256 = vmatmul.mubr.msk.bf16.vlgmr.msra.gmra.mxu0 %vm1459_vm11, %v1963_v19 }
 0x70c   : > { %4267 = vmatprep.mubr.msk.bf16.mxu0 %vm4847_vm9, %v4846_v13 }
 0x70e   : > { %v1948_v20 = vpop.xlane.xlu1 %1947 }
 0x70f   : > { %4588 = vrcp.f32 %v1948_v20 }
 0x712   : > { %v2256_v21 = vpop.permute.xlu1 %2255 }
 0x713   : > { %v2261_v22 = vsel %vm1259_vm10, %v2256_v21, 0 }
 0x714   : > { %4266 = vmatpush3.bf16.xpose.msra.mxu0 %v2261_v22 }
 0x715   : > { %4277 = vmatprep.subr.bf16.mxu0 %v4846_v13 }
 0x716   : > { %v2254_v23 = vpop.permute.xlu1 %2253 }
 0x71a   : > { %v2362_v25 = vpop.permute.xlu1 %2361 }
 0x71b   : > { %v2367_v26 = vsel %vm1259_vm10, %v2362_v25, 0  ;;  %4268 = vmatmul.mubr.msk.bf16.vlgmr.msra.gmra.mxu0 %vm1259_vm10, %v2254_v23  ;;  %v4531_v23 = vld [vmem:[#allocation4 + $0xc] ss:$0 sps:$4 sm:$0xff]  }
 0x71c   : > { %v4589_v27 = vpop.eup %4588  ;;  %4278 = vmatpush3.bf16.xpose.msra.mxu0 %v2367_v26  ;;  %4279 = vmatprep.mubr.msk.bf16.mxu0 %vm4847_vm9, %v4846_v13  ;;  %v4532_v26 = vld [vmem:[#allocation4 + $0x14] ss:$0 sps:$4 sm:$0xff]  }
 0x71d   : > { %v1958_v28 = vmul.f32 %v4589_v27, %v5332_v59  ;;  %4289 = vmatprep.subr.bf16.mxu0 %v4846_v13 }
 0x71e   : > { %v2360_v32 = vpop.permute.xlu1 %2359 }
 0x71f   : > { %v1962_v29 = vpack.c.bf16 %v1958_v28, %v1958_v28  ;;  %v4533_v28 = vld [vmem:[#allocation4 + $0x1c] ss:$0 sps:$4 sm:$0xff]  }
 0x721   : > { %4250 = vmatmul.mubr.msk.bf16.vlgmr.msra.gmra.mxu1 %vm1459_vm11, %v1962_v29 }
 0x722   : > { %4260 = vmatpush3.bf16.xpose.msra.mxu1 %v2208_v31  ;;  %4261 = vmatprep.mubr.msk.bf16.mxu1 %vm4847_vm9, %v4846_v13 }
 0x723   : > { %4280 = vmatmul.mubr.msk.bf16.vlgmr.msra.gmra.mxu0 %vm1259_vm10, %v2360_v32  ;;  %4271 = vmatprep.subr.bf16.mxu1 %v4846_v13 }
 0x724   : > { %4291 = vmatprep.mubr.msk.bf16.mxu0 %vm4847_vm9, %v4846_v13 }
 0x729   : > { %4262 = vmatmul.mubr.msk.bf16.vlgmr.msra.gmra.mxu1 %vm1259_vm10, %v2201_v30 }
 0x72a   : > { %4272 = vmatpush3.bf16.xpose.msra.mxu1 %v2314_v34  ;;  %4273 = vmatprep.mubr.msk.bf16.mxu1 %vm4847_vm9, %v4846_v13 }
 0x72b   : > { %4283 = vmatprep.subr.bf16.mxu1 %v4846_v13 }
 0x731   : > { %4274 = vmatmul.mubr.msk.bf16.vlgmr.msra.gmra.mxu1 %vm1259_vm10, %v2307_v35  ;;  %v4534_v35 = vld [vmem:[#allocation4] ss:$0 sps:$4 sm:$0xff]  }
 0x732   : > { %4285 = vmatprep.mubr.msk.bf16.mxu1 %vm4847_vm9, %v4846_v13 }
 0x796   : > { %v5383_v36 = vpop.f32.mrf.mxu0 }
 0x798   : > { %v4245_v37 = vpop.f32.mrf.mxu0 }
 0x799   : > { %v4535_v37 = vld [vmem:[#allocation4 + $0x10] ss:$0 sps:$4 sm:$0xff]  }
 0x79a   : > { %v2063_v38 = vpop.f32.mrf.mxu0 }
 0x79b   : > { %v4536_v38 = vld [vmem:[#allocation4 + $0x8] ss:$0 sps:$4 sm:$0xff]  }
 0x79c   : > { %v4246_v39 = vpop.f32.mrf.mxu0 }
 0x79d   : > { %v4537_v39 = vld [vmem:[#allocation4 + $0x18] ss:$0 sps:$4 sm:$0xff]  }
 0x7a8   : > { %v5385_v40 = vpop.f32.mrf.mxu1 }
 0x7aa   : > { %v4239_v41 = vpop.f32.mrf.mxu1 }
 0x7ac   : > { %v2012_v42 = vpop.f32.mrf.mxu1 }
 0x7ae   : > { %v4240_v43 = vpop.f32.mrf.mxu1 }
 0x7cb   : > { %v5387_v44 = vpop.f32.mrf.mxu0 }
 0x7cd   : > { %v4257_v45 = vpop.f32.mrf.mxu0 }
 0x7cf   : > { %v2165_v46 = vpop.f32.mrf.mxu0 }
 0x7d1   : > { %v4258_v47 = vpop.f32.mrf.mxu0 }
 0x7db   : > { %v2297_v48 = vpop.f32.mrf.mxu0 }
 0x7dc   : > { %v2412_v49 = vsel %vm1459_vm11, %v2297_v48, -inf }
 0x7dd   : > { %2413 = vmax.xlane.f32.xlu1 %v2412_v49  ;;  %v4269_v50 = vpop.f32.mrf.mxu0 }
 0x7df   : > { %v2300_v51 = vpop.f32.mrf.mxu0 }
 0x7e1   : > { %v5390_v52 = vpop.f32.mrf.mxu1  ;;  %v4270_v53 = vpop.f32.mrf.mxu0 }
 0x7e3   : > { %v4251_v54 = vpop.f32.mrf.mxu1  ;;  %v2403_v55 = vpop.f32.mrf.mxu0 }
 0x7e4   : > { %v2418_v7 = vsel %vm1459_vm11, %v2403_v55, -inf }
 0x7e5   : > { %v2114_v56 = vpop.f32.mrf.mxu1  ;;  %v4281_v57 = vpop.f32.mrf.mxu0 }
 0x7e7   : > { %v4252_v58 = vpop.f32.mrf.mxu1  ;;  %v2406_v59 = vpop.f32.mrf.mxu0 }
 0x7e9   : > { %v2244_v60 = vpop.f32.mrf.mxu1  ;;  %v4282_v61 = vpop.f32.mrf.mxu0 }
 0x7ea   : > { %v2409_v62 = vsel %vm1459_vm11, %v2244_v60, -inf }
 0x7eb   : > { %2410 = vmax.xlane.f32.xlu0 %v2409_v62  ;;  %v4263_v63 = vpop.f32.mrf.mxu1 }
 0x7ed   : > { %v2247_v1 = vpop.f32.mrf.mxu1 }
 0x7ee   : > { %2460 = vrot.lane.b32.xlu1 %v4530_v0, %s4852_s17 }
 0x7ef   : > { %v4264_v2 = vpop.f32.mrf.mxu1 }
 0x7f1   : > { %v2350_v3 = vpop.f32.mrf.mxu1 }
 0x7f2   : > { %v2415_v4 = vsel %vm1459_vm11, %v2350_v3, -inf }
 0x7f3   : > { %2416 = vmax.xlane.f32.xlu0 %v2415_v4  ;;  %v4275_v5 = vpop.f32.mrf.mxu1 }
 0x7f5   : > { %v2353_v6 = vpop.f32.mrf.mxu1 }
 0x7f7   : > { %2419 = vmax.xlane.f32.xlu0 %v2418_v7  ;;  %v4276_v8 = vpop.f32.mrf.mxu1 }
 0x866   : > { %v2414_v9 = vpop.xlane.xlu1 %2413 }
 0x867   : > { %v2422_v10 = vsub.f32 %v2297_v48, %v2414_v9 }
 0x869   : > { %v2427_v11 = vmul.f32 1.442695, %v2422_v10 }
 0x86a   : > { %v2461_v12 = vpop.permute.xlu1 %2460 }
 0x86b   : > { %4590 = vpow2.f32 %v2427_v11  ;;  %v2466_v14 = vsel %vm1239_vm6, %v2461_v12, 0 }
 0x86c   : > { %4284 = vmatpush3.bf16.msra.mxu1 %v2466_v14 }
 0x86d   : > { %4295 = vmatprep.subr.bf16.mxu1 %v4846_v13 }
 0x874   : > { %v2411_v15 = vpop.xlane.xlu0 %2410 }
 0x875   : > { %v2421_v16 = vsub.f32 %v2244_v60, %v2411_v15 }
 0x877   : > { %v2425_v17 = vmul.f32 1.442695, %v2421_v16 }
 0x878   : > { %v4591_v18 = vpop.eup %4590 }
 0x879   : > { %4592 = vpow2.f32 %v2425_v17  ;;  %v2436_v19 = vsel %vm1459_vm11, %v4591_v18, 0.0 }
 0x87a   : > { %2437 = vadd.xlane.f32.xlu0 %v2436_v19 }
 0x87c   : > { %v2417_v22 = vpop.xlane.xlu0 %2416 }
 0x87d   : > { %v2423_v29 = vsub.f32 %v2350_v3, %v2417_v22 }
 0x87f   : > { %v2429_v31 = vmul.f32 1.442695, %v2423_v29 }
 0x880   : > { %v2420_v24 = vpop.xlane.xlu0 %2419 }
 0x881   : > { %v2424_v25 = vsub.f32 %v2403_v55, %v2420_v24 }
 0x883   : > { %v2431_v27 = vmul.f32 1.442695, %v2424_v25 }
 0x885   : > { %4594 = vpow2.f32 %v2431_v27 }
 0x886   : > { %v4593_v20 = vpop.eup %4592  ;;  %4596 = vpow2.f32 %v2429_v31 }
 0x887   : > { %v2433_v21 = vsel %vm1459_vm11, %v4593_v20, 0.0 }
 0x888   : > { %2434 = vadd.xlane.f32.xlu1 %v2433_v21 }
 0x890   : > { %2511 = vrot.lane.b32.xlu0 %v4531_v23, %s4852_s17 }
 0x892   : > { %v4595_v30 = vpop.eup %4594 }
 0x893   : > { %v2442_v32 = vsel %vm1459_vm11, %v4595_v30, 0.0  ;;  %v5404_v33 = vpop.eup %4596 }
 0x894   : > { %v2439_v34 = vsel %vm1459_vm11, %v5404_v33, 0.0 }
 0x899   : > { %2562 = vrot.lane.b32.xlu1 %v4532_v26, %s4852_s17 }
 0x89d   : > { %2613 = vrot.lane.b32.xlu1 %v4533_v28, %s4852_s17 }
 0x8af   : > { %2443 = vadd.xlane.f32.xlu0 %v2442_v32 }
 0x8c1   : > { %2440 = vadd.xlane.f32.xlu1 %v2439_v34 }
 0x8c5   : > { %2695 = vrot.lane.b32.xlu0 %v4534_v35, %s4853_s30 }
 0x8c9   : > { %2693 = vrot.lane.b32.xlu0 %v4534_v35, %s4854_s27 }
 0x8cd   : > { %2801 = vrot.lane.b32.xlu0 %v4535_v37, %s4853_s30 }
 0x8d1   : > { %2799 = vrot.lane.b32.xlu0 %v4535_v37, %s4854_s27 }
 0x8d2   : > { %2748 = vrot.lane.b32.xlu1 %v4536_v38, %s4853_s30 }
 0x8d6   : > { %2746 = vrot.lane.b32.xlu1 %v4536_v38, %s4854_s27 }
 0x8da   : > { %2854 = vrot.lane.b32.xlu1 %v4537_v39, %s4853_s30 }
 0x8de   : > { %2852 = vrot.lane.b32.xlu1 %v4537_v39, %s4854_s27 }
 0x903   : > { %v2438_v41 = vpop.xlane.xlu0 %2437 }
 0x904   : > { %4598 = vrcp.f32 %v2438_v41 }
 0x907   : > { %v2512_v42 = vpop.permute.xlu0 %2511 }
 0x908   : > { %v2517_v43 = vsel %vm1239_vm6, %v2512_v42, 0 }
 0x909   : > { %4290 = vmatpush3.bf16.msra.mxu0 %v2517_v43 }
 0x90a   : > { %4301 = vmatprep.subr.bf16.mxu0 %v4846_v13 }
 0x911   : > { %v4599_v45 = vpop.eup %4598  ;;  %v2435_v46 = vpop.xlane.xlu1 %2434 }
 0x912   : > { %4600 = vrcp.f32 %v2435_v46  ;;  %v2450_v47 = vmul.f32 %v4599_v45, %v4591_v18  ;;  %v4538_v45 = vld [vmem:[#allocation4 + $0x4] ss:$0 sps:$4 sm:$0xff]  }
 0x914   : > { %v2454_v48 = vpack.c.bf16 %v2450_v47, %v2450_v47 }
 0x915   : > { %v2563_v49 = vpop.permute.xlu1 %2562 }
 0x916   : > { %4292 = vmatmul.mubr.msk.bf16.vlgmr.msra.gmra.mxu0 %vm1459_vm11, %v2454_v48  ;;  %v2568_v56 = vsel %vm1239_vm6, %v2563_v49, 0 }
 0x917   : > { %4303 = vmatprep.mubr.msk.bf16.mxu0 %vm4847_vm9, %v4846_v13 }
 0x919   : > { %v2614_v50 = vpop.permute.xlu1 %2613 }
 0x91a   : > { %v2619_v51 = vsel %vm1239_vm6, %v2614_v50, 0 }
 0x91b   : > { %4302 = vmatpush3.bf16.msra.mxu0 %v2619_v51 }
 0x91c   : > { %4313 = vmatprep.subr.bf16.mxu0 %v4846_v13 }
 0x91f   : > { %v4601_v53 = vpop.eup %4600 }
 0x920   : > { %v2449_v54 = vmul.f32 %v4601_v53, %v4593_v20 }
 0x922   : > { %v2453_v55 = vpack.c.bf16 %v2449_v54, %v2449_v54 }
 0x924   : > { %4286 = vmatmul.mubr.msk.bf16.vlgmr.msra.gmra.mxu1 %vm1459_vm11, %v2453_v55 }
 0x925   : > { %4296 = vmatpush3.bf16.msra.mxu1 %v2568_v56  ;;  %4297 = vmatprep.mubr.msk.bf16.mxu1 %vm4847_vm9, %v4846_v13 }
 0x926   : > { %4307 = vmatprep.subr.bf16.mxu1 %v4846_v13 }
 0x938   : > { %v2444_v57 = vpop.xlane.xlu0 %2443 }
 0x939   : > { %4602 = vrcp.f32 %v2444_v57 }
 0x93c   : > { %v2696_v1 = vpop.permute.xlu0 %2695 }
 0x93d   : > { %v2701_v8 = vsel %vm1259_vm10, %v2696_v1, 0 }
 0x940   : > { %v2694_v7 = vpop.permute.xlu0 %2693 }
 0x944   : > { %v2802_v10 = vpop.permute.xlu0 %2801 }
 0x945   : > { %v2807_v11 = vsel %vm1259_vm10, %v2802_v10, 0 }
 0x946   : > { %v4603_v58 = vpop.eup %4602 }
 0x947   : > { %v2452_v59 = vmul.f32 %v4603_v58, %v4595_v30 }
 0x948   : > { %v2800_v12 = vpop.permute.xlu0 %2799 }
 0x949   : > { %v2456_v60 = vpack.c.bf16 %v2452_v59, %v2452_v59 }
 0x94a   : > { %v2441_v61 = vpop.xlane.xlu1 %2440 }
 0x94b   : > { %4604 = vrcp.f32 %v2441_v61  ;;  %4304 = vmatmul.mubr.msk.bf16.vlgmr.msra.gmra.mxu0 %vm1459_vm11, %v2456_v60 }
 0x94c   : > { %4315 = vmatprep.mubr.msk.bf16.mxu0 %vm4847_vm9, %v4846_v13 }
 0x94e   : > { %v2749_v62 = vpop.permute.xlu1 %2748 }
 0x94f   : > { %v2754_v63 = vsel %vm1259_vm10, %v2749_v62, 0 }
 0x950   : > { %4314 = vmatpush3.bf16.xpose.msra.mxu0 %v2754_v63 }
 0x951   : > { %4325 = vmatprep.subr.bf16.mxu0 %v4846_v13 }
 0x952   : > { %v2747_v0 = vpop.permute.xlu1 %2746 }
 0x956   : > { %v2855_v2 = vpop.permute.xlu1 %2854 }
 0x957   : > { %v2860_v3 = vsel %vm1259_vm10, %v2855_v2, 0  ;;  %4316 = vmatmul.mubr.msk.bf16.vlgmr.msra.gmra.mxu0 %vm1259_vm10, %v2747_v0 }
 0x958   : > { %v4605_v4 = vpop.eup %4604  ;;  %4326 = vmatpush3.bf16.xpose.msra.mxu0 %v2860_v3  ;;  %4327 = vmatprep.mubr.msk.bf16.mxu0 %vm4847_vm9, %v4846_v13 }
 0x959   : > { %v2451_v5 = vmul.f32 %v4605_v4, %v5404_v33  ;;  %4337 = vmatprep.subr.bf16.mxu0 %v4846_v13 }
 0x95a   : > { %v2853_v9 = vpop.permute.xlu1 %2852 }
 0x95b   : > { %v2455_v6 = vpack.c.bf16 %v2451_v5, %v2451_v5 }
 0x95d   : > { %4298 = vmatmul.mubr.msk.bf16.vlgmr.msra.gmra.mxu1 %vm1459_vm11, %v2455_v6 }
 0x95e   : > { %4308 = vmatpush3.bf16.xpose.msra.mxu1 %v2701_v8  ;;  %4309 = vmatprep.mubr.msk.bf16.mxu1 %vm4847_vm9, %v4846_v13 }
 0x95f   : > { %4328 = vmatmul.mubr.msk.bf16.vlgmr.msra.gmra.mxu0 %vm1259_vm10, %v2853_v9  ;;  %4319 = vmatprep.subr.bf16.mxu1 %v4846_v13 }
 0x960   : > { %4339 = vmatprep.mubr.msk.bf16.mxu0 %vm4847_vm9, %v4846_v13 }
 0x965   : > { %4310 = vmatmul.mubr.msk.bf16.vlgmr.msra.gmra.mxu1 %vm1259_vm10, %v2694_v7 }
 0x966   : > { %4320 = vmatpush3.bf16.xpose.msra.mxu1 %v2807_v11  ;;  %4321 = vmatprep.mubr.msk.bf16.mxu1 %vm4847_vm9, %v4846_v13 }
 0x967   : > { %4331 = vmatprep.subr.bf16.mxu1 %v4846_v13 }
 0x96d   : > { %4322 = vmatmul.mubr.msk.bf16.vlgmr.msra.gmra.mxu1 %vm1259_vm10, %v2800_v12 }
 0x96e   : > { %4333 = vmatprep.mubr.msk.bf16.mxu1 %vm4847_vm9, %v4846_v13 }
 0x9d6   : > { %v5455_v14 = vpop.f32.mrf.mxu0 }
 0x9d8   : > { %v4293_v15 = vpop.f32.mrf.mxu0 }
 0x9d9   : > { %v4539_v15 = vld [vmem:[#allocation4 + $0x14] ss:$0 sps:$4 sm:$0xff]  }
 0x9da   : > { %v2556_v16 = vpop.f32.mrf.mxu0 }
 0x9db   : > { %v4540_v16 = vld [vmem:[#allocation4 + $0x1c] ss:$0 sps:$4 sm:$0xff]  }
 0x9dc   : > { %v4294_v17 = vpop.f32.mrf.mxu0 }
 0x9dd   : > { %v4541_v17 = vld [vmem:[#allocation4 + $0xc] ss:$0 sps:$4 sm:$0xff]  }
 0x9e4   : > { %v5457_v18 = vpop.f32.mrf.mxu1 }
 0x9e6   : > { %v4287_v19 = vpop.f32.mrf.mxu1 }
 0x9e8   : > { %v2505_v20 = vpop.f32.mrf.mxu1 }
 0x9ea   : > { %v4288_v21 = vpop.f32.mrf.mxu1 }
 0xa0b   : > { %v5459_v22 = vpop.f32.mrf.mxu0 }
 0xa0d   : > { %v4305_v23 = vpop.f32.mrf.mxu0 }
 0xa0f   : > { %v2658_v24 = vpop.f32.mrf.mxu0 }
 0xa11   : > { %v4306_v25 = vpop.f32.mrf.mxu0 }
 0xa17   : > { %v2790_v26 = vpop.f32.mrf.mxu0 }
 0xa18   : > { %v2905_v27 = vsel %vm1459_vm11, %v2790_v26, -inf }
 0xa19   : > { %2906 = vmax.xlane.f32.xlu1 %v2905_v27  ;;  %v4317_v28 = vpop.f32.mrf.mxu0 }
 0xa1b   : > { %v2793_v29 = vpop.f32.mrf.mxu0 }
 0xa1d   : > { %v5462_v30 = vpop.f32.mrf.mxu1  ;;  %v4318_v31 = vpop.f32.mrf.mxu0 }
 0xa1f   : > { %v4299_v32 = vpop.f32.mrf.mxu1  ;;  %v2896_v33 = vpop.f32.mrf.mxu0 }
 0xa20   : > { %v2911_v53 = vsel %vm1459_vm11, %v2896_v33, -inf }
 0xa21   : > { %v2607_v34 = vpop.f32.mrf.mxu1  ;;  %v4329_v35 = vpop.f32.mrf.mxu0 }
 0xa23   : > { %v4300_v37 = vpop.f32.mrf.mxu1  ;;  %v2899_v38 = vpop.f32.mrf.mxu0 }
 0xa25   : > { %v2737_v39 = vpop.f32.mrf.mxu1  ;;  %v4330_v41 = vpop.f32.mrf.mxu0 }
 0xa26   : > { %v2902_v42 = vsel %vm1459_vm11, %v2737_v39, -inf }
 0xa27   : > { %2903 = vmax.xlane.f32.xlu0 %v2902_v42  ;;  %v4311_v43 = vpop.f32.mrf.mxu1 }
 0xa29   : > { %v2740_v46 = vpop.f32.mrf.mxu1 }
 0xa2a   : > { %2953 = vrot.lane.b32.xlu1 %v4538_v45, %s4854_s27  ;;  %v4542_v45 = vld [vmem:[%s5124_s6 + $0x18] sm:$0xff]   ;;  %v4543_v46 = vld [vmem:[%s5124_s6 + $0x10] sm:$0xff]  }
 0xa2b   : > { %v4312_v47 = vpop.f32.mrf.mxu1 }
 0xa2d   : > { %v2843_v48 = vpop.f32.mrf.mxu1 }
 0xa2e   : > { %v2908_v49 = vsel %vm1459_vm11, %v2843_v48, -inf }
 0xa2f   : > { %2909 = vmax.xlane.f32.xlu0 %v2908_v49  ;;  %v4323_v50 = vpop.f32.mrf.mxu1  ;;  %v4545_v49 = vld [vmem:[%s5124_s6] sm:$0xff]  }
 0xa31   : > { %v2846_v51 = vpop.f32.mrf.mxu1 }
 0xa33   : > { %2912 = vmax.xlane.f32.xlu0 %v2911_v53  ;;  %v4324_v54 = vpop.f32.mrf.mxu1 }
 0xaa2   : > { %v2907_v55 = vpop.xlane.xlu1 %2906 }
 0xaa3   : > { %v2915_v56 = vsub.f32 %v2790_v26, %v2907_v55 }
 0xaa5   : > { %v2920_v57 = vmul.f32 1.442695, %v2915_v56 }
 0xaa6   : > { %v2954_v58 = vpop.permute.xlu1 %2953 }
 0xaa7   : > { %4606 = vpow2.f32 %v2920_v57  ;;  %v2959_v59 = vsel %vm1239_vm6, %v2954_v58, 0 }
 0xaa8   : > { %4332 = vmatpush3.bf16.msra.mxu1 %v2959_v59 }
 0xaa9   : > { %4343 = vmatprep.subr.bf16.mxu1 %v4846_v13 }
 0xab0   : > { %v2904_v60 = vpop.xlane.xlu0 %2903 }
 0xab1   : > { %v2914_v61 = vsub.f32 %v2737_v39, %v2904_v60 }
 0xab3   : > { %v2918_v62 = vmul.f32 1.442695, %v2914_v61 }
 0xab4   : > { %v4607_v63 = vpop.eup %4606 }
 0xab5   : > { %4608 = vpow2.f32 %v2918_v62  ;;  %v2929_v0 = vsel %vm1459_vm11, %v4607_v63, 0.0 }
 0xab6   : > { %2930 = vadd.xlane.f32.xlu0 %v2929_v0 }
 0xab8   : > { %v2910_v1 = vpop.xlane.xlu0 %2909 }
 0xab9   : > { %v2916_v2 = vsub.f32 %v2843_v48, %v2910_v1  ;;  %v4544_v48 = vld [vmem:[%s5124_s6 + $0x8] sm:$0xff]  }
 0xabb   : > { %v2922_v3 = vmul.f32 1.442695, %v2916_v2 }
 0xabc   : > { %v2913_v4 = vpop.xlane.xlu0 %2912 }
 0xabd   : > { %4610 = vpow2.f32 %v2922_v3  ;;  %v2917_v5 = vsub.f32 %v2896_v33, %v2913_v4 }
 0xabf   : > { %v2924_v6 = vmul.f32 1.442695, %v2917_v5 }
 0xac1   : > { %4612 = vpow2.f32 %v2924_v6 }
 0xac2   : > { %v4609_v7 = vpop.eup %4608 }
 0xac3   : > { %v2926_v8 = vsel %vm1459_vm11, %v4609_v7, 0.0 }
 0xac4   : > { %2927 = vadd.xlane.f32.xlu1 %v2926_v8 }
 0xaca   : > { %v4611_v9 = vpop.eup %4610 }
 0xacb   : > { %v2932_v10 = vsel %vm1459_vm11, %v4611_v9, 0.0 }
 0xacc   : > { %2933 = vadd.xlane.f32.xlu1 %v2932_v10 }
 0xace   : > { %v4613_v11 = vpop.eup %4612 }
 0xacf   : > { %v2935_v12 = vsel %vm1459_vm11, %v4613_v11, 0.0 }
 0xad0   : > { %2936 = vadd.xlane.f32.xlu0 %v2935_v12 }
 0xadd   : > { %3055 = vrot.lane.b32.xlu1 %v4539_v15, %s4854_s27  ;;  %v4019_v15 = vld [vmem:[%s5719_s1] ss:$0 sm:$0xff] }
 0xae1   : > { %3106 = vrot.lane.b32.xlu1 %v4540_v16, %s4854_s27 }
 0xae5   : > { %2174 = vrot.lane.b32.xlu1 %v5383_v36, %s4853_s30 }
 0xae6   : > { %3004 = vrot.lane.b32.xlu0 %v4541_v17, %s4854_s27 }
 0xae9   : > { %2178 = vrot.lane.b32.xlu1 %v5387_v44, %s4853_s30 }
 0xaea   : > { %2172 = vrot.lane.b32.xlu0 %v5385_v40, %s4853_s30 }
 0xaed   : > { %2667 = vrot.lane.b32.xlu1 %v5455_v14, %s4851_s9 }
 0xaee   : > { %2176 = vrot.lane.b32.xlu0 %v5390_v52, %s4853_s30 }
 0xaf1   : > { %2671 = vrot.lane.b32.xlu1 %v5459_v22, %s4851_s9 }
 0xaf2   : > { %2665 = vrot.lane.b32.xlu0 %v5457_v18, %s4851_s9 }
 0xaf6   : > { %2669 = vrot.lane.b32.xlu0 %v5462_v30, %s4851_s9 }
 0xb3f   : > { %v2931_v36 = vpop.xlane.xlu0 %2930 }
 0xb40   : > { %4614 = vrcp.f32 %v2931_v36 }
 0xb4d   : > { %v2928_v44 = vpop.xlane.xlu1 %2927  ;;  %v4615_v19 = vpop.eup %4614 }
 0xb4e   : > { %4616 = vrcp.f32 %v2928_v44  ;;  %v2943_v23 = vmul.f32 %v4615_v19, %v4607_v63 }
 0xb50   : > { %v2947_v27 = vpack.c.bf16 %v2943_v23, %v2943_v23  ;;  %v4639_v23 = vld [vmem:[#allocation2 + $0x10] sm:$0xff] }
 0xb55   : > { %v2934_v40 = vpop.xlane.xlu1 %2933 }
 0xb56   : > { %4618 = vrcp.f32 %v2934_v40  ;;  %v4638_v40 = vld [vmem:[#allocation2] sm:$0xff] }
 0xb59   : > { %v3056_v14 = vpop.permute.xlu1 %3055  ;;  %v2937_v20 = vpop.xlane.xlu0 %2936 }
 0xb5a   : > { %4620 = vrcp.f32 %v2937_v20  ;;  %v3061_v26 = vsel %vm1239_vm6, %v3056_v14, 0 }
 0xb5b   : > { %v4617_v52 = vpop.eup %4616 }
 0xb5c   : > { %v2942_v21 = vmul.f32 %v4617_v52, %v4609_v7 }
 0xb5d   : > { %v3107_v22 = vpop.permute.xlu1 %3106  ;;  %v3005_v24 = vpop.permute.xlu0 %3004 }
 0xb5e   : > { %v3010_v18 = vsel %vm1239_vm6, %v3005_v24, 0  ;;  %v2946_v25 = vpack.c.bf16 %v2942_v21, %v2942_v21  ;;  %v3112_v30 = vsel %vm1239_vm6, %v3107_v22, 0  ;;  %v4640_v24 = vld [vmem:[#allocation2 + $0x8] sm:$0xff] }
 0xb5f   : > { %4338 = vmatpush3.bf16.msra.mxu0 %v3010_v18 }
 0xb60   : > { %4334 = vmatmul.mubr.msk.bf16.vlgmr.msra.gmra.mxu1 %vm1459_vm11, %v2946_v25  ;;  %4349 = vmatprep.subr.bf16.mxu0 %v4846_v13 }
 0xb61   : > { %4344 = vmatpush3.bf16.msra.mxu1 %v3061_v26  ;;  %v2175_v28 = vpop.permute.xlu1 %2174  ;;  %v2173_v29 = vpop.permute.xlu0 %2172  ;;  %4345 = vmatprep.mubr.msk.bf16.mxu1 %vm4847_vm9, %v4846_v13 }
 0xb62   : > { %2186 = vst.msk [vmem:[#allocation3 + $0x8] sm:$0xff] %vm2184_vm12, %v2175_v28  ;;  %2185 = vst.msk [vmem:[#allocation3] sm:$0xff] %vm2184_vm12, %v2173_v29  ;;  %4340 = vmatmul.mubr.msk.bf16.vlgmr.msra.gmra.mxu0 %vm1459_vm11, %v2947_v27  ;;  %4355 = vmatprep.subr.bf16.mxu1 %v4542_v45  ;;  %v4641_v27 = vld [vmem:[#allocation2 + $0x18] sm:$0xff] }
 0xb63   : > { %v4619_v31 = vpop.eup %4618  ;;  %4350 = vmatpush3.bf16.msra.mxu0 %v3112_v30  ;;  %4351 = vmatprep.mubr.msk.bf16.mxu0 %vm4847_vm9, %v4846_v13 }
 0xb64   : > { %v2944_v32 = vmul.f32 %v4619_v31, %v4611_v9 }
 0xb65   : > { %v2179_v33 = vpop.permute.xlu1 %2178  ;;  %v2177_v34 = vpop.permute.xlu0 %2176 }
 0xb66   : > { %2188 = vst.msk [vmem:[#allocation3 + $0x18] sm:$0xff] %vm2184_vm12, %v2179_v33  ;;  %2187 = vst.msk [vmem:[#allocation3 + $0x10] sm:$0xff] %vm2184_vm12, %v2177_v34  ;;  %v2948_v35 = vpack.c.bf16 %v2944_v32, %v2944_v32 }
 0xb67   : > { %v4621_v37 = vpop.eup %4620 }
 0xb68   : > { %4346 = vmatmul.mubr.msk.bf16.vlgmr.msra.gmra.mxu1 %vm1459_vm11, %v2948_v35  ;;  %v2945_v38 = vmul.f32 %v4621_v37, %v4613_v11 }
 0xb69   : > { %v2668_v39 = vpop.permute.xlu1 %2667  ;;  %v2666_v41 = vpop.permute.xlu0 %2665  ;;  %4356 = vmatpush3.bf16.msra.mxu1 %v4542_v45 }
 0xb6a   : > { %2679 = vst.msk [vmem:[#allocation3 + $0x8] sm:$0xff] %vm2677_vm13, %v2668_v39  ;;  %2678 = vst.msk [vmem:[#allocation3] sm:$0xff] %vm2677_vm13, %v2666_v41  ;;  %v2949_v13 = vpack.c.bf16 %v2945_v38, %v2945_v38  ;;  %4357 = vmatprep.subr.bf16.mxu1 %v4543_v46 }
 0xb6c   : > { %4352 = vmatmul.mubr.msk.bf16.vlgmr.msra.gmra.mxu0 %vm1459_vm11, %v2949_v13 }
 0xb6d   : > { %v2672_v42 = vpop.permute.xlu1 %2671  ;;  %v2670_v43 = vpop.permute.xlu0 %2669  ;;  %4358 = vmatpush3.bf16.msra.mxu1 %v4543_v46 }
 0xb6e   : > { %2681 = vst.msk [vmem:[#allocation3 + $0x18] sm:$0xff] %vm2677_vm13, %v2672_v42  ;;  %2680 = vst.msk [vmem:[#allocation3 + $0x10] sm:$0xff] %vm2677_vm13, %v2670_v43  ;;  %4359 = vmatprep.subr.bf16.mxu1 %v4544_v48 }
 0xb71   : > { %4360 = vmatpush3.bf16.msra.mxu1 %v4544_v48 }
 0xb72   : > { %4361 = vmatprep.subr.bf16.mxu1 %v4545_v49 }
 0xb75   : > { %4362 = vmatpush3.bf16.msra.mxu1 %v4545_v49 }
 0xc20   : > { %v2995_v47 = vpop.f32.mrf.mxu1 }
 0xc21   : > { %3158 = vrot.lane.b32.xlu0 %v2995_v47, %s4849_s19 }
 0xc22   : > { %v4335_v50 = vpop.f32.mrf.mxu1  ;;  %v3046_v51 = vpop.f32.mrf.mxu0 }
 0xc23   : > { %3160 = vrot.lane.b32.xlu1 %v3046_v51, %s4849_s19 }
 0xc24   : > { %v2998_v53 = vpop.f32.mrf.mxu1  ;;  %v4341_v54 = vpop.f32.mrf.mxu0 }
 0xc25   : > { %v4546_v53 = vld [vmem:[%s5094_s3 + $0x18] sm:$0xff]   ;;  %v4547_v54 = vld [vmem:[%s5094_s3 + $0x10] sm:$0xff]  }
 0xc26   : > { %v4336_v55 = vpop.f32.mrf.mxu1  ;;  %v3049_v56 = vpop.f32.mrf.mxu0  ;;  %4367 = vmatprep.subr.bf16.mxu0 %v4546_v53 }
 0xc27   : > { %4368 = vmatpush3.bf16.msra.mxu0 %v4546_v53  ;;  %v4548_v55 = vld [vmem:[%s5094_s3 + $0x8] sm:$0xff]   ;;  %v4549_v56 = vld [vmem:[%s5094_s3] sm:$0xff]  }
 0xc28   : > { %v4342_v57 = vpop.f32.mrf.mxu0  ;;  %v3097_v58 = vpop.f32.mrf.mxu1  ;;  %4369 = vmatprep.subr.bf16.mxu0 %v4547_v54 }
 0xc29   : > { %3162 = vrot.lane.b32.xlu0 %v3097_v58, %s4849_s19  ;;  %v4550_v57 = vld [vmem:[%s5133_s28 + $0x38] sm:$0xff]   ;;  %v4551_v58 = vld [vmem:[%s5133_s28 + $0x30] sm:$0xff]  }
 0xc2a   : > { %v4347_v59 = vpop.f32.mrf.mxu1  ;;  %4379 = vmatprep.subr.bf16.mxu1 %v4550_v57 }
 0xc2b   : > { %4370 = vmatpush3.bf16.msra.mxu0 %v4547_v54  ;;  %v4552_v59 = vld [vmem:[%s5133_s28 + $0x28] sm:$0xff]  }
 0xc2c   : > { %v3100_v60 = vpop.f32.mrf.mxu1  ;;  %v3148_v61 = vpop.f32.mrf.mxu0  ;;  %4371 = vmatprep.subr.bf16.mxu0 %v4548_v55 }
 0xc2d   : > { %3164 = vrot.lane.b32.xlu1 %v3148_v61, %s4849_s19  ;;  %v4553_v60 = vld [vmem:[%s5133_s28 + $0x20] sm:$0xff]   ;;  %v4554_v61 = vld [vmem:[%s5133_s28 + $0x18] sm:$0xff]  }
 0xc2e   : > { %v4348_v62 = vpop.f32.mrf.mxu1  ;;  %v4353_v63 = vpop.f32.mrf.mxu0 }
 0xc2f   : > { %4372 = vmatpush3.bf16.msra.mxu0 %v4548_v55 }
 0xc30   : > { %v3151_v0 = vpop.f32.mrf.mxu0  ;;  %4373 = vmatprep.subr.bf16.mxu0 %v4549_v56 }
 0xc32   : > { %v4354_v1 = vpop.f32.mrf.mxu0 }
 0xc33   : > { %4374 = vmatpush3.bf16.msra.mxu0 %v4549_v56 }
 0xc93   : > { %v3159_v2 = vpop.permute.xlu0 %3158 }
 0xc94   : > { %3171 = vst.msk [vmem:[#allocation3] sm:$0xff] %vm3170_vm14, %v3159_v2 }
 0xc95   : > { %v3161_v3 = vpop.permute.xlu1 %3160 }
 0xc96   : > { %3172 = vst.msk [vmem:[#allocation3 + $0x8] sm:$0xff] %vm3170_vm14, %v3161_v3 }
 0xc9b   : > { %v3163_v4 = vpop.permute.xlu0 %3162  ;;  %v3175_v5 = vld [vmem:[#allocation3] sm:$0xff] }
 0xc9c   : > { %3173 = vst.msk [vmem:[#allocation3 + $0x10] sm:$0xff] %vm3170_vm14, %v3163_v4 }
 0xc9d   : > { %v3176_v6 = vld [vmem:[#allocation3 + $0x8] sm:$0xff] }
 0xc9e   : > { %v3179_v7 = vpack.c.bf16 %v3176_v6, %v3175_v5 }
 0xc9f   : > { %v3165_v8 = vpop.permute.xlu1 %3164 }
 0xca0   : > { %3174 = vst.msk [vmem:[#allocation3 + $0x18] sm:$0xff] %vm3170_vm14, %v3165_v8  ;;  %4363 = vmatprep.mubr.msk.bf16.mxu1 %vm1155_vm5, %v3179_v7 }
 0xca3   : > { %v3177_v9 = vld [vmem:[#allocation3 + $0x10] sm:$0xff] }
 0xca7   : > { %v3178_v10 = vld [vmem:[#allocation3 + $0x18] sm:$0xff] }
 0xca8   : > { %v3180_v11 = vpack.c.bf16 %v3178_v10, %v3177_v9 }
 0xcaa   : > { %4364 = vmatmul.mubr.msk.bf16.vlgmr.msra.gmra.mxu1 %vm1155_vm5, %v3180_v11 }
 0xcab   : > { %4380 = vmatpush3.bf16.msra.mxu1 %v4550_v57 }
 0xcac   : > { %4381 = vmatprep.subr.bf16.mxu1 %v4551_v58 }
 0xcaf   : > { %4382 = vmatpush3.bf16.msra.mxu1 %v4551_v58 }
 0xcb0   : > { %4383 = vmatprep.subr.bf16.mxu1 %v4552_v59 }
 0xcb3   : > { %4384 = vmatpush3.bf16.msra.mxu1 %v4552_v59 }
 0xcb4   : > { %4385 = vmatprep.subr.bf16.mxu1 %v4553_v60 }
 0xcb7   : > { %4386 = vmatpush3.bf16.msra.mxu1 %v4553_v60 }
 0xcb8   : > { %4387 = vmatprep.subr.bf16.mxu1 %v4554_v61 }
 0xcbb   : > { %4388 = vmatpush3.bf16.msra.mxu1 %v4554_v61 }
 0xd6a   : > { %v4365_v12 = vpop.f32.mrf.mxu1 }
 0xd6b   : > { %v3269_v17 = vadd.f32 %v4365_v12, %v4019_v15  ;;  %v4026_v12 = vld [vmem:[%s902_s4] ss:$0 sm:$0xff] }
 0xd6c   : > { %v3260_v16 = vpop.f32.mrf.mxu1 }
 0xd6d   : > { %v3261_v36 = vadd.f32 %v4019_v15, %v3260_v16  ;;  %v3277_v22 = vadd.f32 %v4639_v23, %v3269_v17 }
 0xd6e   : > { %v4366_v44 = vpop.f32.mrf.mxu1 }
 0xd6f   : > { %v3275_v19 = vadd.f32 %v4638_v40, %v3261_v36  ;;  %v3272_v20 = vadd.f32 %v4366_v44, %v4019_v15  ;;  %v3287_v26 = vsel %vm1155_vm5, %v3277_v22, 0.0  ;;  %v4027_v40 = vld [vmem:[%s905_s22] ss:$0 sm:$0xff] }
 0xd70   : > { %v3263_v14 = vpop.f32.mrf.mxu1 }
 0xd71   : > { %v3264_v52 = vadd.f32 %v4019_v15, %v3263_v14  ;;  %v3281_v21 = vsel %vm1155_vm5, %v3275_v19, 0.0  ;;  %v3278_v28 = vadd.f32 %v4641_v27, %v3272_v20  ;;  %v4555_v27 = vld [vmem:[%s5133_s28 + $0x10] sm:$0xff]  }
 0xd72   : > { %3282 = vadd.xlane.f32.xlu0 %v3281_v21  ;;  %4389 = vmatprep.subr.bf16.mxu1 %v4555_v27 }
 0xd73   : > { %v3276_v18 = vadd.f32 %v4640_v24, %v3264_v52  ;;  %v3290_v29 = vsel %vm1155_vm5, %v3278_v28, 0.0  ;;  %4390 = vmatpush3.bf16.msra.mxu1 %v4555_v27 }
 0xd75   : > { %v3284_v25 = vsel %vm1155_vm5, %v3276_v18, 0.0 }
 0xd76   : > { %3285 = vadd.xlane.f32.xlu1 %v3284_v25  ;;  %3288 = vadd.xlane.f32.xlu0 %v3287_v26 }
 0xd7a   : > { %3291 = vadd.xlane.f32.xlu0 %v3290_v29  ;;  %v4557_v29 = vld [vmem:[%s5133_s28] sm:$0xff]  }
 0xdfb   : > { %v3283_v30 = vpop.xlane.xlu0 %3282 }
 0xdfc   : > { %v3294_v31 = vmul.f32 0.015625, %v3283_v30 }
 0xdfe   : > { %v5528_v32 = vsub.f32 %v3275_v19, %v3294_v31 }
 0xdff   : > { %v3286_v33 = vpop.xlane.xlu1 %3285  ;;  %v3289_v34 = vpop.xlane.xlu0 %3288 }
 0xe00   : > { %v3295_v35 = vmul.f32 0.015625, %v3286_v33  ;;  %v3296_v37 = vmul.f32 0.015625, %v3289_v34  ;;  %v3302_v38 = vmul.f32 %v5528_v32, %v5528_v32 }
 0xe02   : > { %v5532_v39 = vsub.f32 %v3276_v18, %v3295_v35  ;;  %v5534_v41 = vsub.f32 %v3277_v22, %v3296_v37  ;;  %v3306_v13 = vsel %vm1155_vm5, %v3302_v38, 0.0 }
 0xe03   : > { %3307 = vadd.xlane.f32.xlu1 %v3306_v13  ;;  %v3292_v42 = vpop.xlane.xlu0 %3291 }
 0xe04   : > { %v3297_v43 = vmul.f32 0.015625, %v3292_v42  ;;  %v3303_v45 = vmul.f32 %v5532_v39, %v5532_v39  ;;  %v3304_v46 = vmul.f32 %v5534_v41, %v5534_v41 }
 0xe06   : > { %v3301_v47 = vsub.f32 %v3278_v28, %v3297_v43  ;;  %v3309_v48 = vsel %vm1155_vm5, %v3303_v45, 0.0  ;;  %v3312_v49 = vsel %vm1155_vm5, %v3304_v46, 0.0  ;;  %v4556_v28 = vld [vmem:[%s5133_s28 + $0x8] sm:$0xff]  }
 0xe07   : > { %3310 = vadd.xlane.f32.xlu0 %v3309_v48  ;;  %3313 = vadd.xlane.f32.xlu1 %v3312_v49  ;;  %v4035_v48 = vld [vmem:[%s5151_s24] ss:$0 sm:$0xff] }
 0xe08   : > { %v3305_v50 = vmul.f32 %v3301_v47, %v3301_v47  ;;  %4391 = vmatprep.subr.bf16.mxu1 %v4556_v28 }
 0xe09   : > { %4392 = vmatpush3.bf16.msra.mxu1 %v4556_v28 }
 0xe0a   : > { %v3315_v51 = vsel %vm1155_vm5, %v3305_v50, 0.0  ;;  %4393 = vmatprep.subr.bf16.mxu1 %v4557_v29 }
 0xe0b   : > { %3316 = vadd.xlane.f32.xlu0 %v3315_v51 }
 0xe0d   : > { %4394 = vmatpush3.bf16.msra.mxu1 %v4557_v29 }
 0xe8c   : > { %v3308_v62 = vpop.xlane.xlu1 %3307 }
 0xe8d   : > { %v3318_v63 = vmul.f32 0.015625, %v3308_v62 }
 0xe8f   : > { %v3322_v0 = vadd.f32 1e-05, %v3318_v63 }
 0xe90   : > { %v3314_v1 = vpop.xlane.xlu1 %3313  ;;  %v3311_v2 = vpop.xlane.xlu0 %3310 }
 0xe91   : > { %4622 = vrsqrt.f32 %v3322_v0  ;;  %v3320_v3 = vmul.f32 0.015625, %v3314_v1  ;;  %v3319_v4 = vmul.f32 0.015625, %v3311_v2 }
 0xe93   : > { %v3324_v5 = vadd.f32 1e-05, %v3320_v3  ;;  %v3323_v6 = vadd.f32 1e-05, %v3319_v4 }
 0xe94   : > { %v3317_v7 = vpop.xlane.xlu0 %3316 }
 0xe95   : > { %4624 = vrsqrt.f32 %v3324_v5  ;;  %v3321_v8 = vmul.f32 0.015625, %v3317_v7 }
 0xe96   : > { %4626 = vrsqrt.f32 %v3323_v6 }
 0xe97   : > { %v3325_v9 = vadd.f32 1e-05, %v3321_v8 }
 0xe99   : > { %4628 = vrsqrt.f32 %v3325_v9 }
 0xe9e   : > { %v4623_v10 = vpop.eup %4622 }
 0xe9f   : > { %v3330_v11 = vmul.f32 %v4623_v10, %v5528_v32  ;;  %v4028_v32 = vld [vmem:[%s5722_s15] ss:$0 sm:$0xff] }
 0xea1   : > { %v3340_v44 = vmul.f32 %v4026_v12, %v3330_v11 }
 0xea2   : > { %v4625_v15 = vpop.eup %4624 }
 0xea3   : > { %v4627_v16 = vpop.eup %4626  ;;  %v3332_v17 = vmul.f32 %v4625_v15, %v5534_v41  ;;  %v3350_v21 = vadd.f32 %v4027_v40, %v3340_v44 }
 0xea4   : > { %v3331_v36 = vmul.f32 %v4627_v16, %v5532_v39 }
 0xea5   : > { %v3342_v52 = vmul.f32 %v4026_v12, %v3332_v17 }
 0xea6   : > { %v4629_v19 = vpop.eup %4628  ;;  %v3341_v14 = vmul.f32 %v4026_v12, %v3331_v36 }
 0xea7   : > { %v3333_v20 = vmul.f32 %v4629_v19, %v3301_v47  ;;  %v3352_v18 = vadd.f32 %v4027_v40, %v3342_v52 }
 0xea8   : > { %v3351_v23 = vadd.f32 %v4027_v40, %v3341_v14 }
 0xea9   : > { %v3343_v22 = vmul.f32 %v4026_v12, %v3333_v20 }
 0xeaa   : > { %v3354_v24 = vpack.c.bf16 %v3351_v23, %v3350_v21 }
 0xeab   : > { %v3353_v25 = vadd.f32 %v4027_v40, %v3343_v22 }
 0xeac   : > { %4375 = vmatprep.mubr.msk.bf16.mxu0 %vm1155_vm5, %v3354_v24 }
 0xead   : > { %v3355_v26 = vpack.c.bf16 %v3353_v25, %v3352_v18 }
 0xeaf   : > { %4376 = vmatmul.mubr.msk.bf16.vlgmr.msra.gmra.mxu0 %vm1155_vm5, %v3355_v26 }
 0xf6f   : > { %v4377_v30 = vpop.f32.mrf.mxu0 }
 0xf70   : > { %v3444_v37 = vadd.f32 %v4377_v30, %v4028_v32 }
 0xf71   : > { %v3435_v31 = vpop.f32.mrf.mxu0 }
 0xf72   : > { %v3436_v34 = vadd.f32 %v4028_v32, %v3435_v31  ;;  %v3452_v43 = vmax.f32 %v3444_v37, 0.0  ;;  %v4044_v31 = vld [vmem:[%s908_s10] ss:$0 sm:$0xff] }
 0xf73   : > { %v4378_v33 = vpop.f32.mrf.mxu0 }
 0xf74   : > { %v3447_v35 = vadd.f32 %v4378_v33, %v4028_v32  ;;  %v3450_v13 = vmax.f32 %v3436_v34, 0.0  ;;  %v4045_v33 = vld [vmem:[%s911_s18] ss:$0 sm:$0xff] }
 0xf75   : > { %v3438_v38 = vpop.f32.mrf.mxu0 }
 0xf76   : > { %v3439_v39 = vadd.f32 %v4028_v32, %v3438_v38  ;;  %v3453_v41 = vmax.f32 %v3447_v35, 0.0 }
 0xf78   : > { %v3451_v42 = vmax.f32 %v3439_v39, 0.0  ;;  %v3455_v46 = vpack.c.bf16 %v3453_v41, %v3452_v43 }
 0xf7a   : > { %v3454_v45 = vpack.c.bf16 %v3451_v42, %v3450_v13 }
 0xf7c   : > { %4395 = vmatprep.mubr.bf16.mxu1 %v3454_v45 }
 0xf7d   : > { %4396 = vmatmul.mubr.bf16.vlgmr.msra.gmra.mxu1 %v3455_v46 }
0x103d   : > { %v4397_v47 = vpop.f32.mrf.mxu1 }
0x103e   : > { %v3570_v50 = vadd.f32 %v4397_v47, %v4035_v48 }
0x103f   : > { %v3561_v49 = vpop.f32.mrf.mxu1 }
0x1040   : > { %v3562_v51 = vadd.f32 %v4035_v48, %v3561_v49  ;;  %v3578_v59 = vadd.f32 %v3570_v50, %v3352_v18 }
0x1041   : > { %v4398_v53 = vpop.f32.mrf.mxu1 }
0x1042   : > { %v3576_v54 = vadd.f32 %v3562_v51, %v3350_v21  ;;  %v3573_v56 = vadd.f32 %v4398_v53, %v4035_v48  ;;  %v3588_v62 = vsel %vm1155_vm5, %v3578_v59, 0.0 }
0x1043   : > { %v3564_v55 = vpop.f32.mrf.mxu1 }
0x1044   : > { %v3565_v57 = vadd.f32 %v4035_v48, %v3564_v55  ;;  %v3582_v58 = vsel %vm1155_vm5, %v3576_v54, 0.0  ;;  %v3579_v63 = vadd.f32 %v3573_v56, %v3353_v25 }
0x1045   : > { %3583 = vadd.xlane.f32.xlu1 %v3582_v58 }
0x1046   : > { %v3577_v60 = vadd.f32 %v3565_v57, %v3351_v23  ;;  %v3591_v0 = vsel %vm1155_vm5, %v3579_v63, 0.0 }
0x1048   : > { %v3585_v61 = vsel %vm1155_vm5, %v3577_v60, 0.0 }
0x1049   : > { %3586 = vadd.xlane.f32.xlu0 %v3585_v61  ;;  %3589 = vadd.xlane.f32.xlu1 %v3588_v62 }
0x104d   : > { %3592 = vadd.xlane.f32.xlu0 %v3591_v0 }
0x10ce   : > { %v3584_v1 = vpop.xlane.xlu1 %3583 }
0x10cf   : > { %v3594_v2 = vmul.f32 0.015625, %v3584_v1 }
0x10d1   : > { %v3598_v3 = vsub.f32 %v3576_v54, %v3594_v2 }
0x10d2   : > { %v3587_v4 = vpop.xlane.xlu0 %3586  ;;  %v3590_v5 = vpop.xlane.xlu1 %3589 }
0x10d3   : > { %v3595_v6 = vmul.f32 0.015625, %v3587_v4  ;;  %v3596_v7 = vmul.f32 0.015625, %v3590_v5  ;;  %v3602_v8 = vmul.f32 %v3598_v3, %v3598_v3 }
0x10d5   : > { %v3599_v9 = vsub.f32 %v3577_v60, %v3595_v6  ;;  %v3600_v10 = vsub.f32 %v3578_v59, %v3596_v7  ;;  %v3606_v11 = vsel %vm1155_vm5, %v3602_v8, 0.0 }
0x10d6   : > { %v3593_v12 = vpop.xlane.xlu0 %3592  ;;  %3607 = vadd.xlane.f32.xlu1 %v3606_v11 }
0x10d7   : > { %v3597_v15 = vmul.f32 0.015625, %v3593_v12  ;;  %v3603_v16 = vmul.f32 %v3599_v9, %v3599_v9  ;;  %v3604_v17 = vmul.f32 %v3600_v10, %v3600_v10 }
0x10d9   : > { %v3601_v36 = vsub.f32 %v3579_v63, %v3597_v15  ;;  %v3609_v44 = vsel %vm1155_vm5, %v3603_v16, 0.0  ;;  %v3612_v40 = vsel %vm1155_vm5, %v3604_v17, 0.0 }
0x10da   : > { %3610 = vadd.xlane.f32.xlu0 %v3609_v44  ;;  %3613 = vadd.xlane.f32.xlu1 %v3612_v40 }
0x10db   : > { %v3605_v19 = vmul.f32 %v3601_v36, %v3601_v36 }
0x10dd   : > { %v3615_v14 = vsel %vm1155_vm5, %v3605_v19, 0.0 }
0x10de   : > { %3616 = vadd.xlane.f32.xlu0 %v3615_v14 }
0x115f   : > { %v3608_v20 = vpop.xlane.xlu1 %3607 }
0x1160   : > { %v3618_v52 = vmul.f32 0.015625, %v3608_v20 }
0x1162   : > { %v3622_v21 = vadd.f32 1e-05, %v3618_v52 }
0x1163   : > { %v3611_v23 = vpop.xlane.xlu0 %3610  ;;  %v3614_v22 = vpop.xlane.xlu1 %3613 }
0x1164   : > { %4630 = vrsqrt.f32 %v3622_v21  ;;  %v3619_v24 = vmul.f32 0.015625, %v3611_v23  ;;  %v3620_v18 = vmul.f32 0.015625, %v3614_v22 }
0x1166   : > { %v3623_v25 = vadd.f32 1e-05, %v3619_v24  ;;  %v3624_v26 = vadd.f32 1e-05, %v3620_v18 }
0x1167   : > { %v3617_v27 = vpop.xlane.xlu0 %3616 }
0x1168   : > { %4632 = vrsqrt.f32 %v3623_v25  ;;  %v3621_v28 = vmul.f32 0.015625, %v3617_v27 }
0x1169   : > { %4634 = vrsqrt.f32 %v3624_v26 }
0x116a   : > { %v3625_v29 = vadd.f32 1e-05, %v3621_v28 }
0x116c   : > { %4636 = vrsqrt.f32 %v3625_v29 }
0x1171   : > { %v4631_v30 = vpop.eup %4630 }
0x1172   : > { %v3630_v32 = vmul.f32 %v4631_v30, %v3598_v3 }
0x1174   : > { %v3640_v34 = vmul.f32 %v4044_v31, %v3630_v32 }
0x1175   : > { %v4633_v35 = vpop.eup %4632 }
0x1176   : > { %v4635_v37 = vpop.eup %4634  ;;  %v3650_v38 = vadd.f32 %v4045_v33, %v3640_v34  ;;  %v3631_v39 = vmul.f32 %v4633_v35, %v3599_v9 }
0x1177   : > { %v3632_v41 = vmul.f32 %v4635_v37, %v3600_v10 }
0x1178   : > { %3654 = vst.msk [vmem:[#allocation2] sm:$0xff] %vm1155_vm5, %v3650_v38  ;;  %v3641_v13 = vmul.f32 %v4044_v31, %v3631_v39 }
0x1179   : > { %v4637_v42 = vpop.eup %4636  ;;  %v3642_v43 = vmul.f32 %v4044_v31, %v3632_v41 }
0x117a   : > { %v3651_v45 = vadd.f32 %v4045_v33, %v3641_v13  ;;  %v3633_v46 = vmul.f32 %v4637_v42, %v3601_v36 }
0x117b   : > { %v3652_v47 = vadd.f32 %v4045_v33, %v3642_v43 }
0x117c   : > { %3655 = vst.msk [vmem:[#allocation2 + $0x8] sm:$0xff] %vm1155_vm5, %v3651_v45  ;;  %v3643_v48 = vmul.f32 %v4044_v31, %v3633_v46  ;;  %3661 = sbr.rel (%p4046_p12) target bundleno = 4491 (0x118b), region = 124 }
0x117d   : > { %3656 = vst.msk [vmem:[#allocation2 + $0x10] sm:$0xff] %vm1155_vm5, %v3652_v47 }
0x117e   : > { %v3653_v49 = vadd.f32 %v4045_v33, %v3643_v48 }
0x1180   : > { %3657 = vst.msk [vmem:[#allocation2 + $0x18] sm:$0xff] %vm1155_vm5, %v3653_v49 }
0x1181   : > { %v3662_v50 = vld [vmem:[#allocation2] sm:$0xff]  ;;  %vm3670_vm15 = vcmask 519168  }
0x1182   : > { %v3666_v54 = vpack.c.bf16 %v3662_v50, %v3662_v50 }
0x1183   : > { %v3663_v51 = vld [vmem:[#allocation2 + $0x8] sm:$0xff] }
0x1184   : > { %v3664_v53 = vld [vmem:[#allocation2 + $0x10] sm:$0xff]  ;;  %v3667_v55 = vpack.c.bf16 %v3663_v51, %v3663_v51  ;;  %3671 = vst.msk [vmem:[#allocation12] sm:$0xf] %vm3670_vm15, %v3666_v54 }
0x1185   : > { %v3668_v56 = vpack.c.bf16 %v3664_v53, %v3664_v53 }
0x1186   : > { %3672 = vst.msk [vmem:[#allocation12 + $0x4] sm:$0xf] %vm3670_vm15, %v3667_v55 }
0x1187   : > { %v3665_v57 = vld [vmem:[#allocation2 + $0x18] sm:$0xff]  ;;  %3673 = vst.msk [vmem:[#allocation12 + $0x8] sm:$0xf] %vm3670_vm15, %v3668_v56 }
0x1188   : > { %v3669_v58 = vpack.c.bf16 %v3665_v57, %v3665_v57 }
0x118a   : > { %3674 = vst.msk [vmem:[#allocation12 + $0xc] sm:$0xf] %vm3670_vm15, %v3669_v58 }
0x118b PF: > { %s5725_s10 = sld [smem:[#allocation21_spill]]  ;;  %s4855_s2 = smov [#allocation12]  }
0x118c   : > { %s3684_s7 = sshll.u32 %s4855_s2, 4  ;;  %s3685_s7 = int_to_ptr.vmem [resolvable:$true] %s3684_s7 }
0x118d   : > { %s4750_s18 = scalar_lea.vmem %s3685_s7, 256  ;;  %p4757_p11 = scmp.lt.s32.totalorder %s3685_s7, %s3685_s7 }
0x118e   : > { %p4751_p4 = scmp.ne.s32.totalorder %s3685_s7, %s4750_s18  ;;  %p4758_p1 = scmp.lt.s32.totalorder %s4750_s18, %s4750_s18 }
0x1190   : > { %p4759_p2 = por %p4758_p1, %p4757_p11 }
0x1191   : > { %p4435_p13 = scmp.eq.s32.totalorder %s5725_s10, 1 }
0x1193   : > { %p4752_p3 = pnand %p4751_p4, %p4435_p13 }
0x1195   : > { %p4753_p0 = pneg %p4752_p3 }
0x1197   : > { %p4760_p5 = pnand %p4759_p2, %p4753_p0 }
0x1199   : > { %4763 = shalt.err (!%p4760_p5)
}
0x119a   : > { %s4856_s17 = smov 4   ;;  %s5726_s6 = sld [smem:[#allocation41_spill]] }
0x11a0   : > { %4413 = dma.vmem_to_hbm [thread:$0]  (%p4435_p13), %s3685_s7, 256, %s5726_s6, [#allocation7], %s4848_s25, %s4848_s25, %s4856_s17  }
0x11a1   : > { %4811 = dma.done.wait (%p4435_p13), [#allocation7], 256  }
0x11a2   : > { %4813 = vsyncadd (%p4435_p13), [#allocation7], 4294967040 }
0x11a3 PF: > { %s5727_s0 = sld [smem:[#allocation20_spill]] }
0x11a4   : > { %s5728_s21 = sld [smem:[#allocation17_spill]] }
0x11a5   : > { %s5729_s1 = sld [smem:[#allocation18_spill]] }
0x11a6   : > { %s5730_s22 = sld [smem:[#allocation23_spill]] }
0x11a7   : > { %s5731_s7 = sld [smem:[#allocation19_spill]] }
0x11a8   : > { %s5732_s23 = sld [smem:[#allocation22_spill]] }
0x11a9   : > { %s33_s2 = sadd.s32 1, %s5727_s0  }
0x11aa   : > { %p30_p10 = scmp.ge.s32.totalorder %s33_s2, 4  }
0x11ac   :  { %32 = sbr.rel (!%p30_p10) target bundleno = 24 (0x18), region = 200 }
0x11b1   :  { %3700 = vsyncpa [#allocation6], 1 }
0x11b2   :  { %3702 = vsyncpa [#allocation6 + $0x1], 1 }
0x11b3   :  { %3703 = vsyncpa [#allocation9], 1 }
0x11b4   :  { %3704 = vsyncpa [#allocation7], 1 }
0x11b5   :  { %3706 = vsyncpa [#allocation7 + $0x1], 1 }

// kernel: tpu_custom_call.1
= control target key start
LH: loop header
LB: loop body
LE: loop exit
PB: predicated region body
PF: predicated region fallthrough
CT: control target
= control target key end

     0   :  { %s5632_s0 = inlined_call_operand.vmem [shape: f32[4,8,4], index: 0, kind: input, shape index: {}]   ;;  %s5633_s1 = inlined_call_operand.vmem [shape: f32[4,8,3], index: 1, kind: input, shape index: {}]   ;;  %s5634_s2 = inlined_call_operand.vmem [shape: f32[32,64], index: 2, kind: input, shape index: {}]   ;;  %s5635_s3 = inlined_call_operand.vmem [shape: bf16[4,64], index: 3, kind: input, shape index: {}]   ;;  %s5636_s4 = inlined_call_operand.hbm [shape: f32[1,64], index: 4, kind: input, shape index: {}]   ;;  %s5637_s5 = inlined_call_operand.vmem [shape: bf16[3,64], index: 5, kind: input, shape index: {}]   ;;  %s5638_s6 = inlined_call_operand.hbm [shape: f32[1,64], index: 6, kind: input, shape index: {}]   ;;  %s5639_s7 = inlined_call_operand.vmem [shape: f32[8,128], index: 7, kind: input, shape index: {}]   ;;  %s5640_s8 = inlined_call_operand.vmem [shape: bf16[2,64,192], index: 8, kind: input, shape index: {}]   ;;  %s5641_s9 = inlined_call_operand.vmem [shape: f32[2,1,192], index: 9, kind: input, shape index: {}]   ;;  %s5642_s10 = inlined_call_operand.vmem [shape: bf16[2,64,64], index: 10, kind: input, shape index: {}]   ;;  %s5643_s11 = inlined_call_operand.vmem [shape: f32[2,1,64], index: 11, kind: input, shape index: {}]   ;;  %s5644_s12 = inlined_call_operand.hbm [shape: bf16[2,64,128], index: 12, kind: input, shape index: {}]   ;;  %s5645_s13 = inlined_call_operand.vmem [shape: f32[2,1,128], index: 13, kind: input, shape index: {}]   ;;  %s5646_s14 = inlined_call_operand.vmem [shape: bf16[2,128,64], index: 14, kind: input, shape index: {}]   ;;  %s5647_s15 = inlined_call_operand.hbm [shape: f32[2,1,64], index: 15, kind: input, shape index: {}]   ;;  %s5648_s16 = inlined_call_operand.vmem [shape: f32[2,1,64], index: 16, kind: input, shape index: {}]   ;;  %s5649_s17 = inlined_call_operand.vmem [shape: f32[2,1,64], index: 17, kind: input, shape index: {}]   ;;  %s5650_s18 = inlined_call_operand.vmem [shape: f32[2,1,64], index: 18, kind: input, shape index: {}]   ;;  %s5651_s19 = inlined_call_operand.vmem [shape: f32[2,1,64], index: 19, kind: input, shape index: {}]   ;;  %s5652_s20 = inlined_call_operand.hbm [shape: bf16[4,8,64], index: 20, kind: output, shape index: {}]  }
   0x1   :  { %5665 = sst [smem:[#allocation24_spill]] %s5632_s0 }
   0x2   :  { %5666 = sst [smem:[#allocation25_spill]] %s5633_s1 }
   0x3   :  { %5667 = sst [smem:[#allocation26_spill]] %s5634_s2 }
   0x4   :  { %5668 = sst [smem:[#allocation27_spill]] %s5635_s3 }
   0x5   :  { %5669 = sst [smem:[#allocation28_spill]] %s5636_s4 }
   0x6   :  { %5670 = sst [smem:[#allocation29_spill]] %s5637_s5 }
   0x7   :  { %5671 = sst [smem:[#allocation30_spill]] %s5638_s6 }
   0x8   :  { %5672 = sst [smem:[#allocation31_spill]] %s5640_s8 }
   0x9   :  { %5673 = sst [smem:[#allocation32_spill]] %s5641_s9 }
   0xa   :  { %5674 = sst [smem:[#allocation33_spill]] %s5642_s10 }
   0xb   :  { %5675 = sst [smem:[#allocation34_spill]] %s5644_s12 }
   0xc   :  { %5676 = sst [smem:[#allocation35_spill]] %s5646_s14 }
   0xd   :  { %5677 = sst [smem:[#allocation36_spill]] %s5647_s15 }
   0xe   :  { %5678 = sst [smem:[#allocation37_spill]] %s5648_s16 }
   0xf   :  { %5679 = sst [smem:[#allocation38_spill]] %s5649_s17 }
  0x10   :  { %5680 = sst [smem:[#allocation39_spill]] %s5650_s18 }
  0x11   :  { %5681 = sst [smem:[#allocation40_spill]] %s5651_s19 }
  0x12   :  { %5682 = sst [smem:[#allocation41_spill]] %s5652_s20 }
  0x13   :  { %25 = vsyncpa [#allocation6], 0 }
  0x14   :  { %26 = vsyncpa [#allocation9], 0 }
  0x15   :  { %27 = vsyncpa [#allocation7], 0  ;;  %s4962_s21 = smov 0   ;;  %s4964_s1 = smov 0  }
  0x16   :  { %s4966_s22 = smov 0   ;;  %s4968_s7 = smov 0  }
  0x17   :  { %s4970_s23 = smov 0   ;;  %s4972_s2 = smov 0  }
  0x18 LB: > { %5683 = sst [smem:[#allocation17_spill]] %s4820_s1  ;;  %s4991_s24 = sadd.s32 4294967295, %s4836_s2   ;;  %s4836_s2 = sphi %s4972_s2, %s33_s2   ;;  %s4832_s23 = sphi %s4970_s23, %s5732_s23   ;;  %s4828_s7 = sphi %s4968_s7, %s5731_s7   ;;  %s4824_s22 = sphi %s4966_s22, %s5730_s22   ;;  %s4820_s1 = sphi %s4964_s1, %s5729_s1   ;;  %s4816_s21 = sphi %s4962_s21, %s5728_s21  }
  0x19   : > { %5684 = sst [smem:[#allocation18_spill]] %s4824_s22  ;;  %p341_p0 = scmp.ne.s32.totalorder %s4824_s22, %s4820_s1 }
  0x1a   : > { %5685 = sst [smem:[#allocation19_spill]] %s4832_s23  ;;  %p342_p1 = scmp.eq.s32.totalorder %s4836_s2, 0 }
  0x1b   : > { %5686 = sst [smem:[#allocation20_spill]] %s4836_s2  ;;  %p347_p2 = scmp.ne.s32.totalorder %s4820_s1, %s4816_s21 }
  0x1c   : > { %5687 = sst [smem:[#allocation21_spill]] %s4991_s24  ;;  %p5656_p3 = scmp.eq.s32.totalorder %s4991_s24, 0 }
  0x1d   : > { %p343_p4 = por %p342_p1, %p341_p0  ;;  %p3917_p5 = scmp.ge.s32.totalorder %s4836_s2, 1 }
  0x1e   : > { %p5002_p6 = por %p5656_p3, %p347_p2  ;;  %p566_p7 = scmp.lt.s32.totalorder %s4836_s2, 3 }
  0x1f   : > { %s4838_s27 = smov [#allocation5]   ;;  %p4432_p10 = scmp.lt.s32.totalorder %s4836_s2, 2 }
  0x20   : > { %p5007_p8 = pnand %p3917_p5, %p566_p7  ;;  %s603_s4 = sshll.u32 %s4838_s27, 4  ;;  %s604_s4 = int_to_ptr.vmem [resolvable:$true] %s603_s4 }
  0x21   : > { %s660_s28 = sand.u32 1, %s4836_s2   ;;  %p5021_p12 = pnand %p4432_p10, %p343_p4 }
  0x22   : > { %p4416_p9 = pneg %p5007_p8  ;;  %s4653_s0 = scalar_lea.vmem %s604_s4, 16 }
  0x23   : > { %p4654_p0 = scmp.ne.s32.totalorder %s604_s4, %s4653_s0  ;;  %s4660_s21 = scalar_lea.vmem %s604_s4, 32 }
  0x24   : > { %p5017_p11 = pnand %p4416_p9, %p5656_p3  ;;  %p4661_p5 = scmp.lt.s32.totalorder %s604_s4, %s604_s4 }
  0x25   : > { %p4662_p7 = scmp.lt.s32.totalorder %s4660_s21, %s4653_s0 }
  0x26   : > { %p4644_p13 = pneg %p5017_p11 }
  0x27   : > { %p4663_p9 = por %p4662_p7, %p4661_p5 }
  0x28   : > { %p4656_p1 = pnand %p4654_p0, %p4644_p13 }
  0x2a   : > { %p4657_p2 = pneg %p4656_p1 }
  0x2c   : > { %p4664_p3 = pnand %p4663_p9, %p4657_p2 }
  0x2e   : > { %4667 = shalt.err (!%p4664_p3)
}
  0x2f   : > { %s5692_s2 = sld [smem:[#allocation28_spill]]  ;;  %s42_s20 = sadd.s32 1, %s4832_s23 }
  0x30   : > { %s5658_s5 = sand.u32 1, %s4824_s22   ;;  %p43_p4 = scmp.ge.s32.totalorder %s42_s20, 2 }
  0x31   : > { %s3923_s0 = sshll.u32 %s5658_s5, 5  ;;  %s4051_s21 = sshll.u32 %s4832_s23, 9 }
  0x32   : > { %s5734_s20 = smov (%p43_p4, %s42_s20), 0  ;;  %s5694_s12 = sld [smem:[#allocation34_spill]] }
  0x33   : > { %5693 = sst [smem:[#allocation22_spill]] %s5734_s20  ;;  %s664_s18 = scalar_lea.vmem [#allocation10], %s3923_s0 }
  0x34   : > { %s671_s17 = sshll.u32 %s664_s18, 4  ;;  %s331_s16 = ssub.s32 %s4832_s23, %s5734_s20  ;;  %s672_s17 = int_to_ptr.vmem [resolvable:$true] %s671_s17 }
  0x35   : > { %4419 = dma.hbm_to_vmem [thread:$0]  (!%p5017_p11), %s5692_s2, 16, %s604_s4, [#allocation6]  }
  0x36   : > { %p332_p3 = scmp.eq.s32.totalorder %s331_s16, 0  ;;  %s5695_s2 = sadd.s32 1, %s4824_s22 }
  0x37   : > { %s5052_s14 = scalar_lea.sflag [#allocation6], %s660_s28  ;;  %p4670_p10 = pneg %p5021_p12 }
  0x38   : > { %s670_s27 = scalar_lea.hbm %s5694_s12, %s4051_s21  ;;  %s4681_s5 = scalar_lea.vmem %s672_s17, 512 }
  0x39   : > { %s5050_s4 = scalar_select %p332_p3, %s4824_s22, %s5695_s2  }
  0x3a   : > { %p4682_p0 = scmp.ne.s32.totalorder %s672_s17, %s4681_s5  ;;  %s4839_s19 = smov [#allocation10]  }
  0x3b   : > { %5696 = sst [smem:[#allocation23_spill]] %s5050_s4  ;;  %s4686_s21 = sshll.u32 %s4839_s19, 4  ;;  %s4687_s21 = int_to_ptr.vmem [resolvable:$false] %s4686_s21 }
  0x3c   : > { %p4684_p1 = pnand %p4682_p0, %p4670_p10  ;;  %s4688_s18 = scalar_lea.vmem %s4687_s21, 1024 }
  0x3d   : > { %p4689_p5 = scmp.lt.s32.totalorder %s672_s17, %s4687_s21  ;;  %p4690_p7 = scmp.lt.s32.totalorder %s4688_s18, %s4681_s5 }
  0x3e   : > { %p4685_p2 = pneg %p4684_p1 }
  0x3f   : > { %p4691_p9 = por %p4690_p7, %p4689_p5 }
  0x41   : > { %p4692_p4 = pnand %p4691_p9, %p4685_p2 }
  0x43   : > { %4695 = shalt.err (!%p4692_p4)
}
  0x44   : > { %s4840_s16 = smov 64   ;;  %s4841_s28 = smov 4  }
  0x45   : > { %4426 = dma.hbm_to_vmem [thread:$0]  (!%p5021_p12), %s670_s27, 512, %s672_s17, %s5052_s14, %s4840_s16, %s4840_s16, %s4841_s28  }
  0x46   : > { %s4842_s0 = smov [#allocation8]   ;;  %s3926_s2 = sshll.u32 %s4832_s23, 4 }
  0x47   : > { %s617_s3 = sshll.u32 %s4842_s0, 4  ;;  %s618_s3 = int_to_ptr.vmem [resolvable:$true] %s617_s3 }
  0x48   : > { %s4707_s19 = scalar_lea.vmem %s618_s3, 16  ;;  %s4714_s5 = scalar_lea.vmem %s618_s3, 32 }
  0x49   : > { %p4708_p3 = scmp.ne.s32.totalorder %s618_s3, %s4707_s19  ;;  %p4715_p2 = scmp.lt.s32.totalorder %s618_s3, %s618_s3 }
  0x4a   : > { %p4716_p5 = scmp.lt.s32.totalorder %s4714_s5, %s4707_s19 }
  0x4b   : > { %p4710_p0 = pnand %p4708_p3, %p4644_p13 }
  0x4c   : > { %p4717_p7 = por %p4716_p5, %p4715_p2 }
  0x4d   : > { %p4711_p1 = pneg %p4710_p0 }
  0x4f   : > { %p4718_p9 = pnand %p4717_p7, %p4711_p1 }
  0x51   : > { %4721 = shalt.err (!%p4718_p9)
}
  0x52   : > { %s5697_s6 = sld [smem:[#allocation30_spill]]  ;;  %s5699_s28 = sand.u32 1, %s4824_s22  }
  0x53   : > { %s5698_s15 = sld [smem:[#allocation36_spill]]  ;;  %s698_s0 = scalar_lea.vmem [#allocation11], %s5699_s28 }
  0x54   : > { %s705_s12 = sshll.u32 %s698_s0, 4  ;;  %s4843_s29 = smov [#allocation11]   ;;  %s706_s12 = int_to_ptr.vmem [resolvable:$true] %s705_s12 }
  0x55   : > { %s4735_s19 = scalar_lea.vmem %s706_s12, 16  ;;  %s4740_s5 = sshll.u32 %s4843_s29, 4  ;;  %s4741_s5 = int_to_ptr.vmem [resolvable:$false] %s4740_s5 }
  0x56   : > { %p4736_p13 = scmp.ne.s32.totalorder %s706_s12, %s4735_s19  ;;  %s4742_s21 = scalar_lea.vmem %s4741_s5, 32 }
  0x57   : > { %p4743_p0 = scmp.lt.s32.totalorder %s706_s12, %s4741_s5 }
  0x58   : > { %4422 = dma.hbm_to_vmem [thread:$0]  (!%p5017_p11), %s5697_s6, 16, %s618_s3, [#allocation9]  }
  0x59   : > { %s703_s16 = scalar_lea.hbm %s5698_s15, %s3926_s2  ;;  %p4738_p4 = pnand %p4736_p13, %p4670_p10 }
  0x5a   : > { %p4744_p11 = scmp.lt.s32.totalorder %s4742_s21, %s4735_s19 }
  0x5b   : > { %p4739_p3 = pneg %p4738_p4 }
  0x5c   : > { %p4745_p1 = por %p4744_p11, %p4743_p0 }
  0x5e   : > { %p4746_p2 = pnand %p4745_p1, %p4739_p3 }
  0x60   : > { %4749 = shalt.err (!%p4746_p2)
}
  0x61   : > { %4429 = dma.hbm_to_vmem [thread:$0]  (!%p5021_p12), %s703_s16, 16, %s706_s12, %s5052_s14  }
  0x62   : > { %738 = sbr.rel (%p5007_p8) target bundleno = 4515 (0x11a3), region = 100  ;;  %p5700_p5 = scmp.eq.s32.totalorder (!%p5007_p8), %s4991_s24, 0 }
  0x67   : > { %4799 = dma.done.wait (%p5700_p5), [#allocation6], 16   ;;  %p5701_p10 = pmov %p5700_p5 }
  0x68   : > { %p5702_p7 = pmov %p5700_p5 }
  0x69   : > { %4801 = vsyncadd (%p5701_p10), [#allocation6], 4294967280 }
  0x6a   : > { %4803 = dma.done.wait (%p5702_p7), [#allocation9], 16   ;;  %p5703_p9 = pmov %p5700_p5 }
  0x6b   : > { %s748_s30 = sand.u32 1, %s4991_s24   ;;  %s750_s12 = sand.u32 1, %s4820_s1  }
  0x6c   : > { %4805 = vsyncadd (%p5703_p9), [#allocation9], 4294967280  ;;  %s3930_s14 = sshll.u32 %s750_s12, 5  ;;  %s749_s26 = scalar_lea.sflag [#allocation6], %s748_s30 }
  0x6d   : > { %s5094_s3 = scalar_lea.vmem [#allocation10], %s3930_s14 }
  0x6e   : > { %4807 = dma.done.wait (%p5002_p6), %s749_s26, 528  }
  0x6f   : > { %4809 = vsyncadd (%p5002_p6), %s749_s26, 4294966768  ;;  %p875_p8 = scmp.lt.s32.totalorder %s4828_s7, 1  ;;  %s5704_s8 = sld [smem:[#allocation31_spill]] }
  0x70   : > { %s5705_s9 = sld [smem:[#allocation32_spill]]  ;;  %s5151_s24 = scalar_lea.vmem [#allocation11], %s750_s12 }
  0x71   : > { %s5102_s2 = scalar_select %p875_p8, %s4828_s7, 1 }
  0x72   : > { %s5706_s10 = sld [smem:[#allocation33_spill]]  ;;  %p3938_p6 = scmp.ne.s32.totalorder %s4828_s7, 0 }
  0x73   : > { %s4052_s17 = sshll.u32 %s5102_s2, 6  ;;  %s3933_s27 = sshll.u32 %s5102_s2, 1 }
  0x74   : > { %s4053_s29 = sshll.u32 %s5102_s2, 5  ;;  %s5707_s23 = sld [smem:[#allocation35_spill]] }
  0x75   : > { %s5109_s25 = scalar_lea.vmem %s5704_s8, %s4052_s17  ;;  %s5709_s30 = sld [smem:[#allocation38_spill]] }
  0x76   : > { %s5114_s19 = scalar_lea.vmem %s5705_s9, %s3933_s27  ;;  %s5708_s9 = sld [smem:[#allocation37_spill]] }
  0x77   : > { %s5710_s26 = sld [smem:[#allocation39_spill]] }
  0x78   : > { %s5124_s6 = scalar_lea.vmem %s5706_s10, %s4053_s29  ;;  %s5711_s20 = sld [smem:[#allocation40_spill]] }
  0x79   : > { %s5713_s16 = sld [smem:[#allocation24_spill]] (!%p3938_p6) }
  0x7a   : > { %s5133_s28 = scalar_lea.vmem %s5707_s23, %s4052_s17  ;;  %917 = sbr.rel (%p3938_p6) target bundleno = 344 (0x158), region = 120 }
  0x7b   : > { %s905_s22 = scalar_lea.vmem %s5709_s30, %s5102_s2  ;;  %s5715_s8 = sld [smem:[#allocation25_spill]] (!%p3938_p6) }
  0x7c   : > { %s902_s4 = scalar_lea.vmem %s5708_s9, %s5102_s2  ;;  %s5712_s9 = sld [smem:[#allocation27_spill]] (!%p3938_p6) }
  0x7d   : > { %s908_s10 = scalar_lea.vmem %s5710_s26, %s5102_s2  ;;  %s5714_s26 = sld [smem:[#allocation29_spill]] (!%p3938_p6) }
  0x7e   : > { %s911_s18 = scalar_lea.vmem %s5711_s20, %s5102_s2  ;;  %s5716_s5 = sld [smem:[#allocation26_spill]] (!%p3938_p6) }
  0x7f   : > { %vm945_vm0 = vcmask 1041408   ;;  %v918_v1 = vld [vmem:[%s5713_s16] sm:$0xff]  ;;  %v919_v2 = vld [vmem:[%s5713_s16 + $0x8] sm:$0xff]  ;;  %vm938_vm1 = vcmask 31744   ;;  %v920_v5 = vld [vmem:[%s5713_s16 + $0x10] sm:$0xff]  ;;  %vm1006_vm2 = vcmask 1040384  }
  0x80   : > { %v922_v4 = vpack.c.bf16 %v919_v2, %v918_v1  ;;  %v921_v6 = vld [vmem:[%s5713_s16 + $0x18] sm:$0xff]  ;;  %vm999_vm3 = vcmask 23552   ;;  %v4844_v11 = vmov 65535   ;;  %v3939_v20 = vld [vmem:[#allocation5] ss:$0 sm:$0xff]  ;;  %vm1084_vm4 = vcmask 523264  }
  0x81   : > { %v923_v7 = vpack.c.bf16 %v921_v6, %v920_v5  ;;  %v924_v9 = vld [vmem:[%s5715_s8] sm:$0xff]  ;;  %v925_v10 = vld [vmem:[%s5715_s8 + $0x8] sm:$0xff]  ;;  %v1007_v12 = vsel %vm1006_vm2, 4294967295, %v4844_v11  ;;  %v926_v15 = vld [vmem:[%s5715_s8 + $0x10] sm:$0xff] }
  0x82   : > { %v930_v0 = vld [vmem:[%s5712_s9] sm:$0x3]  ;;  %4153 = vmatprep.mubr.msk.bf16.mxu0 %vm938_vm1, %v922_v4  ;;  %v928_v13 = vpack.c.bf16 %v925_v10, %v924_v9  ;;  %v1008_v14 = vsel %vm945_vm0, %v1007_v12, 0  ;;  %v927_v16 = vld [vmem:[%s5715_s8 + $0x18] sm:$0xff]  ;;  %v3944_v25 = vld [vmem:[#allocation8] ss:$0 sm:$0xff] }
  0x83   : > { %4399 = vmatprep.subr.msk.bf16.mxu0 %vm945_vm0, %v930_v0  ;;  %v947_v3 = vsel %vm945_vm0, %v930_v0, 0  ;;  %v998_v8 = vld [vmem:[%s5714_s26] sm:$0x3]  ;;  %v929_v18 = vpack.c.bf16 %v927_v16, %v926_v15 }
  0x84   : > { %4152 = vmatpush3.bf16.msra.mxu0 %v947_v3  ;;  %v1010_v17 = vand.u32 %v1008_v14, %v998_v8  ;;  %4159 = vmatprep.mubr.msk.bf16.mxu1 %vm999_vm3, %v928_v13  ;;  %v1078_v28 = vld [vmem:[%s5716_s5 + $0x10] sm:$0xff]  ;;  %v1076_v34 = vld [vmem:[%s5716_s5] sm:$0xff]  ;;  %v1079_v40 = vld [vmem:[%s5716_s5 + $0x18] sm:$0xff] }
  0x85   : > { %v1077_v45 = vld [vmem:[%s5716_s5 + $0x8] sm:$0xff] }
  0x86   : > { %4157 = vmatprep.subr.bf16.mxu1 %v1010_v17 }
  0x87   : > { %4154 = vmatmul.mubr.msk.bf16.vlgmr.msra.gmra.mxu0 %vm938_vm1, %v923_v7  ;;  %4158 = vmatpush3.bf16.msra.mxu1 %v1010_v17 }
  0x8a   : > { %4160 = vmatmul.mubr.msk.bf16.vlgmr.msra.gmra.mxu1 %vm999_vm3, %v929_v18 }
 0x147   : > { %v4155_v19 = vpop.f32.mrf.mxu0 }
 0x148   : > { %v992_v22 = vadd.f32 %v4155_v19, %v3939_v20 }
 0x149   : > { %v983_v21 = vpop.f32.mrf.mxu0 }
 0x14a   : > { %v4161_v24 = vpop.f32.mrf.mxu1  ;;  %v984_v26 = vadd.f32 %v3939_v20, %v983_v21 }
 0x14b   : > { %v4156_v23 = vpop.f32.mrf.mxu0  ;;  %v1063_v27 = vadd.f32 %v4161_v24, %v992_v22 }
 0x14c   : > { %v1046_v30 = vpop.f32.mrf.mxu1  ;;  %v995_v31 = vadd.f32 %v4156_v23, %v3939_v20 }
 0x14d   : > { %v986_v29 = vpop.f32.mrf.mxu0  ;;  %v1074_v32 = vadd.f32 %v3944_v25, %v1063_v27  ;;  %v1061_v33 = vadd.f32 %v1046_v30, %v984_v26 }
 0x14e   : > { %v4162_v35 = vpop.f32.mrf.mxu1  ;;  %v987_v37 = vadd.f32 %v3939_v20, %v986_v29 }
 0x14f   : > { %v1082_v36 = vadd.f32 %v1078_v28, %v1074_v32  ;;  %v1072_v38 = vadd.f32 %v3944_v25, %v1061_v33  ;;  %v1064_v39 = vadd.f32 %v4162_v35, %v995_v31 }
 0x150   : > { %v1049_v41 = vpop.f32.mrf.mxu1 }
 0x151   : > { %1087 = vst.msk [vmem:[#allocation2 + $0x10] sm:$0xff] %vm1084_vm4, %v1082_v36  ;;  %v1080_v42 = vadd.f32 %v1076_v34, %v1072_v38  ;;  %v1075_v43 = vadd.f32 %v3944_v25, %v1064_v39  ;;  %v1062_v44 = vadd.f32 %v1049_v41, %v987_v37 }
 0x153   : > { %1085 = vst.msk [vmem:[#allocation2] sm:$0xff] %vm1084_vm4, %v1080_v42  ;;  %v1083_v46 = vadd.f32 %v1079_v40, %v1075_v43  ;;  %v1073_v47 = vadd.f32 %v3944_v25, %v1062_v44 }
 0x155   : > { %1088 = vst.msk [vmem:[#allocation2 + $0x18] sm:$0xff] %vm1084_vm4, %v1083_v46  ;;  %v1081_v48 = vadd.f32 %v1077_v45, %v1073_v47 }
 0x157   : > { %1086 = vst.msk [vmem:[#allocation2 + $0x8] sm:$0xff] %vm1084_vm4, %v1081_v48 }
 0x158 PF: > { %v4502_v49 = vld [vmem:[%s5109_s25 + $0x34] ss:$8 sps:$4 sm:$0xff]   ;;  %v4504_v50 = vld [vmem:[%s5109_s25 + $0x30] ss:$8 sps:$4 sm:$0xff]   ;;  %v4845_v51 = vmov 0   ;;  %vm1155_vm5 = vcmask 523264   ;;  %v1105_v0 = vlaneseq  ;;  %s5719_s1 = scalar_lea.vmem %s5643_s11, %s5102_s2  ;;  %s5722_s15 = scalar_lea.vmem %s5645_s13, %s5102_s2 }
 0x159   : > { %1194 = vmatprep.mubr.bf16.mxu0 %v4845_v51  ;;  %1170 = vmatprep.subr.bf16.mxu0 %v4502_v49  ;;  %v4505_v52 = vld [vmem:[%s5109_s25 + $0x24] ss:$8 sps:$4 sm:$0xff]   ;;  %v4507_v53 = vld [vmem:[%s5109_s25 + $0x20] ss:$8 sps:$4 sm:$0xff]   ;;  %v4508_v54 = vld [vmem:[%s5109_s25 + $0x14] ss:$8 sps:$4 sm:$0xff]  }
 0x15a   : > { %1171 = vmatpush1.bf16.msra.mxu0 %v4504_v50  ;;  %v4510_v55 = vld [vmem:[%s5109_s25 + $0x10] ss:$8 sps:$4 sm:$0xff]   ;;  %v4511_v56 = vld [vmem:[%s5109_s25 + $0x4] ss:$8 sps:$4 sm:$0xff]   ;;  %v4513_v57 = vld [vmem:[%s5109_s25] ss:$8 sps:$4 sm:$0xff]  }
 0x15b   : > { %1172 = vmatprep.subr.bf16.mxu0 %v4505_v52  ;;  %v1089_v58 = vld [vmem:[#allocation2] sm:$0xff]  ;;  %v1091_v61 = vld [vmem:[#allocation2 + $0x10] sm:$0xff]  ;;  %v1106_v1 = vshrl.u32 %v1105_v0, 7  ;;  %vm1239_vm6 = vcmask 1043456   ;;  %vm1240_vm7 = vcmask 523268   ;;  %v4846_v13 = vmov 0.0  }
 0x15c   : > { %v1092_v62 = vld [vmem:[#allocation2 + $0x18] sm:$0xff]  ;;  %v1103_v4 = vld [vmem:[%s5114_s19] sm:$0x3]  ;;  %vm5217_vm8 = vmor %vm1240_vm7, %vm1239_vm6  ;;  %4169 = vmatprep.subr.bf16.mxu1 %v4846_v13  ;;  %vm4847_vm9 = vmmov 0   ;;  %s4848_s25 = smov 64   ;;  %vm1259_vm10 = vcmask 130048  }
 0x15d   : > { %v1094_v63 = vpack.c.bf16 %v1092_v62, %v1091_v61  ;;  %v1107_v2 = vsub.s32 0, %v1106_v1  ;;  %v1111_v3 = vsub.s32 1, %v1106_v1  ;;  %4171 = vmatprep.mubr.msk.bf16.mxu1 %vm4847_vm9, %v4846_v13  ;;  %vm1459_vm11 = vcmask 64512   ;;  %s4849_s19 = smov 48   ;;  %s4850_s23 = smov 112  }
 0x15e   : > { %1173 = vmatpush1.bf16.msra.mxu0 %v4507_v53  ;;  %v1090_v59 = vld [vmem:[#allocation2 + $0x8] sm:$0xff]  ;;  %s4851_s9 = smov 32   ;;  %s4852_s17 = smov 96   ;;  %vm2184_vm12 = vcmask 261248   ;;  %vm2677_vm13 = vcmask 392448   ;;  %vm3170_vm14 = vcmask 523648  }
 0x15f   : > { %1174 = vmatprep.subr.bf16.mxu0 %v4508_v54  ;;  %v1093_v60 = vpack.c.bf16 %v1090_v59, %v1089_v58  ;;  %v1108_v5 = vrot.slane %v1103_v4, %v1107_v2  ;;  %v1112_v6 = vrot.slane %v1103_v4, %v1111_v3  ;;  %s4853_s30 = smov 16   ;;  %s4854_s27 = smov 80  }
 0x160   : > { %p4046_p12 = scmp.ne.s32.totalorder %s4828_s7, 1 }
 0x162   : > { %1175 = vmatpush1.bf16.msra.mxu0 %v4510_v55 }
 0x163   : > { %1176 = vmatprep.subr.bf16.mxu0 %v4511_v56 }
 0x166   : > { %1177 = vmatpush1.bf16.msra.mxu0 %v4513_v57 }
 0x167   : > { %4163 = vmatprep.subr.bf16.mxu0 %v4846_v13 }
 0x169   : > { %3953 = vmatmul.mubr.msk.bf16.vlgmr.msra.gmra.mxu0 %vm1155_vm5, %v1093_v60 }
 0x16a   : > { %1204 = vmatprep.mubr.bf16.mxu0 %v4845_v51 }
 0x171   : > { %3954 = vmatmul.mubr.msk.bf16.gmra.mxu0 %vm1155_vm5, %v1094_v63 }
 0x172   : > { %4165 = vmatprep.mubr.msk.bf16.mxu0 %vm4847_vm9, %v4846_v13 }
 0x229   : > { %v1196_v7 = vpop.f32.mrf.mxu0 }
 0x22a   : > { %v1197_v9 = vadd.f32 %v1196_v7, %v1108_v5 }
 0x22b   : > { %v1198_v8 = vpop.f32.mrf.mxu0 }
 0x22c   : > { %v1199_v10 = vadd.f32 %v1198_v8, %v1112_v6 }
 0x22d   : > { %v1200_v12 = vpop.f32.mrf.mxu0 }
 0x22e   : > { %v4055_v14 = vpack.c.bf16 %v1199_v10, %v1197_v9  ;;  %v1201_v16 = vadd.f32 %v1200_v12, %v1108_v5 }
 0x22f   : > { %v1202_v15 = vpop.f32.mrf.mxu0 }
 0x230   : > { %1242 = vst.msk [vmem:[#allocation4] sm:$0xff] %vm5217_vm8, %v4055_v14  ;;  %v1203_v17 = vadd.f32 %v1202_v15, %v1112_v6 }
 0x231   : > { %v1206_v18 = vpop.f32.mrf.mxu0 }
 0x232   : > { %v4056_v19 = vpack.c.bf16 %v1203_v17, %v1201_v16  ;;  %v1207_v20 = vadd.f32 %v1206_v18, %v1108_v5 }
 0x233   : > { %v1208_v21 = vpop.f32.mrf.mxu0 }
 0x234   : > { %1243 = vst.msk [vmem:[#allocation4 + $0x8] sm:$0xff] %vm5217_vm8, %v4056_v19  ;;  %v1209_v22 = vadd.f32 %v1208_v21, %v1112_v6 }
 0x235   : > { %v1210_v23 = vpop.f32.mrf.mxu0 }
 0x236   : > { %v4057_v24 = vpack.c.bf16 %v1209_v22, %v1207_v20  ;;  %v1211_v25 = vadd.f32 %v1210_v23, %v1108_v5 }
 0x237   : > { %v1212_v26 = vpop.f32.mrf.mxu0  ;;  %v1246_v27 = vld [vmem:[#allocation4] sm:$0xf]  ;;  %v1250_v45 = vld [vmem:[#allocation4 + $0x4] sm:$0xf] }
 0x238   : > { %1244 = vst.msk [vmem:[#allocation4 + $0x10] sm:$0xff] %vm5217_vm8, %v4057_v24  ;;  %v1213_v28 = vadd.f32 %v1212_v26, %v1112_v6  ;;  %v3959_v29 = vcombine.low %v1246_v27, %v1246_v27  ;;  %v1512_v47 = vsel %vm1239_vm6, %v1250_v45, 0  ;;  %v4518_v22 = vld [vmem:[#allocation4] ss:$0 sps:$4 sm:$0xff]  }
 0x23a   : > { %v4058_v30 = vpack.c.bf16 %v1213_v28, %v1211_v25  ;;  %1257 = vrot.lane.b32.xlu0 %v3959_v29, %s4848_s25 }
 0x23b   : > { %v1247_v31 = vld [vmem:[#allocation4 + $0x8] sm:$0xf]  ;;  %v1251_v46 = vld [vmem:[#allocation4 + $0xc] sm:$0xf] }
 0x23c   : > { %1245 = vst.msk [vmem:[#allocation4 + $0x18] sm:$0xff] %vm5217_vm8, %v4058_v30  ;;  %v3961_v32 = vcombine.low %v1247_v31, %v1247_v31  ;;  %v1558_v48 = vsel %vm1239_vm6, %v1251_v46, 0  ;;  %v4519_v25 = vld [vmem:[#allocation4 + $0x8] ss:$0 sps:$4 sm:$0xff]  }
 0x23e   : > { %1309 = vrot.lane.b32.xlu0 %v3961_v32, %s4848_s25 }
 0x23f   : > { %v1248_v33 = vld [vmem:[#allocation4 + $0x10] sm:$0xf] }
 0x240   : > { %v3963_v34 = vcombine.low %v1248_v33, %v1248_v33  ;;  %v4520_v26 = vld [vmem:[#allocation4 + $0x10] ss:$0 sps:$4 sm:$0xff]  }
 0x242   : > { %1360 = vrot.lane.b32.xlu1 %v3963_v34, %s4848_s25 }
 0x243   : > { %v1249_v35 = vld [vmem:[#allocation4 + $0x18] sm:$0xf] }
 0x244   : > { %v3965_v36 = vcombine.low %v1249_v35, %v1249_v35  ;;  %v4521_v29 = vld [vmem:[#allocation4 + $0x18] ss:$0 sps:$4 sm:$0xff]  }
 0x246   : > { %1411 = vrot.lane.b32.xlu1 %v3965_v36, %s4848_s25 }
 0x2ac   : > { %v1258_v37 = vpop.permute.xlu0 %1257 }
 0x2ad   : > { %v1264_v38 = vsel %vm1259_vm10, %v1258_v37, 0 }
 0x2ae   : > { %4164 = vmatpush3.bf16.xpose.msra.mxu0 %v1264_v38 }
 0x2af   : > { %4181 = vmatprep.subr.bf16.mxu0 %v4846_v13 }
 0x2b0   : > { %v1310_v39 = vpop.permute.xlu0 %1309 }
 0x2b1   : > { %v1315_v40 = vsel %vm1259_vm10, %v1310_v39, 0 }
 0x2b2   : > { %4170 = vmatpush3.bf16.xpose.msra.mxu1 %v1315_v40  ;;  %v1253_v40 = vld [vmem:[#allocation4 + $0x1c] sm:$0xf] }
 0x2b3   : > { %4175 = vmatprep.subr.bf16.mxu1 %v4846_v13 }
 0x2b4   : > { %v1361_v41 = vpop.permute.xlu1 %1360 }
 0x2b5   : > { %4166 = vmatmul.mubr.msk.bf16.vlgmr.msra.gmra.mxu0 %vm1259_vm10, %v1246_v27  ;;  %v1366_v42 = vsel %vm1259_vm10, %v1361_v41, 0 }
 0x2b6   : > { %4183 = vmatprep.mubr.msk.bf16.mxu0 %vm4847_vm9, %v4846_v13 }
 0x2b8   : > { %v1412_v43 = vpop.permute.xlu1 %1411 }
 0x2b9   : > { %v1417_v44 = vsel %vm1259_vm10, %v1412_v43, 0  ;;  %4172 = vmatmul.mubr.msk.bf16.vlgmr.msra.gmra.mxu1 %vm1259_vm10, %v1247_v31 }
 0x2ba   : > { %4176 = vmatpush3.bf16.xpose.msra.mxu1 %v1366_v42  ;;  %4182 = vmatpush3.bf16.xpose.msra.mxu0 %v1417_v44  ;;  %v1650_v42 = vsel %vm1239_vm6, %v1253_v40, 0 }
 0x2bb   : > { %4177 = vmatprep.mubr.msk.bf16.mxu1 %vm4847_vm9, %v4846_v13  ;;  %4187 = vmatprep.subr.bf16.mxu1 %v4846_v13 }
 0x2bc   : > { %4193 = vmatprep.subr.bf16.mxu0 %v4846_v13 }
 0x2c1   : > { %4178 = vmatmul.mubr.msk.bf16.vlgmr.msra.gmra.mxu1 %vm1259_vm10, %v1248_v33  ;;  %4184 = vmatmul.mubr.msk.bf16.vlgmr.msra.gmra.mxu0 %vm1259_vm10, %v1249_v35  ;;  %v1252_v35 = vld [vmem:[#allocation4 + $0x14] sm:$0xf] }
 0x2c2   : > { %4188 = vmatpush3.bf16.msra.mxu1 %v1512_v47  ;;  %4194 = vmatpush3.bf16.msra.mxu0 %v1558_v48  ;;  %v1604_v38 = vsel %vm1239_vm6, %v1252_v35, 0 }
 0x2c3   : > { %4189 = vmatprep.mubr.msk.bf16.mxu1 %vm4847_vm9, %v4846_v13  ;;  %4199 = vmatprep.subr.bf16.mxu1 %v4846_v13 }
 0x2c4   : > { %4195 = vmatprep.mubr.msk.bf16.mxu0 %vm4847_vm9, %v4846_v13  ;;  %4205 = vmatprep.subr.bf16.mxu0 %v4846_v13 }
 0x375   : > { %v1300_v49 = vpop.f32.mrf.mxu0 }
 0x376   : > { %v1460_v50 = vsel %vm1459_vm11, %v1300_v49, -inf }
 0x377   : > { %1461 = vmax.xlane.f32.xlu0 %v1460_v50  ;;  %v4167_v51 = vpop.f32.mrf.mxu0 }
 0x379   : > { %v1303_v52 = vpop.f32.mrf.mxu0  ;;  %v1351_v53 = vpop.f32.mrf.mxu1 }
 0x37a   : > { %v1463_v54 = vsel %vm1459_vm11, %v1351_v53, -inf }
 0x37b   : > { %v4168_v55 = vpop.f32.mrf.mxu0  ;;  %1464 = vmax.xlane.f32.xlu1 %v1463_v54  ;;  %v4173_v56 = vpop.f32.mrf.mxu1 }
 0x37d   : > { %v1354_v57 = vpop.f32.mrf.mxu1 }
 0x37f   : > { %v4174_v58 = vpop.f32.mrf.mxu1 }
 0x381   : > { %v1402_v59 = vpop.f32.mrf.mxu1  ;;  %v1453_v60 = vpop.f32.mrf.mxu0 }
 0x382   : > { %v1466_v61 = vsel %vm1459_vm11, %v1402_v59, -inf  ;;  %v1469_v2 = vsel %vm1459_vm11, %v1453_v60, -inf }
 0x383   : > { %v4185_v62 = vpop.f32.mrf.mxu0  ;;  %1467 = vmax.xlane.f32.xlu0 %v1466_v61  ;;  %v4179_v63 = vpop.f32.mrf.mxu1 }
 0x385   : > { %v1405_v0 = vpop.f32.mrf.mxu1  ;;  %v1456_v1 = vpop.f32.mrf.mxu0 }
 0x387   : > { %v4186_v3 = vpop.f32.mrf.mxu0  ;;  %1470 = vmax.xlane.f32.xlu0 %v1469_v2  ;;  %v4180_v4 = vpop.f32.mrf.mxu1 }
 0x400   : > { %v1462_v5 = vpop.xlane.xlu0 %1461 }
 0x401   : > { %v1472_v6 = vsub.f32 %v1300_v49, %v1462_v5 }
 0x403   : > { %v1476_v7 = vmul.f32 1.442695, %v1472_v6 }
 0x404   : > { %v1465_v8 = vpop.xlane.xlu1 %1464 }
 0x405   : > { %4558 = vpow2.f32 %v1476_v7  ;;  %v1473_v9 = vsub.f32 %v1351_v53, %v1465_v8 }
 0x407   : > { %v1478_v10 = vmul.f32 1.442695, %v1473_v9 }
 0x409   : > { %4560 = vpow2.f32 %v1478_v10 }
 0x40c   : > { %v1468_v11 = vpop.xlane.xlu0 %1467 }
 0x40d   : > { %v1474_v23 = vsub.f32 %v1402_v59, %v1468_v11 }
 0x40f   : > { %v1480_v24 = vmul.f32 1.442695, %v1474_v23  ;;  %v4522_v23 = vld [vmem:[#allocation4 + $0x4] ss:$0 sps:$4 sm:$0xff]  }
 0x410   : > { %v1471_v12 = vpop.xlane.xlu0 %1470 }
 0x411   : > { %v1475_v14 = vsub.f32 %v1453_v60, %v1471_v12 }
 0x412   : > { %v4559_v15 = vpop.eup %4558 }
 0x413   : > { %v1482_v16 = vmul.f32 1.442695, %v1475_v14  ;;  %v1484_v17 = vsel %vm1459_vm11, %v4559_v15, 0.0 }
 0x414   : > { %1485 = vadd.xlane.f32.xlu1 %v1484_v17 }
 0x415   : > { %4562 = vpow2.f32 %v1482_v16 }
 0x416   : > { %v4561_v18 = vpop.eup %4560  ;;  %4564 = vpow2.f32 %v1480_v24 }
 0x417   : > { %v1487_v19 = vsel %vm1459_vm11, %v4561_v18, 0.0 }
 0x418   : > { %1488 = vadd.xlane.f32.xlu0 %v1487_v19 }
 0x422   : > { %v4563_v20 = vpop.eup %4562 }
 0x423   : > { %v1493_v21 = vsel %vm1459_vm11, %v4563_v20, 0.0  ;;  %v4565_v27 = vpop.eup %4564 }
 0x424   : > { %1494 = vadd.xlane.f32.xlu0 %v1493_v21  ;;  %v1490_v28 = vsel %vm1459_vm11, %v4565_v27, 0.0 }
 0x425   : > { %1709 = vrot.lane.b32.xlu1 %v4518_v22, %s4849_s19 }
 0x43a   : > { %1762 = vrot.lane.b32.xlu0 %v4519_v25, %s4849_s19 }
 0x43e   : > { %1815 = vrot.lane.b32.xlu0 %v4520_v26, %s4849_s19 }
 0x442   : > { %1813 = vrot.lane.b32.xlu0 %v4520_v26, %s4850_s23 }
 0x449   : > { %1491 = vadd.xlane.f32.xlu1 %v1490_v28 }
 0x45a   : > { %1707 = vrot.lane.b32.xlu1 %v4518_v22, %s4850_s23 }
 0x45e   : > { %1760 = vrot.lane.b32.xlu1 %v4519_v25, %s4850_s23 }
 0x462   : > { %1868 = vrot.lane.b32.xlu1 %v4521_v29, %s4849_s19 }
 0x466   : > { %1866 = vrot.lane.b32.xlu1 %v4521_v29, %s4850_s23 }
 0x49d   : > { %v1486_v30 = vpop.xlane.xlu1 %1485 }
 0x49e   : > { %4566 = vrcp.f32 %v1486_v30 }
 0x4a1   : > { %v1489_v31 = vpop.xlane.xlu0 %1488  ;;  %v1710_v48 = vpop.permute.xlu1 %1709 }
 0x4a2   : > { %4568 = vrcp.f32 %v1489_v31  ;;  %v1715_v57 = vsel %vm1259_vm10, %v1710_v48, 0 }
 0x4ab   : > { %v4567_v32 = vpop.eup %4566 }
 0x4ac   : > { %v1500_v33 = vmul.f32 %v4567_v32, %v4559_v15 }
 0x4ad   : > { %v1495_v34 = vpop.xlane.xlu0 %1494 }
 0x4ae   : > { %4570 = vrcp.f32 %v1495_v34  ;;  %v1504_v36 = vpack.c.bf16 %v1500_v33, %v1500_v33 }
 0x4af   : > { %v4569_v37 = vpop.eup %4568 }
 0x4b0   : > { %4190 = vmatmul.mubr.msk.bf16.vlgmr.msra.gmra.mxu1 %vm1459_vm11, %v1504_v36  ;;  %v1501_v39 = vmul.f32 %v4569_v37, %v4561_v18 }
 0x4b1   : > { %4200 = vmatpush3.bf16.msra.mxu1 %v1604_v38  ;;  %4201 = vmatprep.mubr.msk.bf16.mxu1 %vm4847_vm9, %v4846_v13  ;;  %v1763_v45 = vpop.permute.xlu0 %1762 }
 0x4b2   : > { %v1505_v41 = vpack.c.bf16 %v1501_v39, %v1501_v39  ;;  %4211 = vmatprep.subr.bf16.mxu1 %v4846_v13  ;;  %v1768_v47 = vsel %vm1259_vm10, %v1763_v45, 0 }
 0x4b4   : > { %4196 = vmatmul.mubr.msk.bf16.vlgmr.msra.gmra.mxu0 %vm1459_vm11, %v1505_v41 }
 0x4b5   : > { %4206 = vmatpush3.bf16.msra.mxu0 %v1650_v42  ;;  %4207 = vmatprep.mubr.msk.bf16.mxu0 %vm4847_vm9, %v4846_v13  ;;  %v1816_v59 = vpop.permute.xlu0 %1815 }
 0x4b6   : > { %4217 = vmatprep.subr.bf16.mxu0 %v4846_v13  ;;  %v1821_v60 = vsel %vm1259_vm10, %v1816_v59, 0 }
 0x4b9   : > { %v1814_v61 = vpop.permute.xlu0 %1813 }
 0x4bb   : > { %v4571_v43 = vpop.eup %4570 }
 0x4bc   : > { %v1503_v44 = vmul.f32 %v4571_v43, %v4563_v20 }
 0x4be   : > { %v1507_v46 = vpack.c.bf16 %v1503_v44, %v1503_v44 }
 0x4c0   : > { %4208 = vmatmul.mubr.msk.bf16.vlgmr.msra.gmra.mxu0 %vm1459_vm11, %v1507_v46 }
 0x4c1   : > { %4218 = vmatpush3.bf16.xpose.msra.mxu0 %v1768_v47  ;;  %4219 = vmatprep.mubr.msk.bf16.mxu0 %vm4847_vm9, %v4846_v13 }
 0x4c2   : > { %4229 = vmatprep.subr.bf16.mxu0 %v4846_v13 }
 0x4d2   : > { %v1492_v49 = vpop.xlane.xlu1 %1491 }
 0x4d3   : > { %4572 = vrcp.f32 %v1492_v49  ;;  %v4523_v49 = vld [vmem:[#allocation4 + $0xc] ss:$0 sps:$4 sm:$0xff]  }
 0x4d6   : > { %v1708_v50 = vpop.permute.xlu1 %1707 }
 0x4da   : > { %v1761_v51 = vpop.permute.xlu1 %1760 }
 0x4db   : > { %4220 = vmatmul.mubr.msk.bf16.vlgmr.msra.gmra.mxu0 %vm1259_vm10, %v1761_v51 }
 0x4dc   : > { %4231 = vmatprep.mubr.msk.bf16.mxu0 %vm4847_vm9, %v4846_v13 }
 0x4de   : > { %v1869_v52 = vpop.permute.xlu1 %1868 }
 0x4df   : > { %v1874_v53 = vsel %vm1259_vm10, %v1869_v52, 0 }
 0x4e0   : > { %v4573_v54 = vpop.eup %4572  ;;  %4230 = vmatpush3.bf16.xpose.msra.mxu0 %v1874_v53  ;;  %v4524_v53 = vld [vmem:[#allocation4 + $0x14] ss:$0 sps:$4 sm:$0xff]  }
 0x4e1   : > { %v1502_v55 = vmul.f32 %v4573_v54, %v4565_v27  ;;  %4241 = vmatprep.subr.bf16.mxu0 %v4846_v13  ;;  %v4525_v54 = vld [vmem:[#allocation4 + $0x1c] ss:$0 sps:$4 sm:$0xff]  }
 0x4e2   : > { %v1867_v58 = vpop.permute.xlu1 %1866 }
 0x4e3   : > { %v1506_v56 = vpack.c.bf16 %v1502_v55, %v1502_v55 }
 0x4e5   : > { %4202 = vmatmul.mubr.msk.bf16.vlgmr.msra.gmra.mxu1 %vm1459_vm11, %v1506_v56 }
 0x4e6   : > { %4212 = vmatpush3.bf16.xpose.msra.mxu1 %v1715_v57  ;;  %4213 = vmatprep.mubr.msk.bf16.mxu1 %vm4847_vm9, %v4846_v13 }
 0x4e7   : > { %4232 = vmatmul.mubr.msk.bf16.vlgmr.msra.gmra.mxu0 %vm1259_vm10, %v1867_v58  ;;  %4223 = vmatprep.subr.bf16.mxu1 %v4846_v13 }
 0x4e8   : > { %4243 = vmatprep.mubr.msk.bf16.mxu0 %vm4847_vm9, %v4846_v13 }
 0x4ed   : > { %4214 = vmatmul.mubr.msk.bf16.vlgmr.msra.gmra.mxu1 %vm1259_vm10, %v1708_v50 }
 0x4ee   : > { %4224 = vmatpush3.bf16.xpose.msra.mxu1 %v1821_v60  ;;  %4225 = vmatprep.mubr.msk.bf16.mxu1 %vm4847_vm9, %v4846_v13  ;;  %v4526_v60 = vld [vmem:[#allocation4] ss:$0 sps:$4 sm:$0xff]  }
 0x4ef   : > { %4235 = vmatprep.subr.bf16.mxu1 %v4846_v13 }
 0x4f5   : > { %4226 = vmatmul.mubr.msk.bf16.vlgmr.msra.gmra.mxu1 %vm1259_vm10, %v1814_v61 }
 0x4f6   : > { %4237 = vmatprep.mubr.msk.bf16.mxu1 %vm4847_vm9, %v4846_v13 }
 0x570   : > { %v1548_v62 = vpop.f32.mrf.mxu1 }
 0x571   : > { %1692 = vst.msk [vmem:[#allocation3] sm:$0xff] %vm1259_vm10, %v1548_v62  ;;  %v4527_v62 = vld [vmem:[#allocation4 + $0x10] ss:$0 sps:$4 sm:$0xff]  }
 0x572   : > { %v4191_v63 = vpop.f32.mrf.mxu1 }
 0x573   : > { %v4528_v63 = vld [vmem:[#allocation4 + $0x8] ss:$0 sps:$4 sm:$0xff]  }
 0x574   : > { %v1551_v0 = vpop.f32.mrf.mxu1  ;;  %v1594_v1 = vpop.f32.mrf.mxu0 }
 0x575   : > { %1693 = vst.msk [vmem:[#allocation3 + $0x8] sm:$0xff] %vm1259_vm10, %v1594_v1  ;;  %v4529_v0 = vld [vmem:[#allocation4 + $0x18] ss:$0 sps:$4 sm:$0xff]  }
 0x576   : > { %v4192_v2 = vpop.f32.mrf.mxu1  ;;  %v4197_v3 = vpop.f32.mrf.mxu0 }
 0x578   : > { %v1597_v4 = vpop.f32.mrf.mxu0 }
 0x57a   : > { %v4198_v5 = vpop.f32.mrf.mxu0 }
 0x580   : > { %v1686_v6 = vpop.f32.mrf.mxu0 }
 0x581   : > { %1695 = vst.msk [vmem:[#allocation3 + $0x18] sm:$0xff] %vm1259_vm10, %v1686_v6 }
 0x582   : > { %v4209_v7 = vpop.f32.mrf.mxu0 }
 0x584   : > { %v1689_v8 = vpop.f32.mrf.mxu0 }
 0x586   : > { %v4210_v9 = vpop.f32.mrf.mxu0 }
 0x59b   : > { %v1804_v10 = vpop.f32.mrf.mxu0 }
 0x59c   : > { %v1919_v11 = vsel %vm1459_vm11, %v1804_v10, -inf }
 0x59d   : > { %1920 = vmax.xlane.f32.xlu1 %v1919_v11  ;;  %v4221_v12 = vpop.f32.mrf.mxu0 }
 0x59f   : > { %v1807_v14 = vpop.f32.mrf.mxu0 }
 0x5a1   : > { %v4222_v15 = vpop.f32.mrf.mxu0 }
 0x5a5   : > { %v1640_v16 = vpop.f32.mrf.mxu1 }
 0x5a6   : > { %1694 = vst.msk [vmem:[#allocation3 + $0x10] sm:$0xff] %vm1259_vm10, %v1640_v16 }
 0x5a7   : > { %v4203_v17 = vpop.f32.mrf.mxu1  ;;  %v1910_v18 = vpop.f32.mrf.mxu0 }
 0x5a8   : > { %v1925_v34 = vsel %vm1459_vm11, %v1910_v18, -inf }
 0x5a9   : > { %v1643_v19 = vpop.f32.mrf.mxu1  ;;  %v4233_v20 = vpop.f32.mrf.mxu0 }
 0x5ab   : > { %v4204_v21 = vpop.f32.mrf.mxu1  ;;  %v1913_v22 = vpop.f32.mrf.mxu0 }
 0x5ad   : > { %v1751_v24 = vpop.f32.mrf.mxu1  ;;  %v4234_v25 = vpop.f32.mrf.mxu0 }
 0x5ae   : > { %1967 = vrot.lane.b32.xlu1 %v4522_v23, %s4850_s23  ;;  %v1916_v26 = vsel %vm1459_vm11, %v1751_v24, -inf }
 0x5af   : > { %v4215_v27 = vpop.f32.mrf.mxu1  ;;  %1917 = vmax.xlane.f32.xlu0 %v1916_v26 }
 0x5b1   : > { %v1754_v28 = vpop.f32.mrf.mxu1 }
 0x5b3   : > { %v4216_v29 = vpop.f32.mrf.mxu1 }
 0x5b5   : > { %v1857_v30 = vpop.f32.mrf.mxu1 }
 0x5b6   : > { %v1922_v31 = vsel %vm1459_vm11, %v1857_v30, -inf }
 0x5b7   : > { %1923 = vmax.xlane.f32.xlu0 %v1922_v31  ;;  %v4227_v32 = vpop.f32.mrf.mxu1 }
 0x5b9   : > { %v1860_v33 = vpop.f32.mrf.mxu1 }
 0x5bb   : > { %1926 = vmax.xlane.f32.xlu0 %v1925_v34  ;;  %v4228_v35 = vpop.f32.mrf.mxu1 }
 0x626   : > { %v1921_v36 = vpop.xlane.xlu1 %1920 }
 0x627   : > { %v1929_v37 = vsub.f32 %v1804_v10, %v1921_v36 }
 0x629   : > { %v1934_v38 = vmul.f32 1.442695, %v1929_v37 }
 0x62a   : > { %v1968_v39 = vpop.permute.xlu1 %1967 }
 0x62b   : > { %4574 = vpow2.f32 %v1934_v38  ;;  %v1973_v40 = vsel %vm1239_vm6, %v1968_v39, 0 }
 0x62c   : > { %4236 = vmatpush3.bf16.msra.mxu1 %v1973_v40 }
 0x62d   : > { %4247 = vmatprep.subr.bf16.mxu1 %v4846_v13 }
 0x638   : > { %v4575_v41 = vpop.eup %4574  ;;  %v1918_v42 = vpop.xlane.xlu0 %1917 }
 0x639   : > { %v1928_v43 = vsub.f32 %v1751_v24, %v1918_v42  ;;  %v1943_v44 = vsel %vm1459_vm11, %v4575_v41, 0.0 }
 0x63a   : > { %1944 = vadd.xlane.f32.xlu0 %v1943_v44 }
 0x63b   : > { %v1932_v45 = vmul.f32 1.442695, %v1928_v43 }
 0x63d   : > { %4576 = vpow2.f32 %v1932_v45 }
 0x640   : > { %v1924_v48 = vpop.xlane.xlu0 %1923 }
 0x641   : > { %v1930_v56 = vsub.f32 %v1857_v30, %v1924_v48 }
 0x643   : > { %v1936_v58 = vmul.f32 1.442695, %v1930_v56 }
 0x644   : > { %v1927_v50 = vpop.xlane.xlu0 %1926 }
 0x645   : > { %v1931_v51 = vsub.f32 %v1910_v18, %v1927_v50 }
 0x647   : > { %v1938_v52 = vmul.f32 1.442695, %v1931_v51 }
 0x649   : > { %4578 = vpow2.f32 %v1938_v52 }
 0x64a   : > { %v4577_v46 = vpop.eup %4576  ;;  %4580 = vpow2.f32 %v1936_v58 }
 0x64b   : > { %v1940_v47 = vsel %vm1459_vm11, %v4577_v46, 0.0 }
 0x64c   : > { %1941 = vadd.xlane.f32.xlu1 %v1940_v47 }
 0x650   : > { %2018 = vrot.lane.b32.xlu0 %v4523_v49, %s4850_s23 }
 0x656   : > { %v4579_v55 = vpop.eup %4578 }
 0x657   : > { %v1949_v57 = vsel %vm1459_vm11, %v4579_v55, 0.0  ;;  %v5332_v59 = vpop.eup %4580 }
 0x658   : > { %v1946_v61 = vsel %vm1459_vm11, %v5332_v59, 0.0 }
 0x65d   : > { %2069 = vrot.lane.b32.xlu1 %v4524_v53, %s4850_s23 }
 0x661   : > { %2120 = vrot.lane.b32.xlu1 %v4525_v54, %s4850_s23 }
 0x66f   : > { %1950 = vadd.xlane.f32.xlu0 %v1949_v57 }
 0x685   : > { %1947 = vadd.xlane.f32.xlu1 %v1946_v61  ;;  %2202 = vrot.lane.b32.xlu0 %v4526_v60, %s4851_s9 }
 0x689   : > { %2200 = vrot.lane.b32.xlu0 %v4526_v60, %s4852_s17 }
 0x68d   : > { %2308 = vrot.lane.b32.xlu0 %v4527_v62, %s4851_s9 }
 0x691   : > { %2306 = vrot.lane.b32.xlu0 %v4527_v62, %s4852_s17 }
 0x696   : > { %2255 = vrot.lane.b32.xlu1 %v4528_v63, %s4851_s9 }
 0x69a   : > { %2253 = vrot.lane.b32.xlu1 %v4528_v63, %s4852_s17 }
 0x69e   : > { %2361 = vrot.lane.b32.xlu1 %v4529_v0, %s4851_s9 }
 0x6a2   : > { %2359 = vrot.lane.b32.xlu1 %v4529_v0, %s4852_s17  ;;  %v4530_v0 = vld [vmem:[#allocation4 + $0x4] ss:$0 sps:$4 sm:$0xff]  }
 0x6c3   : > { %v1945_v1 = vpop.xlane.xlu0 %1944 }
 0x6c4   : > { %4582 = vrcp.f32 %v1945_v1 }
 0x6c7   : > { %v2019_v2 = vpop.permute.xlu0 %2018 }
 0x6c8   : > { %v2024_v3 = vsel %vm1239_vm6, %v2019_v2, 0 }
 0x6c9   : > { %4242 = vmatpush3.bf16.msra.mxu0 %v2024_v3 }
 0x6ca   : > { %4253 = vmatprep.subr.bf16.mxu0 %v4846_v13 }
 0x6d1   : > { %v4583_v4 = vpop.eup %4582 }
 0x6d2   : > { %v1957_v5 = vmul.f32 %v4583_v4, %v4575_v41 }
 0x6d4   : > { %v1961_v6 = vpack.c.bf16 %v1957_v5, %v1957_v5 }
 0x6d5   : > { %v1942_v7 = vpop.xlane.xlu1 %1941 }
 0x6d6   : > { %4584 = vrcp.f32 %v1942_v7  ;;  %4244 = vmatmul.mubr.msk.bf16.vlgmr.msra.gmra.mxu0 %vm1459_vm11, %v1961_v6 }
 0x6d7   : > { %4255 = vmatprep.mubr.msk.bf16.mxu0 %vm4847_vm9, %v4846_v13 }
 0x6d9   : > { %v2070_v8 = vpop.permute.xlu1 %2069 }
 0x6da   : > { %v2075_v15 = vsel %vm1239_vm6, %v2070_v8, 0 }
 0x6dd   : > { %v2121_v9 = vpop.permute.xlu1 %2120 }
 0x6de   : > { %v2126_v10 = vsel %vm1239_vm6, %v2121_v9, 0 }
 0x6df   : > { %4254 = vmatpush3.bf16.msra.mxu0 %v2126_v10 }
 0x6e0   : > { %4265 = vmatprep.subr.bf16.mxu0 %v4846_v13 }
 0x6e3   : > { %v4585_v11 = vpop.eup %4584 }
 0x6e4   : > { %v1956_v12 = vmul.f32 %v4585_v11, %v4577_v46 }
 0x6e6   : > { %v1960_v14 = vpack.c.bf16 %v1956_v12, %v1956_v12 }
 0x6e8   : > { %4238 = vmatmul.mubr.msk.bf16.vlgmr.msra.gmra.mxu1 %vm1459_vm11, %v1960_v14 }
 0x6e9   : > { %4248 = vmatpush3.bf16.msra.mxu1 %v2075_v15  ;;  %4249 = vmatprep.mubr.msk.bf16.mxu1 %vm4847_vm9, %v4846_v13 }
 0x6ea   : > { %4259 = vmatprep.subr.bf16.mxu1 %v4846_v13 }
 0x6f8   : > { %v1951_v16 = vpop.xlane.xlu0 %1950 }
 0x6f9   : > { %4586 = vrcp.f32 %v1951_v16 }
 0x6fc   : > { %v2203_v24 = vpop.permute.xlu0 %2202 }
 0x6fd   : > { %v2208_v31 = vsel %vm1259_vm10, %v2203_v24, 0 }
 0x700   : > { %v2201_v30 = vpop.permute.xlu0 %2200 }
 0x704   : > { %v2309_v33 = vpop.permute.xlu0 %2308 }
 0x705   : > { %v2314_v34 = vsel %vm1259_vm10, %v2309_v33, 0 }
 0x706   : > { %v4587_v17 = vpop.eup %4586 }
 0x707   : > { %v1959_v18 = vmul.f32 %v4587_v17, %v4579_v55 }
 0x708   : > { %v2307_v35 = vpop.permute.xlu0 %2306 }
 0x709   : > { %v1963_v19 = vpack.c.bf16 %v1959_v18, %v1959_v18 }
 0x70b   : > { %4256 = vmatmul.mubr.msk.bf16.vlgmr.msra.gmra.mxu0 %vm1459_vm11, %v1963_v19 }
 0x70c   : > { %4267 = vmatprep.mubr.msk.bf16.mxu0 %vm4847_vm9, %v4846_v13 }
 0x70e   : > { %v1948_v20 = vpop.xlane.xlu1 %1947 }
 0x70f   : > { %4588 = vrcp.f32 %v1948_v20 }
 0x712   : > { %v2256_v21 = vpop.permute.xlu1 %2255 }
 0x713   : > { %v2261_v22 = vsel %vm1259_vm10, %v2256_v21, 0 }
 0x714   : > { %4266 = vmatpush3.bf16.xpose.msra.mxu0 %v2261_v22 }
 0x715   : > { %4277 = vmatprep.subr.bf16.mxu0 %v4846_v13 }
 0x716   : > { %v2254_v23 = vpop.permute.xlu1 %2253 }
 0x71a   : > { %v2362_v25 = vpop.permute.xlu1 %2361 }
 0x71b   : > { %v2367_v26 = vsel %vm1259_vm10, %v2362_v25, 0  ;;  %4268 = vmatmul.mubr.msk.bf16.vlgmr.msra.gmra.mxu0 %vm1259_vm10, %v2254_v23  ;;  %v4531_v23 = vld [vmem:[#allocation4 + $0xc] ss:$0 sps:$4 sm:$0xff]  }
 0x71c   : > { %v4589_v27 = vpop.eup %4588  ;;  %4278 = vmatpush3.bf16.xpose.msra.mxu0 %v2367_v26  ;;  %4279 = vmatprep.mubr.msk.bf16.mxu0 %vm4847_vm9, %v4846_v13  ;;  %v4532_v26 = vld [vmem:[#allocation4 + $0x14] ss:$0 sps:$4 sm:$0xff]  }
 0x71d   : > { %v1958_v28 = vmul.f32 %v4589_v27, %v5332_v59  ;;  %4289 = vmatprep.subr.bf16.mxu0 %v4846_v13 }
 0x71e   : > { %v2360_v32 = vpop.permute.xlu1 %2359 }
 0x71f   : > { %v1962_v29 = vpack.c.bf16 %v1958_v28, %v1958_v28  ;;  %v4533_v28 = vld [vmem:[#allocation4 + $0x1c] ss:$0 sps:$4 sm:$0xff]  }
 0x721   : > { %4250 = vmatmul.mubr.msk.bf16.vlgmr.msra.gmra.mxu1 %vm1459_vm11, %v1962_v29 }
 0x722   : > { %4260 = vmatpush3.bf16.xpose.msra.mxu1 %v2208_v31  ;;  %4261 = vmatprep.mubr.msk.bf16.mxu1 %vm4847_vm9, %v4846_v13 }
 0x723   : > { %4280 = vmatmul.mubr.msk.bf16.vlgmr.msra.gmra.mxu0 %vm1259_vm10, %v2360_v32  ;;  %4271 = vmatprep.subr.bf16.mxu1 %v4846_v13 }
 0x724   : > { %4291 = vmatprep.mubr.msk.bf16.mxu0 %vm4847_vm9, %v4846_v13 }
 0x729   : > { %4262 = vmatmul.mubr.msk.bf16.vlgmr.msra.gmra.mxu1 %vm1259_vm10, %v2201_v30 }
 0x72a   : > { %4272 = vmatpush3.bf16.xpose.msra.mxu1 %v2314_v34  ;;  %4273 = vmatprep.mubr.msk.bf16.mxu1 %vm4847_vm9, %v4846_v13 }
 0x72b   : > { %4283 = vmatprep.subr.bf16.mxu1 %v4846_v13 }
 0x731   : > { %4274 = vmatmul.mubr.msk.bf16.vlgmr.msra.gmra.mxu1 %vm1259_vm10, %v2307_v35  ;;  %v4534_v35 = vld [vmem:[#allocation4] ss:$0 sps:$4 sm:$0xff]  }
 0x732   : > { %4285 = vmatprep.mubr.msk.bf16.mxu1 %vm4847_vm9, %v4846_v13 }
 0x796   : > { %v5383_v36 = vpop.f32.mrf.mxu0 }
 0x798   : > { %v4245_v37 = vpop.f32.mrf.mxu0 }
 0x799   : > { %v4535_v37 = vld [vmem:[#allocation4 + $0x10] ss:$0 sps:$4 sm:$0xff]  }
 0x79a   : > { %v2063_v38 = vpop.f32.mrf.mxu0 }
 0x79b   : > { %v4536_v38 = vld [vmem:[#allocation4 + $0x8] ss:$0 sps:$4 sm:$0xff]  }
 0x79c   : > { %v4246_v39 = vpop.f32.mrf.mxu0 }
 0x79d   : > { %v4537_v39 = vld [vmem:[#allocation4 + $0x18] ss:$0 sps:$4 sm:$0xff]  }
 0x7a8   : > { %v5385_v40 = vpop.f32.mrf.mxu1 }
 0x7aa   : > { %v4239_v41 = vpop.f32.mrf.mxu1 }
 0x7ac   : > { %v2012_v42 = vpop.f32.mrf.mxu1 }
 0x7ae   : > { %v4240_v43 = vpop.f32.mrf.mxu1 }
 0x7cb   : > { %v5387_v44 = vpop.f32.mrf.mxu0 }
 0x7cd   : > { %v4257_v45 = vpop.f32.mrf.mxu0 }
 0x7cf   : > { %v2165_v46 = vpop.f32.mrf.mxu0 }
 0x7d1   : > { %v4258_v47 = vpop.f32.mrf.mxu0 }
 0x7db   : > { %v2297_v48 = vpop.f32.mrf.mxu0 }
 0x7dc   : > { %v2412_v49 = vsel %vm1459_vm11, %v2297_v48, -inf }
 0x7dd   : > { %2413 = vmax.xlane.f32.xlu1 %v2412_v49  ;;  %v4269_v50 = vpop.f32.mrf.mxu0 }
 0x7df   : > { %v2300_v51 = vpop.f32.mrf.mxu0 }
 0x7e1   : > { %v5390_v52 = vpop.f32.mrf.mxu1  ;;  %v4270_v53 = vpop.f32.mrf.mxu0 }
 0x7e3   : > { %v4251_v54 = vpop.f32.mrf.mxu1  ;;  %v2403_v55 = vpop.f32.mrf.mxu0 }
 0x7e4   : > { %v2418_v7 = vsel %vm1459_vm11, %v2403_v55, -inf }
 0x7e5   : > { %v2114_v56 = vpop.f32.mrf.mxu1  ;;  %v4281_v57 = vpop.f32.mrf.mxu0 }
 0x7e7   : > { %v4252_v58 = vpop.f32.mrf.mxu1  ;;  %v2406_v59 = vpop.f32.mrf.mxu0 }
 0x7e9   : > { %v2244_v60 = vpop.f32.mrf.mxu1  ;;  %v4282_v61 = vpop.f32.mrf.mxu0 }
 0x7ea   : > { %v2409_v62 = vsel %vm1459_vm11, %v2244_v60, -inf }
 0x7eb   : > { %2410 = vmax.xlane.f32.xlu0 %v2409_v62  ;;  %v4263_v63 = vpop.f32.mrf.mxu1 }
 0x7ed   : > { %v2247_v1 = vpop.f32.mrf.mxu1 }
 0x7ee   : > { %2460 = vrot.lane.b32.xlu1 %v4530_v0, %s4852_s17 }
 0x7ef   : > { %v4264_v2 = vpop.f32.mrf.mxu1 }
 0x7f1   : > { %v2350_v3 = vpop.f32.mrf.mxu1 }
 0x7f2   : > { %v2415_v4 = vsel %vm1459_vm11, %v2350_v3, -inf }
 0x7f3   : > { %2416 = vmax.xlane.f32.xlu0 %v2415_v4  ;;  %v4275_v5 = vpop.f32.mrf.mxu1 }
 0x7f5   : > { %v2353_v6 = vpop.f32.mrf.mxu1 }
 0x7f7   : > { %2419 = vmax.xlane.f32.xlu0 %v2418_v7  ;;  %v4276_v8 = vpop.f32.mrf.mxu1 }
 0x866   : > { %v2414_v9 = vpop.xlane.xlu1 %2413 }
 0x867   : > { %v2422_v10 = vsub.f32 %v2297_v48, %v2414_v9 }
 0x869   : > { %v2427_v11 = vmul.f32 1.442695, %v2422_v10 }
 0x86a   : > { %v2461_v12 = vpop.permute.xlu1 %2460 }
 0x86b   : > { %4590 = vpow2.f32 %v2427_v11  ;;  %v2466_v14 = vsel %vm1239_vm6, %v2461_v12, 0 }
 0x86c   : > { %4284 = vmatpush3.bf16.msra.mxu1 %v2466_v14 }
 0x86d   : > { %4295 = vmatprep.subr.bf16.mxu1 %v4846_v13 }
 0x874   : > { %v2411_v15 = vpop.xlane.xlu0 %2410 }
 0x875   : > { %v2421_v16 = vsub.f32 %v2244_v60, %v2411_v15 }
 0x877   : > { %v2425_v17 = vmul.f32 1.442695, %v2421_v16 }
 0x878   : > { %v4591_v18 = vpop.eup %4590 }
 0x879   : > { %4592 = vpow2.f32 %v2425_v17  ;;  %v2436_v19 = vsel %vm1459_vm11, %v4591_v18, 0.0 }
 0x87a   : > { %2437 = vadd.xlane.f32.xlu0 %v2436_v19 }
 0x87c   : > { %v2417_v22 = vpop.xlane.xlu0 %2416 }
 0x87d   : > { %v2423_v29 = vsub.f32 %v2350_v3, %v2417_v22 }
 0x87f   : > { %v2429_v31 = vmul.f32 1.442695, %v2423_v29 }
 0x880   : > { %v2420_v24 = vpop.xlane.xlu0 %2419 }
 0x881   : > { %v2424_v25 = vsub.f32 %v2403_v55, %v2420_v24 }
 0x883   : > { %v2431_v27 = vmul.f32 1.442695, %v2424_v25 }
 0x885   : > { %4594 = vpow2.f32 %v2431_v27 }
 0x886   : > { %v4593_v20 = vpop.eup %4592  ;;  %4596 = vpow2.f32 %v2429_v31 }
 0x887   : > { %v2433_v21 = vsel %vm1459_vm11, %v4593_v20, 0.0 }
 0x888   : > { %2434 = vadd.xlane.f32.xlu1 %v2433_v21 }
 0x890   : > { %2511 = vrot.lane.b32.xlu0 %v4531_v23, %s4852_s17 }
 0x892   : > { %v4595_v30 = vpop.eup %4594 }
 0x893   : > { %v2442_v32 = vsel %vm1459_vm11, %v4595_v30, 0.0  ;;  %v5404_v33 = vpop.eup %4596 }
 0x894   : > { %v2439_v34 = vsel %vm1459_vm11, %v5404_v33, 0.0 }
 0x899   : > { %2562 = vrot.lane.b32.xlu1 %v4532_v26, %s4852_s17 }
 0x89d   : > { %2613 = vrot.lane.b32.xlu1 %v4533_v28, %s4852_s17 }
 0x8af   : > { %2443 = vadd.xlane.f32.xlu0 %v2442_v32 }
 0x8c1   : > { %2440 = vadd.xlane.f32.xlu1 %v2439_v34 }
 0x8c5   : > { %2695 = vrot.lane.b32.xlu0 %v4534_v35, %s4853_s30 }
 0x8c9   : > { %2693 = vrot.lane.b32.xlu0 %v4534_v35, %s4854_s27 }
 0x8cd   : > { %2801 = vrot.lane.b32.xlu0 %v4535_v37, %s4853_s30 }
 0x8d1   : > { %2799 = vrot.lane.b32.xlu0 %v4535_v37, %s4854_s27 }
 0x8d2   : > { %2748 = vrot.lane.b32.xlu1 %v4536_v38, %s4853_s30 }
 0x8d6   : > { %2746 = vrot.lane.b32.xlu1 %v4536_v38, %s4854_s27 }
 0x8da   : > { %2854 = vrot.lane.b32.xlu1 %v4537_v39, %s4853_s30 }
 0x8de   : > { %2852 = vrot.lane.b32.xlu1 %v4537_v39, %s4854_s27 }
 0x903   : > { %v2438_v41 = vpop.xlane.xlu0 %2437 }
 0x904   : > { %4598 = vrcp.f32 %v2438_v41 }
 0x907   : > { %v2512_v42 = vpop.permute.xlu0 %2511 }
 0x908   : > { %v2517_v43 = vsel %vm1239_vm6, %v2512_v42, 0 }
 0x909   : > { %4290 = vmatpush3.bf16.msra.mxu0 %v2517_v43 }
 0x90a   : > { %4301 = vmatprep.subr.bf16.mxu0 %v4846_v13 }
 0x911   : > { %v4599_v45 = vpop.eup %4598  ;;  %v2435_v46 = vpop.xlane.xlu1 %2434 }
 0x912   : > { %4600 = vrcp.f32 %v2435_v46  ;;  %v2450_v47 = vmul.f32 %v4599_v45, %v4591_v18  ;;  %v4538_v45 = vld [vmem:[#allocation4 + $0x4] ss:$0 sps:$4 sm:$0xff]  }
 0x914   : > { %v2454_v48 = vpack.c.bf16 %v2450_v47, %v2450_v47 }
 0x915   : > { %v2563_v49 = vpop.permute.xlu1 %2562 }
 0x916   : > { %4292 = vmatmul.mubr.msk.bf16.vlgmr.msra.gmra.mxu0 %vm1459_vm11, %v2454_v48  ;;  %v2568_v56 = vsel %vm1239_vm6, %v2563_v49, 0 }
 0x917   : > { %4303 = vmatprep.mubr.msk.bf16.mxu0 %vm4847_vm9, %v4846_v13 }
 0x919   : > { %v2614_v50 = vpop.permute.xlu1 %2613 }
 0x91a   : > { %v2619_v51 = vsel %vm1239_vm6, %v2614_v50, 0 }
 0x91b   : > { %4302 = vmatpush3.bf16.msra.mxu0 %v2619_v51 }
 0x91c   : > { %4313 = vmatprep.subr.bf16.mxu0 %v4846_v13 }
 0x91f   : > { %v4601_v53 = vpop.eup %4600 }
 0x920   : > { %v2449_v54 = vmul.f32 %v4601_v53, %v4593_v20 }
 0x922   : > { %v2453_v55 = vpack.c.bf16 %v2449_v54, %v2449_v54 }
 0x924   : > { %4286 = vmatmul.mubr.msk.bf16.vlgmr.msra.gmra.mxu1 %vm1459_vm11, %v2453_v55 }
 0x925   : > { %4296 = vmatpush3.bf16.msra.mxu1 %v2568_v56  ;;  %4297 = vmatprep.mubr.msk.bf16.mxu1 %vm4847_vm9, %v4846_v13 }
 0x926   : > { %4307 = vmatprep.subr.bf16.mxu1 %v4846_v13 }
 0x938   : > { %v2444_v57 = vpop.xlane.xlu0 %2443 }
 0x939   : > { %4602 = vrcp.f32 %v2444_v57 }
 0x93c   : > { %v2696_v1 = vpop.permute.xlu0 %2695 }
 0x93d   : > { %v2701_v8 = vsel %vm1259_vm10, %v2696_v1, 0 }
 0x940   : > { %v2694_v7 = vpop.permute.xlu0 %2693 }
 0x944   : > { %v2802_v10 = vpop.permute.xlu0 %2801 }
 0x945   : > { %v2807_v11 = vsel %vm1259_vm10, %v2802_v10, 0 }
 0x946   : > { %v4603_v58 = vpop.eup %4602 }
 0x947   : > { %v2452_v59 = vmul.f32 %v4603_v58, %v4595_v30 }
 0x948   : > { %v2800_v12 = vpop.permute.xlu0 %2799 }
 0x949   : > { %v2456_v60 = vpack.c.bf16 %v2452_v59, %v2452_v59 }
 0x94a   : > { %v2441_v61 = vpop.xlane.xlu1 %2440 }
 0x94b   : > { %4604 = vrcp.f32 %v2441_v61  ;;  %4304 = vmatmul.mubr.msk.bf16.vlgmr.msra.gmra.mxu0 %vm1459_vm11, %v2456_v60 }
 0x94c   : > { %4315 = vmatprep.mubr.msk.bf16.mxu0 %vm4847_vm9, %v4846_v13 }
 0x94e   : > { %v2749_v62 = vpop.permute.xlu1 %2748 }
 0x94f   : > { %v2754_v63 = vsel %vm1259_vm10, %v2749_v62, 0 }
 0x950   : > { %4314 = vmatpush3.bf16.xpose.msra.mxu0 %v2754_v63 }
 0x951   : > { %4325 = vmatprep.subr.bf16.mxu0 %v4846_v13 }
 0x952   : > { %v2747_v0 = vpop.permute.xlu1 %2746 }
 0x956   : > { %v2855_v2 = vpop.permute.xlu1 %2854 }
 0x957   : > { %v2860_v3 = vsel %vm1259_vm10, %v2855_v2, 0  ;;  %4316 = vmatmul.mubr.msk.bf16.vlgmr.msra.gmra.mxu0 %vm1259_vm10, %v2747_v0 }
 0x958   : > { %v4605_v4 = vpop.eup %4604  ;;  %4326 = vmatpush3.bf16.xpose.msra.mxu0 %v2860_v3  ;;  %4327 = vmatprep.mubr.msk.bf16.mxu0 %vm4847_vm9, %v4846_v13 }
 0x959   : > { %v2451_v5 = vmul.f32 %v4605_v4, %v5404_v33  ;;  %4337 = vmatprep.subr.bf16.mxu0 %v4846_v13 }
 0x95a   : > { %v2853_v9 = vpop.permute.xlu1 %2852 }
 0x95b   : > { %v2455_v6 = vpack.c.bf16 %v2451_v5, %v2451_v5 }
 0x95d   : > { %4298 = vmatmul.mubr.msk.bf16.vlgmr.msra.gmra.mxu1 %vm1459_vm11, %v2455_v6 }
 0x95e   : > { %4308 = vmatpush3.bf16.xpose.msra.mxu1 %v2701_v8  ;;  %4309 = vmatprep.mubr.msk.bf16.mxu1 %vm4847_vm9, %v4846_v13 }
 0x95f   : > { %4328 = vmatmul.mubr.msk.bf16.vlgmr.msra.gmra.mxu0 %vm1259_vm10, %v2853_v9  ;;  %4319 = vmatprep.subr.bf16.mxu1 %v4846_v13 }
 0x960   : > { %4339 = vmatprep.mubr.msk.bf16.mxu0 %vm4847_vm9, %v4846_v13 }
 0x965   : > { %4310 = vmatmul.mubr.msk.bf16.vlgmr.msra.gmra.mxu1 %vm1259_vm10, %v2694_v7 }
 0x966   : > { %4320 = vmatpush3.bf16.xpose.msra.mxu1 %v2807_v11  ;;  %4321 = vmatprep.mubr.msk.bf16.mxu1 %vm4847_vm9, %v4846_v13 }
 0x967   : > { %4331 = vmatprep.subr.bf16.mxu1 %v4846_v13 }
 0x96d   : > { %4322 = vmatmul.mubr.msk.bf16.vlgmr.msra.gmra.mxu1 %vm1259_vm10, %v2800_v12 }
 0x96e   : > { %4333 = vmatprep.mubr.msk.bf16.mxu1 %vm4847_vm9, %v4846_v13 }
 0x9d6   : > { %v5455_v14 = vpop.f32.mrf.mxu0 }
 0x9d8   : > { %v4293_v15 = vpop.f32.mrf.mxu0 }
 0x9d9   : > { %v4539_v15 = vld [vmem:[#allocation4 + $0x14] ss:$0 sps:$4 sm:$0xff]  }
 0x9da   : > { %v2556_v16 = vpop.f32.mrf.mxu0 }
 0x9db   : > { %v4540_v16 = vld [vmem:[#allocation4 + $0x1c] ss:$0 sps:$4 sm:$0xff]  }
 0x9dc   : > { %v4294_v17 = vpop.f32.mrf.mxu0 }
 0x9dd   : > { %v4541_v17 = vld [vmem:[#allocation4 + $0xc] ss:$0 sps:$4 sm:$0xff]  }
 0x9e4   : > { %v5457_v18 = vpop.f32.mrf.mxu1 }
 0x9e6   : > { %v4287_v19 = vpop.f32.mrf.mxu1 }
 0x9e8   : > { %v2505_v20 = vpop.f32.mrf.mxu1 }
 0x9ea   : > { %v4288_v21 = vpop.f32.mrf.mxu1 }
 0xa0b   : > { %v5459_v22 = vpop.f32.mrf.mxu0 }
 0xa0d   : > { %v4305_v23 = vpop.f32.mrf.mxu0 }
 0xa0f   : > { %v2658_v24 = vpop.f32.mrf.mxu0 }
 0xa11   : > { %v4306_v25 = vpop.f32.mrf.mxu0 }
 0xa17   : > { %v2790_v26 = vpop.f32.mrf.mxu0 }
 0xa18   : > { %v2905_v27 = vsel %vm1459_vm11, %v2790_v26, -inf }
 0xa19   : > { %2906 = vmax.xlane.f32.xlu1 %v2905_v27  ;;  %v4317_v28 = vpop.f32.mrf.mxu0 }
 0xa1b   : > { %v2793_v29 = vpop.f32.mrf.mxu0 }
 0xa1d   : > { %v5462_v30 = vpop.f32.mrf.mxu1  ;;  %v4318_v31 = vpop.f32.mrf.mxu0 }
 0xa1f   : > { %v4299_v32 = vpop.f32.mrf.mxu1  ;;  %v2896_v33 = vpop.f32.mrf.mxu0 }
 0xa20   : > { %v2911_v53 = vsel %vm1459_vm11, %v2896_v33, -inf }
 0xa21   : > { %v2607_v34 = vpop.f32.mrf.mxu1  ;;  %v4329_v35 = vpop.f32.mrf.mxu0 }
 0xa23   : > { %v4300_v37 = vpop.f32.mrf.mxu1  ;;  %v2899_v38 = vpop.f32.mrf.mxu0 }
 0xa25   : > { %v2737_v39 = vpop.f32.mrf.mxu1  ;;  %v4330_v41 = vpop.f32.mrf.mxu0 }
 0xa26   : > { %v2902_v42 = vsel %vm1459_vm11, %v2737_v39, -inf }
 0xa27   : > { %2903 = vmax.xlane.f32.xlu0 %v2902_v42  ;;  %v4311_v43 = vpop.f32.mrf.mxu1 }
 0xa29   : > { %v2740_v46 = vpop.f32.mrf.mxu1 }
 0xa2a   : > { %2953 = vrot.lane.b32.xlu1 %v4538_v45, %s4854_s27  ;;  %v4542_v45 = vld [vmem:[%s5124_s6 + $0x18] sm:$0xff]   ;;  %v4543_v46 = vld [vmem:[%s5124_s6 + $0x10] sm:$0xff]  }
 0xa2b   : > { %v4312_v47 = vpop.f32.mrf.mxu1 }
 0xa2d   : > { %v2843_v48 = vpop.f32.mrf.mxu1 }
 0xa2e   : > { %v2908_v49 = vsel %vm1459_vm11, %v2843_v48, -inf }
 0xa2f   : > { %2909 = vmax.xlane.f32.xlu0 %v2908_v49  ;;  %v4323_v50 = vpop.f32.mrf.mxu1  ;;  %v4545_v49 = vld [vmem:[%s5124_s6] sm:$0xff]  }
 0xa31   : > { %v2846_v51 = vpop.f32.mrf.mxu1 }
 0xa33   : > { %2912 = vmax.xlane.f32.xlu0 %v2911_v53  ;;  %v4324_v54 = vpop.f32.mrf.mxu1 }
 0xaa2   : > { %v2907_v55 = vpop.xlane.xlu1 %2906 }
 0xaa3   : > { %v2915_v56 = vsub.f32 %v2790_v26, %v2907_v55 }
 0xaa5   : > { %v2920_v57 = vmul.f32 1.442695, %v2915_v56 }
 0xaa6   : > { %v2954_v58 = vpop.permute.xlu1 %2953 }
 0xaa7   : > { %4606 = vpow2.f32 %v2920_v57  ;;  %v2959_v59 = vsel %vm1239_vm6, %v2954_v58, 0 }
 0xaa8   : > { %4332 = vmatpush3.bf16.msra.mxu1 %v2959_v59 }
 0xaa9   : > { %4343 = vmatprep.subr.bf16.mxu1 %v4846_v13 }
 0xab0   : > { %v2904_v60 = vpop.xlane.xlu0 %2903 }
 0xab1   : > { %v2914_v61 = vsub.f32 %v2737_v39, %v2904_v60 }
 0xab3   : > { %v2918_v62 = vmul.f32 1.442695, %v2914_v61 }
 0xab4   : > { %v4607_v63 = vpop.eup %4606 }
 0xab5   : > { %4608 = vpow2.f32 %v2918_v62  ;;  %v2929_v0 = vsel %vm1459_vm11, %v4607_v63, 0.0 }
 0xab6   : > { %2930 = vadd.xlane.f32.xlu0 %v2929_v0 }
 0xab8   : > { %v2910_v1 = vpop.xlane.xlu0 %2909 }
 0xab9   : > { %v2916_v2 = vsub.f32 %v2843_v48, %v2910_v1  ;;  %v4544_v48 = vld [vmem:[%s5124_s6 + $0x8] sm:$0xff]  }
 0xabb   : > { %v2922_v3 = vmul.f32 1.442695, %v2916_v2 }
 0xabc   : > { %v2913_v4 = vpop.xlane.xlu0 %2912 }
 0xabd   : > { %4610 = vpow2.f32 %v2922_v3  ;;  %v2917_v5 = vsub.f32 %v2896_v33, %v2913_v4 }
 0xabf   : > { %v2924_v6 = vmul.f32 1.442695, %v2917_v5 }
 0xac1   : > { %4612 = vpow2.f32 %v2924_v6 }
 0xac2   : > { %v4609_v7 = vpop.eup %4608 }
 0xac3   : > { %v2926_v8 = vsel %vm1459_vm11, %v4609_v7, 0.0 }
 0xac4   : > { %2927 = vadd.xlane.f32.xlu1 %v2926_v8 }
 0xaca   : > { %v4611_v9 = vpop.eup %4610 }
 0xacb   : > { %v2932_v10 = vsel %vm1459_vm11, %v4611_v9, 0.0 }
 0xacc   : > { %2933 = vadd.xlane.f32.xlu1 %v2932_v10 }
 0xace   : > { %v4613_v11 = vpop.eup %4612 }
 0xacf   : > { %v2935_v12 = vsel %vm1459_vm11, %v4613_v11, 0.0 }
 0xad0   : > { %2936 = vadd.xlane.f32.xlu0 %v2935_v12 }
 0xadd   : > { %3055 = vrot.lane.b32.xlu1 %v4539_v15, %s4854_s27  ;;  %v4019_v15 = vld [vmem:[%s5719_s1] ss:$0 sm:$0xff] }
 0xae1   : > { %3106 = vrot.lane.b32.xlu1 %v4540_v16, %s4854_s27 }
 0xae5   : > { %2174 = vrot.lane.b32.xlu1 %v5383_v36, %s4853_s30 }
 0xae6   : > { %3004 = vrot.lane.b32.xlu0 %v4541_v17, %s4854_s27 }
 0xae9   : > { %2178 = vrot.lane.b32.xlu1 %v5387_v44, %s4853_s30 }
 0xaea   : > { %2172 = vrot.lane.b32.xlu0 %v5385_v40, %s4853_s30 }
 0xaed   : > { %2667 = vrot.lane.b32.xlu1 %v5455_v14, %s4851_s9 }
 0xaee   : > { %2176 = vrot.lane.b32.xlu0 %v5390_v52, %s4853_s30 }
 0xaf1   : > { %2671 = vrot.lane.b32.xlu1 %v5459_v22, %s4851_s9 }
 0xaf2   : > { %2665 = vrot.lane.b32.xlu0 %v5457_v18, %s4851_s9 }
 0xaf6   : > { %2669 = vrot.lane.b32.xlu0 %v5462_v30, %s4851_s9 }
 0xb3f   : > { %v2931_v36 = vpop.xlane.xlu0 %2930 }
 0xb40   : > { %4614 = vrcp.f32 %v2931_v36 }
 0xb4d   : > { %v2928_v44 = vpop.xlane.xlu1 %2927  ;;  %v4615_v19 = vpop.eup %4614 }
 0xb4e   : > { %4616 = vrcp.f32 %v2928_v44  ;;  %v2943_v23 = vmul.f32 %v4615_v19, %v4607_v63 }
 0xb50   : > { %v2947_v27 = vpack.c.bf16 %v2943_v23, %v2943_v23  ;;  %v4639_v23 = vld [vmem:[#allocation2 + $0x10] sm:$0xff] }
 0xb55   : > { %v2934_v40 = vpop.xlane.xlu1 %2933 }
 0xb56   : > { %4618 = vrcp.f32 %v2934_v40  ;;  %v4638_v40 = vld [vmem:[#allocation2] sm:$0xff] }
 0xb59   : > { %v3056_v14 = vpop.permute.xlu1 %3055  ;;  %v2937_v20 = vpop.xlane.xlu0 %2936 }
 0xb5a   : > { %4620 = vrcp.f32 %v2937_v20  ;;  %v3061_v26 = vsel %vm1239_vm6, %v3056_v14, 0 }
 0xb5b   : > { %v4617_v52 = vpop.eup %4616 }
 0xb5c   : > { %v2942_v21 = vmul.f32 %v4617_v52, %v4609_v7 }
 0xb5d   : > { %v3107_v22 = vpop.permute.xlu1 %3106  ;;  %v3005_v24 = vpop.permute.xlu0 %3004 }
 0xb5e   : > { %v3010_v18 = vsel %vm1239_vm6, %v3005_v24, 0  ;;  %v2946_v25 = vpack.c.bf16 %v2942_v21, %v2942_v21  ;;  %v3112_v30 = vsel %vm1239_vm6, %v3107_v22, 0  ;;  %v4640_v24 = vld [vmem:[#allocation2 + $0x8] sm:$0xff] }
 0xb5f   : > { %4338 = vmatpush3.bf16.msra.mxu0 %v3010_v18 }
 0xb60   : > { %4334 = vmatmul.mubr.msk.bf16.vlgmr.msra.gmra.mxu1 %vm1459_vm11, %v2946_v25  ;;  %4349 = vmatprep.subr.bf16.mxu0 %v4846_v13 }
 0xb61   : > { %4344 = vmatpush3.bf16.msra.mxu1 %v3061_v26  ;;  %v2175_v28 = vpop.permute.xlu1 %2174  ;;  %v2173_v29 = vpop.permute.xlu0 %2172  ;;  %4345 = vmatprep.mubr.msk.bf16.mxu1 %vm4847_vm9, %v4846_v13 }
 0xb62   : > { %2186 = vst.msk [vmem:[#allocation3 + $0x8] sm:$0xff] %vm2184_vm12, %v2175_v28  ;;  %2185 = vst.msk [vmem:[#allocation3] sm:$0xff] %vm2184_vm12, %v2173_v29  ;;  %4340 = vmatmul.mubr.msk.bf16.vlgmr.msra.gmra.mxu0 %vm1459_vm11, %v2947_v27  ;;  %4355 = vmatprep.subr.bf16.mxu1 %v4542_v45  ;;  %v4641_v27 = vld [vmem:[#allocation2 + $0x18] sm:$0xff] }
 0xb63   : > { %v4619_v31 = vpop.eup %4618  ;;  %4350 = vmatpush3.bf16.msra.mxu0 %v3112_v30  ;;  %4351 = vmatprep.mubr.msk.bf16.mxu0 %vm4847_vm9, %v4846_v13 }
 0xb64   : > { %v2944_v32 = vmul.f32 %v4619_v31, %v4611_v9 }
 0xb65   : > { %v2179_v33 = vpop.permute.xlu1 %2178  ;;  %v2177_v34 = vpop.permute.xlu0 %2176 }
 0xb66   : > { %2188 = vst.msk [vmem:[#allocation3 + $0x18] sm:$0xff] %vm2184_vm12, %v2179_v33  ;;  %2187 = vst.msk [vmem:[#allocation3 + $0x10] sm:$0xff] %vm2184_vm12, %v2177_v34  ;;  %v2948_v35 = vpack.c.bf16 %v2944_v32, %v2944_v32 }
 0xb67   : > { %v4621_v37 = vpop.eup %4620 }
 0xb68   : > { %4346 = vmatmul.mubr.msk.bf16.vlgmr.msra.gmra.mxu1 %vm1459_vm11, %v2948_v35  ;;  %v2945_v38 = vmul.f32 %v4621_v37, %v4613_v11 }
 0xb69   : > { %v2668_v39 = vpop.permute.xlu1 %2667  ;;  %v2666_v41 = vpop.permute.xlu0 %2665  ;;  %4356 = vmatpush3.bf16.msra.mxu1 %v4542_v45 }
 0xb6a   : > { %2679 = vst.msk [vmem:[#allocation3 + $0x8] sm:$0xff] %vm2677_vm13, %v2668_v39  ;;  %2678 = vst.msk [vmem:[#allocation3] sm:$0xff] %vm2677_vm13, %v2666_v41  ;;  %v2949_v13 = vpack.c.bf16 %v2945_v38, %v2945_v38  ;;  %4357 = vmatprep.subr.bf16.mxu1 %v4543_v46 }
 0xb6c   : > { %4352 = vmatmul.mubr.msk.bf16.vlgmr.msra.gmra.mxu0 %vm1459_vm11, %v2949_v13 }
 0xb6d   : > { %v2672_v42 = vpop.permute.xlu1 %2671  ;;  %v2670_v43 = vpop.permute.xlu0 %2669  ;;  %4358 = vmatpush3.bf16.msra.mxu1 %v4543_v46 }
 0xb6e   : > { %2681 = vst.msk [vmem:[#allocation3 + $0x18] sm:$0xff] %vm2677_vm13, %v2672_v42  ;;  %2680 = vst.msk [vmem:[#allocation3 + $0x10] sm:$0xff] %vm2677_vm13, %v2670_v43  ;;  %4359 = vmatprep.subr.bf16.mxu1 %v4544_v48 }
 0xb71   : > { %4360 = vmatpush3.bf16.msra.mxu1 %v4544_v48 }
 0xb72   : > { %4361 = vmatprep.subr.bf16.mxu1 %v4545_v49 }
 0xb75   : > { %4362 = vmatpush3.bf16.msra.mxu1 %v4545_v49 }
 0xc20   : > { %v2995_v47 = vpop.f32.mrf.mxu1 }
 0xc21   : > { %3158 = vrot.lane.b32.xlu0 %v2995_v47, %s4849_s19 }
 0xc22   : > { %v4335_v50 = vpop.f32.mrf.mxu1  ;;  %v3046_v51 = vpop.f32.mrf.mxu0 }
 0xc23   : > { %3160 = vrot.lane.b32.xlu1 %v3046_v51, %s4849_s19 }
 0xc24   : > { %v2998_v53 = vpop.f32.mrf.mxu1  ;;  %v4341_v54 = vpop.f32.mrf.mxu0 }
 0xc25   : > { %v4546_v53 = vld [vmem:[%s5094_s3 + $0x18] sm:$0xff]   ;;  %v4547_v54 = vld [vmem:[%s5094_s3 + $0x10] sm:$0xff]  }
 0xc26   : > { %v4336_v55 = vpop.f32.mrf.mxu1  ;;  %v3049_v56 = vpop.f32.mrf.mxu0  ;;  %4367 = vmatprep.subr.bf16.mxu0 %v4546_v53 }
 0xc27   : > { %4368 = vmatpush3.bf16.msra.mxu0 %v4546_v53  ;;  %v4548_v55 = vld [vmem:[%s5094_s3 + $0x8] sm:$0xff]   ;;  %v4549_v56 = vld [vmem:[%s5094_s3] sm:$0xff]  }
 0xc28   : > { %v4342_v57 = vpop.f32.mrf.mxu0  ;;  %v3097_v58 = vpop.f32.mrf.mxu1  ;;  %4369 = vmatprep.subr.bf16.mxu0 %v4547_v54 }
 0xc29   : > { %3162 = vrot.lane.b32.xlu0 %v3097_v58, %s4849_s19  ;;  %v4550_v57 = vld [vmem:[%s5133_s28 + $0x38] sm:$0xff]   ;;  %v4551_v58 = vld [vmem:[%s5133_s28 + $0x30] sm:$0xff]  }
 0xc2a   : > { %v4347_v59 = vpop.f32.mrf.mxu1  ;;  %4379 = vmatprep.subr.bf16.mxu1 %v4550_v57 }
 0xc2b   : > { %4370 = vmatpush3.bf16.msra.mxu0 %v4547_v54  ;;  %v4552_v59 = vld [vmem:[%s5133_s28 + $0x28] sm:$0xff]  }
 0xc2c   : > { %v3100_v60 = vpop.f32.mrf.mxu1  ;;  %v3148_v61 = vpop.f32.mrf.mxu0  ;;  %4371 = vmatprep.subr.bf16.mxu0 %v4548_v55 }
 0xc2d   : > { %3164 = vrot.lane.b32.xlu1 %v3148_v61, %s4849_s19  ;;  %v4553_v60 = vld [vmem:[%s5133_s28 + $0x20] sm:$0xff]   ;;  %v4554_v61 = vld [vmem:[%s5133_s28 + $0x18] sm:$0xff]  }
 0xc2e   : > { %v4348_v62 = vpop.f32.mrf.mxu1  ;;  %v4353_v63 = vpop.f32.mrf.mxu0 }
 0xc2f   : > { %4372 = vmatpush3.bf16.msra.mxu0 %v4548_v55 }
 0xc30   : > { %v3151_v0 = vpop.f32.mrf.mxu0  ;;  %4373 = vmatprep.subr.bf16.mxu0 %v4549_v56 }
 0xc32   : > { %v4354_v1 = vpop.f32.mrf.mxu0 }
 0xc33   : > { %4374 = vmatpush3.bf16.msra.mxu0 %v4549_v56 }
 0xc93   : > { %v3159_v2 = vpop.permute.xlu0 %3158 }
 0xc94   : > { %3171 = vst.msk [vmem:[#allocation3] sm:$0xff] %vm3170_vm14, %v3159_v2 }
 0xc95   : > { %v3161_v3 = vpop.permute.xlu1 %3160 }
 0xc96   : > { %3172 = vst.msk [vmem:[#allocation3 + $0x8] sm:$0xff] %vm3170_vm14, %v3161_v3 }
 0xc9b   : > { %v3163_v4 = vpop.permute.xlu0 %3162  ;;  %v3175_v5 = vld [vmem:[#allocation3] sm:$0xff] }
 0xc9c   : > { %3173 = vst.msk [vmem:[#allocation3 + $0x10] sm:$0xff] %vm3170_vm14, %v3163_v4 }
 0xc9d   : > { %v3176_v6 = vld [vmem:[#allocation3 + $0x8] sm:$0xff] }
 0xc9e   : > { %v3179_v7 = vpack.c.bf16 %v3176_v6, %v3175_v5 }
 0xc9f   : > { %v3165_v8 = vpop.permute.xlu1 %3164 }
 0xca0   : > { %3174 = vst.msk [vmem:[#allocation3 + $0x18] sm:$0xff] %vm3170_vm14, %v3165_v8  ;;  %4363 = vmatprep.mubr.msk.bf16.mxu1 %vm1155_vm5, %v3179_v7 }
 0xca3   : > { %v3177_v9 = vld [vmem:[#allocation3 + $0x10] sm:$0xff] }
 0xca7   : > { %v3178_v10 = vld [vmem:[#allocation3 + $0x18] sm:$0xff] }
 0xca8   : > { %v3180_v11 = vpack.c.bf16 %v3178_v10, %v3177_v9 }
 0xcaa   : > { %4364 = vmatmul.mubr.msk.bf16.vlgmr.msra.gmra.mxu1 %vm1155_vm5, %v3180_v11 }
 0xcab   : > { %4380 = vmatpush3.bf16.msra.mxu1 %v4550_v57 }
 0xcac   : > { %4381 = vmatprep.subr.bf16.mxu1 %v4551_v58 }
 0xcaf   : > { %4382 = vmatpush3.bf16.msra.mxu1 %v4551_v58 }
 0xcb0   : > { %4383 = vmatprep.subr.bf16.mxu1 %v4552_v59 }
 0xcb3   : > { %4384 = vmatpush3.bf16.msra.mxu1 %v4552_v59 }
 0xcb4   : > { %4385 = vmatprep.subr.bf16.mxu1 %v4553_v60 }
 0xcb7   : > { %4386 = vmatpush3.bf16.msra.mxu1 %v4553_v60 }
 0xcb8   : > { %4387 = vmatprep.subr.bf16.mxu1 %v4554_v61 }
 0xcbb   : > { %4388 = vmatpush3.bf16.msra.mxu1 %v4554_v61 }
 0xd6a   : > { %v4365_v12 = vpop.f32.mrf.mxu1 }
 0xd6b   : > { %v3269_v17 = vadd.f32 %v4365_v12, %v4019_v15  ;;  %v4026_v12 = vld [vmem:[%s902_s4] ss:$0 sm:$0xff] }
 0xd6c   : > { %v3260_v16 = vpop.f32.mrf.mxu1 }
 0xd6d   : > { %v3261_v36 = vadd.f32 %v4019_v15, %v3260_v16  ;;  %v3277_v22 = vadd.f32 %v4639_v23, %v3269_v17 }
 0xd6e   : > { %v4366_v44 = vpop.f32.mrf.mxu1 }
 0xd6f   : > { %v3275_v19 = vadd.f32 %v4638_v40, %v3261_v36  ;;  %v3272_v20 = vadd.f32 %v4366_v44, %v4019_v15  ;;  %v3287_v26 = vsel %vm1155_vm5, %v3277_v22, 0.0  ;;  %v4027_v40 = vld [vmem:[%s905_s22] ss:$0 sm:$0xff] }
 0xd70   : > { %v3263_v14 = vpop.f32.mrf.mxu1 }
 0xd71   : > { %v3264_v52 = vadd.f32 %v4019_v15, %v3263_v14  ;;  %v3281_v21 = vsel %vm1155_vm5, %v3275_v19, 0.0  ;;  %v3278_v28 = vadd.f32 %v4641_v27, %v3272_v20  ;;  %v4555_v27 = vld [vmem:[%s5133_s28 + $0x10] sm:$0xff]  }
 0xd72   : > { %3282 = vadd.xlane.f32.xlu0 %v3281_v21  ;;  %4389 = vmatprep.subr.bf16.mxu1 %v4555_v27 }
 0xd73   : > { %v3276_v18 = vadd.f32 %v4640_v24, %v3264_v52  ;;  %v3290_v29 = vsel %vm1155_vm5, %v3278_v28, 0.0  ;;  %4390 = vmatpush3.bf16.msra.mxu1 %v4555_v27 }
 0xd75   : > { %v3284_v25 = vsel %vm1155_vm5, %v3276_v18, 0.0 }
 0xd76   : > { %3285 = vadd.xlane.f32.xlu1 %v3284_v25  ;;  %3288 = vadd.xlane.f32.xlu0 %v3287_v26 }
 0xd7a   : > { %3291 = vadd.xlane.f32.xlu0 %v3290_v29  ;;  %v4557_v29 = vld [vmem:[%s5133_s28] sm:$0xff]  }
 0xdfb   : > { %v3283_v30 = vpop.xlane.xlu0 %3282 }
 0xdfc   : > { %v3294_v31 = vmul.f32 0.015625, %v3283_v30 }
 0xdfe   : > { %v5528_v32 = vsub.f32 %v3275_v19, %v3294_v31 }
 0xdff   : > { %v3286_v33 = vpop.xlane.xlu1 %3285  ;;  %v3289_v34 = vpop.xlane.xlu0 %3288 }
 0xe00   : > { %v3295_v35 = vmul.f32 0.015625, %v3286_v33  ;;  %v3296_v37 = vmul.f32 0.015625, %v3289_v34  ;;  %v3302_v38 = vmul.f32 %v5528_v32, %v5528_v32 }
 0xe02   : > { %v5532_v39 = vsub.f32 %v3276_v18, %v3295_v35  ;;  %v5534_v41 = vsub.f32 %v3277_v22, %v3296_v37  ;;  %v3306_v13 = vsel %vm1155_vm5, %v3302_v38, 0.0 }
 0xe03   : > { %3307 = vadd.xlane.f32.xlu1 %v3306_v13  ;;  %v3292_v42 = vpop.xlane.xlu0 %3291 }
 0xe04   : > { %v3297_v43 = vmul.f32 0.015625, %v3292_v42  ;;  %v3303_v45 = vmul.f32 %v5532_v39, %v5532_v39  ;;  %v3304_v46 = vmul.f32 %v5534_v41, %v5534_v41 }
 0xe06   : > { %v3301_v47 = vsub.f32 %v3278_v28, %v3297_v43  ;;  %v3309_v48 = vsel %vm1155_vm5, %v3303_v45, 0.0  ;;  %v3312_v49 = vsel %vm1155_vm5, %v3304_v46, 0.0  ;;  %v4556_v28 = vld [vmem:[%s5133_s28 + $0x8] sm:$0xff]  }
 0xe07   : > { %3310 = vadd.xlane.f32.xlu0 %v3309_v48  ;;  %3313 = vadd.xlane.f32.xlu1 %v3312_v49  ;;  %v4035_v48 = vld [vmem:[%s5151_s24] ss:$0 sm:$0xff] }
 0xe08   : > { %v3305_v50 = vmul.f32 %v3301_v47, %v3301_v47  ;;  %4391 = vmatprep.subr.bf16.mxu1 %v4556_v28 }
 0xe09   : > { %4392 = vmatpush3.bf16.msra.mxu1 %v4556_v28 }
 0xe0a   : > { %v3315_v51 = vsel %vm1155_vm5, %v3305_v50, 0.0  ;;  %4393 = vmatprep.subr.bf16.mxu1 %v4557_v29 }
 0xe0b   : > { %3316 = vadd.xlane.f32.xlu0 %v3315_v51 }
 0xe0d   : > { %4394 = vmatpush3.bf16.msra.mxu1 %v4557_v29 }
 0xe8c   : > { %v3308_v62 = vpop.xlane.xlu1 %3307 }
 0xe8d   : > { %v3318_v63 = vmul.f32 0.015625, %v3308_v62 }
 0xe8f   : > { %v3322_v0 = vadd.f32 1e-05, %v3318_v63 }
 0xe90   : > { %v3314_v1 = vpop.xlane.xlu1 %3313  ;;  %v3311_v2 = vpop.xlane.xlu0 %3310 }
 0xe91   : > { %4622 = vrsqrt.f32 %v3322_v0  ;;  %v3320_v3 = vmul.f32 0.015625, %v3314_v1  ;;  %v3319_v4 = vmul.f32 0.015625, %v3311_v2 }
 0xe93   : > { %v3324_v5 = vadd.f32 1e-05, %v3320_v3  ;;  %v3323_v6 = vadd.f32 1e-05, %v3319_v4 }
 0xe94   : > { %v3317_v7 = vpop.xlane.xlu0 %3316 }
 0xe95   : > { %4624 = vrsqrt.f32 %v3324_v5  ;;  %v3321_v8 = vmul.f32 0.015625, %v3317_v7 }
 0xe96   : > { %4626 = vrsqrt.f32 %v3323_v6 }
 0xe97   : > { %v3325_v9 = vadd.f32 1e-05, %v3321_v8 }
 0xe99   : > { %4628 = vrsqrt.f32 %v3325_v9 }
 0xe9e   : > { %v4623_v10 = vpop.eup %4622 }
 0xe9f   : > { %v3330_v11 = vmul.f32 %v4623_v10, %v5528_v32  ;;  %v4028_v32 = vld [vmem:[%s5722_s15] ss:$0 sm:$0xff] }
 0xea1   : > { %v3340_v44 = vmul.f32 %v4026_v12, %v3330_v11 }
 0xea2   : > { %v4625_v15 = vpop.eup %4624 }
 0xea3   : > { %v4627_v16 = vpop.eup %4626  ;;  %v3332_v17 = vmul.f32 %v4625_v15, %v5534_v41  ;;  %v3350_v21 = vadd.f32 %v4027_v40, %v3340_v44 }
 0xea4   : > { %v3331_v36 = vmul.f32 %v4627_v16, %v5532_v39 }
 0xea5   : > { %v3342_v52 = vmul.f32 %v4026_v12, %v3332_v17 }
 0xea6   : > { %v4629_v19 = vpop.eup %4628  ;;  %v3341_v14 = vmul.f32 %v4026_v12, %v3331_v36 }
 0xea7   : > { %v3333_v20 = vmul.f32 %v4629_v19, %v3301_v47  ;;  %v3352_v18 = vadd.f32 %v4027_v40, %v3342_v52 }
 0xea8   : > { %v3351_v23 = vadd.f32 %v4027_v40, %v3341_v14 }
 0xea9   : > { %v3343_v22 = vmul.f32 %v4026_v12, %v3333_v20 }
 0xeaa   : > { %v3354_v24 = vpack.c.bf16 %v3351_v23, %v3350_v21 }
 0xeab   : > { %v3353_v25 = vadd.f32 %v4027_v40, %v3343_v22 }
 0xeac   : > { %4375 = vmatprep.mubr.msk.bf16.mxu0 %vm1155_vm5, %v3354_v24 }
 0xead   : > { %v3355_v26 = vpack.c.bf16 %v3353_v25, %v3352_v18 }
 0xeaf   : > { %4376 = vmatmul.mubr.msk.bf16.vlgmr.msra.gmra.mxu0 %vm1155_vm5, %v3355_v26 }
 0xf6f   : > { %v4377_v30 = vpop.f32.mrf.mxu0 }
 0xf70   : > { %v3444_v37 = vadd.f32 %v4377_v30, %v4028_v32 }
 0xf71   : > { %v3435_v31 = vpop.f32.mrf.mxu0 }
 0xf72   : > { %v3436_v34 = vadd.f32 %v4028_v32, %v3435_v31  ;;  %v3452_v43 = vmax.f32 %v3444_v37, 0.0  ;;  %v4044_v31 = vld [vmem:[%s908_s10] ss:$0 sm:$0xff] }
 0xf73   : > { %v4378_v33 = vpop.f32.mrf.mxu0 }
 0xf74   : > { %v3447_v35 = vadd.f32 %v4378_v33, %v4028_v32  ;;  %v3450_v13 = vmax.f32 %v3436_v34, 0.0  ;;  %v4045_v33 = vld [vmem:[%s911_s18] ss:$0 sm:$0xff] }
 0xf75   : > { %v3438_v38 = vpop.f32.mrf.mxu0 }
 0xf76   : > { %v3439_v39 = vadd.f32 %v4028_v32, %v3438_v38  ;;  %v3453_v41 = vmax.f32 %v3447_v35, 0.0 }
 0xf78   : > { %v3451_v42 = vmax.f32 %v3439_v39, 0.0  ;;  %v3455_v46 = vpack.c.bf16 %v3453_v41, %v3452_v43 }
 0xf7a   : > { %v3454_v45 = vpack.c.bf16 %v3451_v42, %v3450_v13 }
 0xf7c   : > { %4395 = vmatprep.mubr.bf16.mxu1 %v3454_v45 }
 0xf7d   : > { %4396 = vmatmul.mubr.bf16.vlgmr.msra.gmra.mxu1 %v3455_v46 }
0x103d   : > { %v4397_v47 = vpop.f32.mrf.mxu1 }
0x103e   : > { %v3570_v50 = vadd.f32 %v4397_v47, %v4035_v48 }
0x103f   : > { %v3561_v49 = vpop.f32.mrf.mxu1 }
0x1040   : > { %v3562_v51 = vadd.f32 %v4035_v48, %v3561_v49  ;;  %v3578_v59 = vadd.f32 %v3570_v50, %v3352_v18 }
0x1041   : > { %v4398_v53 = vpop.f32.mrf.mxu1 }
0x1042   : > { %v3576_v54 = vadd.f32 %v3562_v51, %v3350_v21  ;;  %v3573_v56 = vadd.f32 %v4398_v53, %v4035_v48  ;;  %v3588_v62 = vsel %vm1155_vm5, %v3578_v59, 0.0 }
0x1043   : > { %v3564_v55 = vpop.f32.mrf.mxu1 }
0x1044   : > { %v3565_v57 = vadd.f32 %v4035_v48, %v3564_v55  ;;  %v3582_v58 = vsel %vm1155_vm5, %v3576_v54, 0.0  ;;  %v3579_v63 = vadd.f32 %v3573_v56, %v3353_v25 }
0x1045   : > { %3583 = vadd.xlane.f32.xlu1 %v3582_v58 }
0x1046   : > { %v3577_v60 = vadd.f32 %v3565_v57, %v3351_v23  ;;  %v3591_v0 = vsel %vm1155_vm5, %v3579_v63, 0.0 }
0x1048   : > { %v3585_v61 = vsel %vm1155_vm5, %v3577_v60, 0.0 }
0x1049   : > { %3586 = vadd.xlane.f32.xlu0 %v3585_v61  ;;  %3589 = vadd.xlane.f32.xlu1 %v3588_v62 }
0x104d   : > { %3592 = vadd.xlane.f32.xlu0 %v3591_v0 }
0x10ce   : > { %v3584_v1 = vpop.xlane.xlu1 %3583 }
0x10cf   : > { %v3594_v2 = vmul.f32 0.015625, %v3584_v1 }
0x10d1   : > { %v3598_v3 = vsub.f32 %v3576_v54, %v3594_v2 }
0x10d2   : > { %v3587_v4 = vpop.xlane.xlu0 %3586  ;;  %v3590_v5 = vpop.xlane.xlu1 %3589 }
0x10d3   : > { %v3595_v6 = vmul.f32 0.015625, %v3587_v4  ;;  %v3596_v7 = vmul.f32 0.015625, %v3590_v5  ;;  %v3602_v8 = vmul.f32 %v3598_v3, %v3598_v3 }
0x10d5   : > { %v3599_v9 = vsub.f32 %v3577_v60, %v3595_v6  ;;  %v3600_v10 = vsub.f32 %v3578_v59, %v3596_v7  ;;  %v3606_v11 = vsel %vm1155_vm5, %v3602_v8, 0.0 }
0x10d6   : > { %v3593_v12 = vpop.xlane.xlu0 %3592  ;;  %3607 = vadd.xlane.f32.xlu1 %v3606_v11 }
0x10d7   : > { %v3597_v15 = vmul.f32 0.015625, %v3593_v12  ;;  %v3603_v16 = vmul.f32 %v3599_v9, %v3599_v9  ;;  %v3604_v17 = vmul.f32 %v3600_v10, %v3600_v10 }
0x10d9   : > { %v3601_v36 = vsub.f32 %v3579_v63, %v3597_v15  ;;  %v3609_v44 = vsel %vm1155_vm5, %v3603_v16, 0.0  ;;  %v3612_v40 = vsel %vm1155_vm5, %v3604_v17, 0.0 }
0x10da   : > { %3610 = vadd.xlane.f32.xlu0 %v3609_v44  ;;  %3613 = vadd.xlane.f32.xlu1 %v3612_v40 }
0x10db   : > { %v3605_v19 = vmul.f32 %v3601_v36, %v3601_v36 }
0x10dd   : > { %v3615_v14 = vsel %vm1155_vm5, %v3605_v19, 0.0 }
0x10de   : > { %3616 = vadd.xlane.f32.xlu0 %v3615_v14 }
0x115f   : > { %v3608_v20 = vpop.xlane.xlu1 %3607 }
0x1160   : > { %v3618_v52 = vmul.f32 0.015625, %v3608_v20 }
0x1162   : > { %v3622_v21 = vadd.f32 1e-05, %v3618_v52 }
0x1163   : > { %v3611_v23 = vpop.xlane.xlu0 %3610  ;;  %v3614_v22 = vpop.xlane.xlu1 %3613 }
0x1164   : > { %4630 = vrsqrt.f32 %v3622_v21  ;;  %v3619_v24 = vmul.f32 0.015625, %v3611_v23  ;;  %v3620_v18 = vmul.f32 0.015625, %v3614_v22 }
0x1166   : > { %v3623_v25 = vadd.f32 1e-05, %v3619_v24  ;;  %v3624_v26 = vadd.f32 1e-05, %v3620_v18 }
0x1167   : > { %v3617_v27 = vpop.xlane.xlu0 %3616 }
0x1168   : > { %4632 = vrsqrt.f32 %v3623_v25  ;;  %v3621_v28 = vmul.f32 0.015625, %v3617_v27 }
0x1169   : > { %4634 = vrsqrt.f32 %v3624_v26 }
0x116a   : > { %v3625_v29 = vadd.f32 1e-05, %v3621_v28 }
0x116c   : > { %4636 = vrsqrt.f32 %v3625_v29 }
0x1171   : > { %v4631_v30 = vpop.eup %4630 }
0x1172   : > { %v3630_v32 = vmul.f32 %v4631_v30, %v3598_v3 }
0x1174   : > { %v3640_v34 = vmul.f32 %v4044_v31, %v3630_v32 }
0x1175   : > { %v4633_v35 = vpop.eup %4632 }
0x1176   : > { %v4635_v37 = vpop.eup %4634  ;;  %v3650_v38 = vadd.f32 %v4045_v33, %v3640_v34  ;;  %v3631_v39 = vmul.f32 %v4633_v35, %v3599_v9 }
0x1177   : > { %v3632_v41 = vmul.f32 %v4635_v37, %v3600_v10 }
0x1178   : > { %3654 = vst.msk [vmem:[#allocation2] sm:$0xff] %vm1155_vm5, %v3650_v38  ;;  %v3641_v13 = vmul.f32 %v4044_v31, %v3631_v39 }
0x1179   : > { %v4637_v42 = vpop.eup %4636  ;;  %v3642_v43 = vmul.f32 %v4044_v31, %v3632_v41 }
0x117a   : > { %v3651_v45 = vadd.f32 %v4045_v33, %v3641_v13  ;;  %v3633_v46 = vmul.f32 %v4637_v42, %v3601_v36 }
0x117b   : > { %v3652_v47 = vadd.f32 %v4045_v33, %v3642_v43 }
0x117c   : > { %3655 = vst.msk [vmem:[#allocation2 + $0x8] sm:$0xff] %vm1155_vm5, %v3651_v45  ;;  %v3643_v48 = vmul.f32 %v4044_v31, %v3633_v46  ;;  %3661 = sbr.rel (%p4046_p12) target bundleno = 4491 (0x118b), region = 124 }
0x117d   : > { %3656 = vst.msk [vmem:[#allocation2 + $0x10] sm:$0xff] %vm1155_vm5, %v3652_v47 }
0x117e   : > { %v3653_v49 = vadd.f32 %v4045_v33, %v3643_v48 }
0x1180   : > { %3657 = vst.msk [vmem:[#allocation2 + $0x18] sm:$0xff] %vm1155_vm5, %v3653_v49 }
0x1181   : > { %v3662_v50 = vld [vmem:[#allocation2] sm:$0xff]  ;;  %vm3670_vm15 = vcmask 519168  }
0x1182   : > { %v3666_v54 = vpack.c.bf16 %v3662_v50, %v3662_v50 }
0x1183   : > { %v3663_v51 = vld [vmem:[#allocation2 + $0x8] sm:$0xff] }
0x1184   : > { %v3664_v53 = vld [vmem:[#allocation2 + $0x10] sm:$0xff]  ;;  %v3667_v55 = vpack.c.bf16 %v3663_v51, %v3663_v51  ;;  %3671 = vst.msk [vmem:[#allocation12] sm:$0xf] %vm3670_vm15, %v3666_v54 }
0x1185   : > { %v3668_v56 = vpack.c.bf16 %v3664_v53, %v3664_v53 }
0x1186   : > { %3672 = vst.msk [vmem:[#allocation12 + $0x4] sm:$0xf] %vm3670_vm15, %v3667_v55 }
0x1187   : > { %v3665_v57 = vld [vmem:[#allocation2 + $0x18] sm:$0xff]  ;;  %3673 = vst.msk [vmem:[#allocation12 + $0x8] sm:$0xf] %vm3670_vm15, %v3668_v56 }
0x1188   : > { %v3669_v58 = vpack.c.bf16 %v3665_v57, %v3665_v57 }
0x118a   : > { %3674 = vst.msk [vmem:[#allocation12 + $0xc] sm:$0xf] %vm3670_vm15, %v3669_v58 }
0x118b PF: > { %s5725_s10 = sld [smem:[#allocation21_spill]]  ;;  %s4855_s2 = smov [#allocation12]  }
0x118c   : > { %s3684_s7 = sshll.u32 %s4855_s2, 4  ;;  %s3685_s7 = int_to_ptr.vmem [resolvable:$true] %s3684_s7 }
0x118d   : > { %s4750_s18 = scalar_lea.vmem %s3685_s7, 256  ;;  %p4757_p11 = scmp.lt.s32.totalorder %s3685_s7, %s3685_s7 }
0x118e   : > { %p4751_p4 = scmp.ne.s32.totalorder %s3685_s7, %s4750_s18  ;;  %p4758_p1 = scmp.lt.s32.totalorder %s4750_s18, %s4750_s18 }
0x1190   : > { %p4759_p2 = por %p4758_p1, %p4757_p11 }
0x1191   : > { %p4435_p13 = scmp.eq.s32.totalorder %s5725_s10, 1 }
0x1193   : > { %p4752_p3 = pnand %p4751_p4, %p4435_p13 }
0x1195   : > { %p4753_p0 = pneg %p4752_p3 }
0x1197   : > { %p4760_p5 = pnand %p4759_p2, %p4753_p0 }
0x1199   : > { %4763 = shalt.err (!%p4760_p5)
}
0x119a   : > { %s4856_s17 = smov 4   ;;  %s5726_s6 = sld [smem:[#allocation41_spill]] }
0x11a0   : > { %4413 = dma.vmem_to_hbm [thread:$0]  (%p4435_p13), %s3685_s7, 256, %s5726_s6, [#allocation7], %s4848_s25, %s4848_s25, %s4856_s17  }
0x11a1   : > { %4811 = dma.done.wait (%p4435_p13), [#allocation7], 256  }
0x11a2   : > { %4813 = vsyncadd (%p4435_p13), [#allocation7], 4294967040 }
0x11a3 PF: > { %s5727_s0 = sld [smem:[#allocation20_spill]] }
0x11a4   : > { %s5728_s21 = sld [smem:[#allocation17_spill]] }
0x11a5   : > { %s5729_s1 = sld [smem:[#allocation18_spill]] }
0x11a6   : > { %s5730_s22 = sld [smem:[#allocation23_spill]] }
0x11a7   : > { %s5731_s7 = sld [smem:[#allocation19_spill]] }
0x11a8   : > { %s5732_s23 = sld [smem:[#allocation22_spill]] }
0x11a9   : > { %s33_s2 = sadd.s32 1, %s5727_s0  }
0x11aa   : > { %p30_p10 = scmp.ge.s32.totalorder %s33_s2, 4  }
0x11ac   :  { %32 = sbr.rel (!%p30_p10) target bundleno = 24 (0x18), region = 200 }
0x11b1   :  { %3700 = vsyncpa [#allocation6], 1 }
0x11b2   :  { %3702 = vsyncpa [#allocation6 + $0x1], 1 }
0x11b3   :  { %3703 = vsyncpa [#allocation9], 1 }
0x11b4   :  { %3704 = vsyncpa [#allocation7], 1 }
0x11b5   :  { %3706 = vsyncpa [#allocation7 + $0x1], 1 }

</bundles_post_ra>
